<compile_context>
chip_gen: v5e
topology: v5e:2x2
jax: 0.10.0
libtpu: 0.0.40
codegen_flags: <defaults>
</compile_context>

<pallas_src>
import functools

import jax
import jax.numpy as jnp
from jax.experimental import pallas as pl
from jax.experimental.pallas import tpu as pltpu


def _assign_pool_kernel(feat_ref, wt_ref, b_ref,
                        assign_ref, pooled_ref, col_ref,
                        *, n, block_n, tiles_per_split, grid_n):
    """Pass A: per-tile softmax assignments + per-split partial A^T@X / col sums."""
    s = pl.program_id(0)          # split index (TensorCore shard on v7x)
    t = pl.program_id(1)          # tile index within the split (reduction axis)

    @pl.when(t == 0)
    def _init():
        pooled_ref[...] = jnp.zeros_like(pooled_ref)
        col_ref[...] = jnp.zeros_like(col_ref)

    tile = s * tiles_per_split + t            # nominal (unclamped) tile index
    row0 = tile * block_n
    rows = row0 + jax.lax.broadcasted_iota(jnp.int32, (block_n, 1), 0)
    in_bounds = rows < n                      # masks tail padding and duplicate tiles

    feat = jnp.where(in_bounds, feat_ref[...], 0)                       # [bn, F]
    # logits = feat @ W^T + b ; W^T pre-transposed to [F, k] in the wrapper.
    logits = jnp.dot(feat, wt_ref[...],
                     preferred_element_type=jnp.float32) + b_ref[...]   # [bn, k] f32

    # softmax over the cluster dim (dim=1 in the PyTorch code)
    m = jnp.max(logits, axis=-1, keepdims=True)
    e = jnp.exp(logits - m)
    inv_row = pl.reciprocal(jnp.sum(e, axis=-1, keepdims=True), approx=True)
    assignments = e * inv_row                                           # [bn, k] f32

    # Store per-tile assignments. Skip on overrun duplicate tiles: their out
    # index is clamped to the last real block, which already holds correct data
    # in the resident VMEM buffer.
    @pl.when(tile < grid_n)
    def _store():
        assign_ref[...] = assignments

    # Partial S += A_tile^T @ X_tile via dimension numbers (no transposes);
    # masked rows contribute zero.
    a_masked = jnp.where(in_bounds, assignments, 0.0)
    pooled_ref[...] += jax.lax.dot_general(
        a_masked.astype(feat.dtype), feat, (((0,), (0,)), ((), ())),
        preferred_element_type=jnp.float32)                             # [k, F]
    col_ref[...] += jnp.sum(a_masked, axis=0, keepdims=True)            # [1, k]


def _unpool_kernel(assign_ref, pooled_ref, out_ref):
    """Pass B: out_tile = A_tile @ pooled_scaled (column scaling already folded in)."""
    out_ref[...] = jnp.dot(assign_ref[...], pooled_ref[...],
                           preferred_element_type=jnp.float32).astype(out_ref.dtype)


def _pick_block_n(n, f, itemsize=4, target=1024, budget_bytes=20 << 20):
    """VMEM-budget-aware N tile: big (HBM-stream roofline), multiple of 256."""
    per_row = 2 * f * max(int(itemsize), 4)   # double-buffered [block_n, F] f32 stream
    cap = max(8, budget_bytes // per_row)
    bn = min(target, cap)
    if bn >= n:
        return n                              # single full-extent block
    if bn >= 256:
        return (bn // 256) * 256              # fill the 256-deep MXU cadence (v6e/v7x)
    return max(8, (bn // 8) * 8)


@functools.partial(jax.jit, static_argnames=("k", "block_n", "out_dtype"))
def diffpool_forward(features, graph, weight, bias, *, k, block_n=None, out_dtype=None):
    """Pallas DiffPooling forward (do_unpool=True, dropout=0, no hidden MLP).

    features: [N, F] float32 or bfloat16
    graph:    [N, N] adjacency (only used by the non-returned losses; unused)
    weight:   [k, F] final linear weight (orthogonal init)
    bias:     [k]    final linear bias (zeros)
    Returns (features_pooled [N, F] in out_dtype, assignments [N, k] float32).
    """
    del graph  # only needed for the (non-returned) auxiliary losses
    n, f = features.shape
    out_dtype = jnp.dtype(features.dtype if out_dtype is None else out_dtype)
    if block_n is None:
        block_n = _pick_block_n(n, f, jnp.dtype(features.dtype).itemsize)
    grid_n = pl.cdiv(n, block_n)
    n_split = 2 if grid_n >= 2 else 1         # two TensorCore shards on v7x
    tiles_per_split = pl.cdiv(grid_n, n_split)
    last_block = grid_n - 1

    wt = weight.T.astype(features.dtype)      # [F, k]: no in-kernel transposes
    bias2d = bias.reshape(1, k).astype(jnp.float32)

    # Clamped tile index: duplicate tail tiles (when n_split doesn't divide
    # grid_n) re-read the last real block; their contribution is masked.
    def tile_map(s, t):
        return (jnp.minimum(s * tiles_per_split + t, last_block), 0)

    kernel_a = functools.partial(
        _assign_pool_kernel, n=n, block_n=block_n,
        tiles_per_split=tiles_per_split, grid_n=grid_n)

    vmem_limit = 32 * 1024 * 1024             # fits v7x's 64 MiB physical w/ headroom

    # ---- Pass A: assignments + per-split partial (A^T X, col sums) -------------
    bytes_a = (n * f * jnp.dtype(features.dtype).itemsize
               + 4 * (f * k + k + n * k + n_split * (k * f + k)))
    assignments, pooled_parts, col_parts = pl.pallas_call(
        kernel_a,
        out_shape=(
            jax.ShapeDtypeStruct((n, k), jnp.float32),            # assignments
            jax.ShapeDtypeStruct((n_split, k, f), jnp.float32),   # partial A^T X
            jax.ShapeDtypeStruct((n_split, 1, k), jnp.float32),   # partial col sums
        ),
        grid_spec=pltpu.PrefetchScalarGridSpec(
            num_scalar_prefetch=0,
            grid=(n_split, tiles_per_split),
            in_specs=[
                pl.BlockSpec((block_n, f), tile_map),             # features tile
                pl.BlockSpec((f, k), lambda s, t: (0, 0)),        # W^T (resident)
                pl.BlockSpec((1, k), lambda s, t: (0, 0)),        # bias (resident)
            ],
            out_specs=(
                pl.BlockSpec((block_n, k), tile_map),             # per-tile assignments
                pl.BlockSpec((None, k, f), lambda s, t: (s, 0, 0)),   # per-split accum
                pl.BlockSpec((None, 1, k), lambda s, t: (s, 0, 0)),   # per-split col sums
            ),
        ),
        compiler_params=pltpu.CompilerParams(
            dimension_semantics=("parallel", "arbitrary"),        # split x reduction
            vmem_limit_bytes=vmem_limit),
        cost_estimate=pl.CostEstimate(
            flops=4 * n * f * k,              # logits matmul + A^T X accumulation
            transcendentals=n * k,            # softmax exp
            bytes_accessed=int(bytes_a)),
    )(features, wt, bias2d)

    # ---- Tiny [k, F] finalize in the wrapper (negligible work) -----------------
    pooled_sum = pooled_parts.sum(axis=0)                         # [k, F]
    inv_col = 1.0 / col_parts.sum(axis=(0, 1))                    # [k], exact reciprocal
    pooled = jax.nn.selu(pooled_sum * inv_col[:, None])           # selu(A_pool^T X)
    # Fold the unpool column normalization: A_pool @ pooled == A @ (diag(1/col) @ pooled)
    pooled_scaled = pooled * inv_col[:, None]                     # [k, F] f32

    # ---- Pass B: unpool = A @ pooled_scaled (parallel over N tiles) ------------
    bytes_b = 4 * (n * k + k * f) + n * f * out_dtype.itemsize
    features_pooled = pl.pallas_call(
        _unpool_kernel,
        out_shape=jax.ShapeDtypeStruct((n, f), out_dtype),
        grid_spec=pltpu.PrefetchScalarGridSpec(
            num_scalar_prefetch=0,
            grid=(grid_n,),
            in_specs=[
                pl.BlockSpec((block_n, k), lambda i: (i, 0)),
                pl.BlockSpec((k, f), lambda i: (0, 0)),
            ],
            out_specs=pl.BlockSpec((block_n, f), lambda i: (i, 0)),
        ),
        compiler_params=pltpu.CompilerParams(
            dimension_semantics=("parallel",),                    # megacore-shardable
            vmem_limit_bytes=vmem_limit),
        cost_estimate=pl.CostEstimate(
            flops=2 * n * k * f,
            transcendentals=0,
            bytes_accessed=int(bytes_b)),
    )(assignments, pooled_scaled)

    return features_pooled, assignments


def _reference(features, weight, bias):
    logits = features @ weight.T + bias
    assignments = jax.nn.softmax(logits, axis=1)
    assignments_pool = assignments / jnp.sum(assignments, axis=0)
    pooled = jax.nn.selu(assignments_pool.T @ features)
    return assignments_pool @ pooled, assignments


if __name__ == "__main__":
    # N deliberately not a multiple of BLOCK_N: exercises the cdiv grid, the
    # tail-row masking, the dual-split grid and the clamped duplicate tile.
    N, F, K = 600, 256, 8
    BLOCK_N = 256

    key = jax.random.PRNGKey(0)
    k_feat, k_graph, k_w = jax.random.split(key, 3)

    features = jax.random.normal(k_feat, (N, F), dtype=jnp.float32)
    graph = (jax.random.uniform(k_graph, (N, N)) > 0.9).astype(jnp.float32)
    graph = jnp.maximum(graph, graph.T)  # symmetric adjacency (losses only)

    # Deterministic orthogonal init for the final linear layer (rows orthonormal).
    gauss = jax.random.normal(k_w, (F, K), dtype=jnp.float32)
    q, _ = jnp.linalg.qr(gauss)          # [F, K], orthonormal columns
    weight = q.T                          # [K, F], orthonormal rows
    bias = jnp.zeros((K,), dtype=jnp.float32)

    ref_pooled, ref_assign = _reference(features, weight, bias)

    # 1) Forced small tile: grid (2, 2) with a partial tail tile + duplicate tile.
    out1, asg1 = diffpool_forward(features, graph, weight, bias, k=K, block_n=BLOCK_N)
    jax.block_until_ready((out1, asg1))
    assert asg1.shape == (N, K) and out1.shape == (N, F)
    assert bool(jnp.all(jnp.isfinite(out1)))
    assert jnp.allclose(asg1, ref_assign, atol=1e-2, rtol=1e-2)
    assert jnp.allclose(out1, ref_pooled, atol=1e-2, rtol=1e-2)

    # 2) Auto (VMEM-budget / roofline) tile choice.
    out2, asg2 = diffpool_forward(features, graph, weight, bias, k=K)
    jax.block_until_ready((out2, asg2))
    assert jnp.allclose(asg2, ref_assign, atol=1e-2, rtol=1e-2)
    assert jnp.allclose(out2, ref_pooled, atol=1e-2, rtol=1e-2)

    # 3) bf16-at-rest features + bf16 output (HBM-bandwidth lever); loose check.
    out3, asg3 = diffpool_forward(features.astype(jnp.bfloat16), graph, weight, bias,
                                  k=K, block_n=BLOCK_N, out_dtype=jnp.bfloat16)
    jax.block_until_ready((out3, asg3))
    assert out3.dtype == jnp.bfloat16
    assert bool(jnp.all(jnp.isfinite(out3.astype(jnp.float32))))
    assert jnp.allclose(asg3, ref_assign, atol=5e-2, rtol=5e-2)
    assert jnp.allclose(out3.astype(jnp.float32), ref_pooled, atol=1e-1, rtol=1e-1)

    print("KERNEL_OK")
</pallas_src>

<mosaic_0001>
module attributes {stable_mosaic.version = 11 : i64} {
  func.func @_unpool_kernel(%arg0: i32, %arg1: memref<256x8xf32, #tpu.memory_space<vmem>>, %arg2: memref<8x256xf32, #tpu.memory_space<vmem>>, %arg3: memref<256x256xf32, #tpu.memory_space<vmem>>) attributes {dimension_semantics = [#tpu.dimension_semantics<parallel>], iteration_bounds = array<i64: 3>, scalar_prefetch = 0 : i64, scratch_operands = 0 : i64, tpu.core_type = #tpu.core_type<tc>, window_params = [{transform_indices = @transform_0, window_bounds = array<i64: 256, 8>}, {pipeline_mode = #tpu.pipeline_mode<synchronous>, transform_indices = @transform_1, window_bounds = array<i64: 8, 256>}, {transform_indices = @transform_2, window_bounds = array<i64: 256, 256>}]} {
    %c0 = arith.constant 0 : index
    %c0_0 = arith.constant 0 : index
    %0 = vector.load %arg1[%c0, %c0_0] : memref<256x8xf32, #tpu.memory_space<vmem>>, vector<256x8xf32>
    %c0_1 = arith.constant 0 : index
    %c0_2 = arith.constant 0 : index
    %1 = vector.load %arg2[%c0_1, %c0_2] : memref<8x256xf32, #tpu.memory_space<vmem>>, vector<8x256xf32>
    %cst = arith.constant dense<0.000000e+00> : vector<256x256xf32>
    %2 = tpu.matmul %0, %1, %cst {dimension_numbers = #tpu.dot_dimension_numbers<[1], [0], [0], [1], [0, 0, 1, 1], [], []>} : vector<256x8xf32>, vector<8x256xf32>, vector<256x256xf32> -> vector<256x256xf32>
    %c0_3 = arith.constant 0 : index
    %c0_4 = arith.constant 0 : index
    %3 = vector.load %arg3[%c0_3, %c0_4] : memref<256x256xf32, #tpu.memory_space<vmem>>, vector<256x256xf32>
    tpu.vector_store %arg3[%c0_3, %c0_4], %2 {strides = array<i32>} : memref<256x256xf32, #tpu.memory_space<vmem>>, vector<256x256xf32>,
    return
  }
  func.func @transform_0(%arg0: i32) -> (i32, i32) {
    %c0_i32 = arith.constant 0 : i32
    %c0_i32_0 = arith.constant 0 : i32
    return %arg0, %c0_i32 : i32, i32
  }
  func.func @transform_1(%arg0: i32) -> (i32, i32) {
    %c0_i32 = arith.constant 0 : i32
    %c0_i32_0 = arith.constant 0 : i32
    %c0_i32_1 = arith.constant 0 : i32
    return %c0_i32, %c0_i32_0 : i32, i32
  }
  func.func @transform_2(%arg0: i32) -> (i32, i32) {
    %c0_i32 = arith.constant 0 : i32
    %c0_i32_0 = arith.constant 0 : i32
    return %arg0, %c0_i32 : i32, i32
  }
}

module attributes {stable_mosaic.version = 11 : i64} {
  func.func @_assign_pool_kernel(%arg0: i32, %arg1: i32, %arg2: memref<256x256xf32, #tpu.memory_space<vmem>>, %arg3: memref<256x8xf32, #tpu.memory_space<vmem>>, %arg4: memref<1x8xf32, #tpu.memory_space<vmem>>, %arg5: memref<256x8xf32, #tpu.memory_space<vmem>>, %arg6: memref<1x8x256xf32, #tpu.memory_space<vmem>>, %arg7: memref<1x1x8xf32, #tpu.memory_space<vmem>>) attributes {dimension_semantics = [#tpu.dimension_semantics<parallel>, #tpu.dimension_semantics<arbitrary>], iteration_bounds = array<i64: 2, 2>, scalar_prefetch = 0 : i64, scratch_operands = 0 : i64, tpu.core_type = #tpu.core_type<tc>, window_params = [{transform_indices = @transform_0, window_bounds = array<i64: 256, 256>}, {pipeline_mode = #tpu.pipeline_mode<synchronous>, transform_indices = @transform_1, window_bounds = array<i64: 256, 8>}, {pipeline_mode = #tpu.pipeline_mode<synchronous>, transform_indices = @transform_2, window_bounds = array<i64: 1, 8>}, {transform_indices = @transform_3, window_bounds = array<i64: 256, 8>}, {transform_indices = @transform_4, window_bounds = array<i64: 1, 8, 256>}, {transform_indices = @transform_5, window_bounds = array<i64: 1, 1, 8>}]} {
    %c0_i32 = arith.constant 0 : i32
    %0 = arith.cmpi eq, %arg1, %c0_i32 : i32
    %1 = arith.extui %0 : i1 to i32
    %c0_i32_0 = arith.constant 0 : i32
    %2 = arith.cmpi ne, %1, %c0_i32_0 : i32
    scf.if %2 {
      %cst_25 = arith.constant 0.000000e+00 : f32
      %54 = vector.broadcast %cst_25 : f32 to vector<8x256xf32>
      %c0_26 = arith.constant 0 : index
      %c0_27 = arith.constant 0 : index
      %c0_28 = arith.constant 0 : index
      %55 = vector.load %arg6[%c0_26, %c0_27, %c0_28] : memref<1x8x256xf32, #tpu.memory_space<vmem>>, vector<1x8x256xf32>
      %56 = vector.shape_cast %55 : vector<1x8x256xf32> to vector<8x256xf32>
      %57 = vector.shape_cast %54 : vector<8x256xf32> to vector<1x8x256xf32>
      tpu.vector_store %arg6[%c0_26, %c0_27, %c0_28], %57 {strides = array<i32>} : memref<1x8x256xf32, #tpu.memory_space<vmem>>, vector<1x8x256xf32>,
      %cst_29 = arith.constant 0.000000e+00 : f32
      %58 = vector.broadcast %cst_29 : f32 to vector<1x8xf32>
      %c0_30 = arith.constant 0 : index
      %c0_31 = arith.constant 0 : index
      %c0_32 = arith.constant 0 : index
      %59 = vector.load %arg7[%c0_30, %c0_31, %c0_32] : memref<1x1x8xf32, #tpu.memory_space<vmem>>, vector<1x1x8xf32>
      %60 = vector.shape_cast %59 : vector<1x1x8xf32> to vector<1x8xf32>
      %61 = vector.shape_cast %58 : vector<1x8xf32> to vector<1x1x8xf32>
      tpu.vector_store %arg7[%c0_30, %c0_31, %c0_32], %61 {strides = array<i32>} : memref<1x1x8xf32, #tpu.memory_space<vmem>>, vector<1x1x8xf32>,
    } else {
    }
    %c2_i32 = arith.constant 2 : i32
    %3 = arith.muli %arg0, %c2_i32 : i32
    %4 = arith.addi %3, %arg1 : i32
    %c256_i32 = arith.constant 256 : i32
    %5 = arith.muli %4, %c256_i32 : i32
    %6 = tpu.iota {dimensions = array<i32: 0>} : vector<256x1xi32>
    %7 = vector.broadcast %5 : i32 to vector<256x1xi32>
    %8 = arith.addi %7, %6 : vector<256x1xi32>
    %c600_i32 = arith.constant 600 : i32
    %9 = vector.broadcast %c600_i32 : i32 to vector<256x1xi32>
    %10 = arith.cmpi slt, %8, %9 : vector<256x1xi32>
    %c0 = arith.constant 0 : index
    %c0_1 = arith.constant 0 : index
    %11 = vector.load %arg2[%c0, %c0_1] : memref<256x256xf32, #tpu.memory_space<vmem>>, vector<256x256xf32>
    %c0_i32_2 = arith.constant 0 : i32
    %12 = arith.sitofp %c0_i32_2 : i32 to f32
    %13 = vector.shape_cast %10 : vector<256x1xi1> to vector<256x1xi1>
    %14 = vector.broadcast %13 : vector<256x1xi1> to vector<256x256xi1>
    %15 = vector.broadcast %12 : f32 to vector<256x256xf32>
    %16 = arith.select %14, %11, %15 : vector<256x256xi1>, vector<256x256xf32>
    %c0_3 = arith.constant 0 : index
    %c0_4 = arith.constant 0 : index
    %17 = vector.load %arg3[%c0_3, %c0_4] : memref<256x8xf32, #tpu.memory_space<vmem>>, vector<256x8xf32>
    %cst = arith.constant dense<0.000000e+00> : vector<256x8xf32>
    %18 = tpu.matmul %16, %17, %cst {dimension_numbers = #tpu.dot_dimension_numbers<[1], [0], [0], [1], [0, 0, 1, 1], [], []>} : vector<256x256xf32>, vector<256x8xf32>, vector<256x8xf32> -> vector<256x8xf32>
    %c0_5 = arith.constant 0 : index
    %c0_6 = arith.constant 0 : index
    %19 = vector.load %arg4[%c0_5, %c0_6] : memref<1x8xf32, #tpu.memory_space<vmem>>, vector<1x8xf32>
    %20 = vector.broadcast %19 : vector<1x8xf32> to vector<256x8xf32>
    %21 = arith.addf %18, %20 : vector<256x8xf32>
    %cst_7 = arith.constant dense<0xFF800000> : vector<256xf32>
    %22 = vector.multi_reduction <maximumf>, %21, %cst_7 [1] : vector<256x8xf32> to vector<256xf32>
    %23 = vector.shape_cast %22 : vector<256xf32> to vector<256x1xf32>
    %24 = vector.broadcast %23 : vector<256x1xf32> to vector<256x8xf32>
    %25 = arith.subf %21, %24 : vector<256x8xf32>
    %26 = math.exp %25 : vector<256x8xf32>
    %cst_8 = arith.constant dense<0.000000e+00> : vector<256xf32>
    %27 = vector.multi_reduction <add>, %26, %cst_8 [1] : vector<256x8xf32> to vector<256xf32>
    %28 = vector.shape_cast %27 : vector<256xf32> to vector<256x1xf32>
    %29 = tpu.reciprocal %28 {approx = true} : vector<256x1xf32> -> vector<256x1xf32>
    %30 = vector.broadcast %29 : vector<256x1xf32> to vector<256x8xf32>
    %31 = arith.mulf %26, %30 : vector<256x8xf32>
    %c3_i32 = arith.constant 3 : i32
    %32 = arith.cmpi slt, %4, %c3_i32 : i32
    %33 = arith.extui %32 : i1 to i32
    %c0_i32_9 = arith.constant 0 : i32
    %34 = arith.cmpi ne, %33, %c0_i32_9 : i32
    scf.if %34 {
      %c0_25 = arith.constant 0 : index
      %c0_26 = arith.constant 0 : index
      %54 = vector.load %arg5[%c0_25, %c0_26] : memref<256x8xf32, #tpu.memory_space<vmem>>, vector<256x8xf32>
      tpu.vector_store %arg5[%c0_25, %c0_26], %31 {strides = array<i32>} : memref<256x8xf32, #tpu.memory_space<vmem>>, vector<256x8xf32>,
    } else {
    }
    %cst_10 = arith.constant 0.000000e+00 : f32
    %35 = vector.shape_cast %10 : vector<256x1xi1> to vector<256x1xi1>
    %36 = vector.broadcast %35 : vector<256x1xi1> to vector<256x8xi1>
    %37 = vector.broadcast %cst_10 : f32 to vector<256x8xf32>
    %38 = arith.select %36, %31, %37 : vector<256x8xi1>, vector<256x8xf32>
    %c0_11 = arith.constant 0 : index
    %c0_12 = arith.constant 0 : index
    %c0_13 = arith.constant 0 : index
    %39 = vector.load %arg6[%c0_11, %c0_12, %c0_13] : memref<1x8x256xf32, #tpu.memory_space<vmem>>, vector<1x8x256xf32>
    %40 = vector.shape_cast %39 : vector<1x8x256xf32> to vector<8x256xf32>
    %cst_14 = arith.constant dense<0.000000e+00> : vector<8x256xf32>
    %41 = tpu.matmul %38, %16, %cst_14 {dimension_numbers = #tpu.dot_dimension_numbers<[0], [0], [1], [1], [0, 1, 1, 1], [], []>} : vector<256x8xf32>, vector<256x256xf32>, vector<8x256xf32> -> vector<8x256xf32>
    %42 = arith.addf %40, %41 : vector<8x256xf32>
    %c0_15 = arith.constant 0 : index
    %c0_16 = arith.constant 0 : index
    %c0_17 = arith.constant 0 : index
    %43 = vector.load %arg6[%c0_15, %c0_16, %c0_17] : memref<1x8x256xf32, #tpu.memory_space<vmem>>, vector<1x8x256xf32>
    %44 = vector.shape_cast %43 : vector<1x8x256xf32> to vector<8x256xf32>
    %45 = vector.shape_cast %42 : vector<8x256xf32> to vector<1x8x256xf32>
    tpu.vector_store %arg6[%c0_15, %c0_16, %c0_17], %45 {strides = array<i32>} : memref<1x8x256xf32, #tpu.memory_space<vmem>>, vector<1x8x256xf32>,
    %c0_18 = arith.constant 0 : index
    %c0_19 = arith.constant 0 : index
    %c0_20 = arith.constant 0 : index
    %46 = vector.load %arg7[%c0_18, %c0_19, %c0_20] : memref<1x1x8xf32, #tpu.memory_space<vmem>>, vector<1x1x8xf32>
    %47 = vector.shape_cast %46 : vector<1x1x8xf32> to vector<1x8xf32>
    %cst_21 = arith.constant dense<0.000000e+00> : vector<8xf32>
    %48 = vector.multi_reduction <add>, %38, %cst_21 [0] : vector<256x8xf32> to vector<8xf32>
    %49 = vector.shape_cast %48 : vector<8xf32> to vector<1x8xf32>
    %50 = arith.addf %47, %49 : vector<1x8xf32>
    %c0_22 = arith.constant 0 : index
    %c0_23 = arith.constant 0 : index
    %c0_24 = arith.constant 0 : index
    %51 = vector.load %arg7[%c0_22, %c0_23, %c0_24] : memref<1x1x8xf32, #tpu.memory_space<vmem>>, vector<1x1x8xf32>
    %52 = vector.shape_cast %51 : vector<1x1x8xf32> to vector<1x8xf32>
    %53 = vector.shape_cast %50 : vector<1x8xf32> to vector<1x1x8xf32>
    tpu.vector_store %arg7[%c0_22, %c0_23, %c0_24], %53 {strides = array<i32>} : memref<1x1x8xf32, #tpu.memory_space<vmem>>, vector<1x1x8xf32>,
    return
  }
  func.func @transform_0(%arg0: i32, %arg1: i32) -> (i32, i32) {
    %c2_i32 = arith.constant 2 : i32
    %0 = arith.muli %arg0, %c2_i32 : i32
    %1 = arith.addi %0, %arg1 : i32
    %c2_i32_0 = arith.constant 2 : i32
    %2 = arith.minsi %1, %c2_i32_0 : i32
    %c0_i32 = arith.constant 0 : i32
    %c0_i32_1 = arith.constant 0 : i32
    return %2, %c0_i32 : i32, i32
  }
  func.func @transform_1(%arg0: i32, %arg1: i32) -> (i32, i32) {
    %c0_i32 = arith.constant 0 : i32
    %c0_i32_0 = arith.constant 0 : i32
    %c0_i32_1 = arith.constant 0 : i32
    return %c0_i32, %c0_i32_0 : i32, i32
  }
  func.func @transform_2(%arg0: i32, %arg1: i32) -> (i32, i32) {
    %c0_i32 = arith.constant 0 : i32
    %c0_i32_0 = arith.constant 0 : i32
    %c0_i32_1 = arith.constant 0 : i32
    return %c0_i32, %c0_i32_0 : i32, i32
  }
  func.func @transform_3(%arg0: i32, %arg1: i32) -> (i32, i32) {
    %c2_i32 = arith.constant 2 : i32
    %0 = arith.muli %arg0, %c2_i32 : i32
    %1 = arith.addi %0, %arg1 : i32
    %c2_i32_0 = arith.constant 2 : i32
    %2 = arith.minsi %1, %c2_i32_0 : i32
    %c0_i32 = arith.constant 0 : i32
    %c0_i32_1 = arith.constant 0 : i32
    return %2, %c0_i32 : i32, i32
  }
  func.func @transform_4(%arg0: i32, %arg1: i32) -> (i32, i32, i32) {
    %c0_i32 = arith.constant 0 : i32
    %c0_i32_0 = arith.constant 0 : i32
    %c0_i32_1 = arith.constant 0 : i32
    return %arg0, %c0_i32, %c0_i32_0 : i32, i32, i32
  }
  func.func @transform_5(%arg0: i32, %arg1: i32) -> (i32, i32, i32) {
    %c0_i32 = arith.constant 0 : i32
    %c0_i32_0 = arith.constant 0 : i32
    %c0_i32_1 = arith.constant 0 : i32
    return %arg0, %c0_i32, %c0_i32_0 : i32, i32, i32
  }
}

</mosaic_0001>

<bundles_post_ra>
// kernel: diffpool_forward.3
= control target key start
LH: loop header
LB: loop body
LE: loop exit
PB: predicated region body
PF: predicated region fallthrough
CT: control target
= control target key end

     0   :  { %7 = vsyncpa [#allocation3], 0  ;;  %s1190_s0 = inlined_call_operand.vmem [shape: f32[600,8], index: 0, kind: input, shape index: {}]   ;;  %s1191_s1 = inlined_call_operand.vmem [shape: f32[8,256], index: 1, kind: input, shape index: {}]   ;;  %s1192_s2 = inlined_call_operand.hbm [shape: f32[600,256], index: 2, kind: output, shape index: {}]  }
   0x1   :  { %9 = vsyncpa [#allocation3 + $0x1], 0  ;;  %s898_s9 = smov 0   ;;  %s900_s10 = smov 0  }
   0x2   :  { %s902_s11 = smov 0   ;;  %s904_s12 = smov 0  }
   0x3 LB: > { %s919_s13 = sadd.s32 4294967295, %s878_s12   ;;  %s678_s14 = sadd.s32 4294967294, %s878_s12   ;;  %s878_s12 = sphi %s904_s12, %s1199_s12   ;;  %s874_s11 = sphi %s902_s11, %s1198_s11   ;;  %s870_s10 = sphi %s900_s10, %s1197_s10   ;;  %s866_s9 = sphi %s898_s9, %s1196_s9  }
   0x4   : > { %s923_s15 = sadd.s32 1, %s878_s12   ;;  %s69_s16 = sadd.s32 1, %s874_s11 }
   0x5   : > { %s66_s17 = ssub.s32 %s878_s12, %s923_s15  ;;  %p79_p0 = scmp.ne.s32.totalorder %s874_s11, %s870_s10 }
   0x6   : > { %p67_p1 = scmp.eq.s32.totalorder %s66_s17, 0  ;;  %p80_p2 = scmp.eq.s32.totalorder %s919_s13, 2 }
   0x7   : > { %p85_p3 = scmp.ne.s32.totalorder %s870_s10, %s866_s9  ;;  %p86_p4 = scmp.eq.s32.totalorder %s678_s14, 2 }
   0x8   : > { %s934_s18 = scalar_select %p67_p1, %s874_s11, %s69_s16  }
   0x9   : > { %p936_p5 = por %p80_p2, %p79_p0  ;;  %p940_p6 = por %p86_p4, %p85_p3 }
   0xa   : > { %p681_p7 = scmp.ge.s32.totalorder %s878_s12, 1  ;;  %p124_p8 = scmp.lt.s32.totalorder %s878_s12, 4 }
   0xc   : > { %p125_p9 = pnand %p681_p7, %p124_p8 }
   0xd   : > { %s953_s25 = sshll.u32 (!%p125_p9), %s919_s13, 5  ;;  %s147_s3 = sand.u32 (!%p125_p9), 1, %s870_s10  }
   0xe   : > { %128 = sbr.rel (%p125_p9) target bundleno = 309 (0x135), region = 28  ;;  %p155_p10 = scmp.lt.s32.totalorder (!%p125_p9), %s953_s25, 74 }
   0xf   : > { %s682_s4 = sshll.u32 (!%p125_p9), %s147_s3, 9  ;;  %s1129_s6 = scalar_lea.sflag (!%p125_p9), [#allocation3], %s147_s3 }
  0x10   : > { %s1061_s5 = scalar_lea.vmem (!%p125_p9), [#allocation2], %s682_s4 }
  0x13   : > { %v202_v0 = vld [vmem:[%s1191_s1] sm:$0xff]  ;;  %v203_v1 = vld [vmem:[%s1191_s1 + $0x8] sm:$0xff]  ;;  %s156_s26 = scalar_select %p155_p10, %s953_s25, 74  ;;  %vm204_vm0 = vcmask 64512  }
  0x14   : > { %763 = vmatpush.msra.mxu2 %v202_v0  ;;  %764 = vmatpush.msra.mxu3 %v203_v1  ;;  %s600_s7 = ssub.s32 (%p936_p5), 75, %s953_s25 }
  0x15   : > { %316 = vmatpush.msra.mxu0 %v202_v0  ;;  %429 = vmatpush.msra.mxu1 %v203_v1  ;;  %s684_s27 = sshll.u32 %s156_s26, 3  ;;  %p601_p11 = scmp.lt.s32.totalorder (%p936_p5), %s600_s7, 32 }
  0x16   : > { %s960_s30 = scalar_lea.vmem %s1190_s0, %s684_s27 }
  0x17   : > { %v186_v2 = vld [vmem:[%s960_s30 + $0x80] sm:$0xff]  ;;  %v187_v4 = vld [vmem:[%s960_s30 + $0x88] sm:$0xff]  ;;  %v188_v6 = vld [vmem:[%s960_s30 + $0x90] sm:$0xff] }
  0x18   : > { %v170_v3 = vld [vmem:[%s960_s30] sm:$0xff]  ;;  %701 = vmatmul.msk.f32.vlgmr.msra.gmra.mxu2 %vm204_vm0, %v186_v2  ;;  %733 = vmatmul.msk.f32.vlgmr.msra.gmra.mxu3 %vm204_vm0, %v186_v2  ;;  %v171_v5 = vld [vmem:[%s960_s30 + $0x8] sm:$0xff]  ;;  %v172_v7 = vld [vmem:[%s960_s30 + $0x10] sm:$0xff] }
  0x19   : > { %685 = vmatmul.msk.f32.vlgmr.msra.gmra.mxu0 %vm204_vm0, %v170_v3  ;;  %717 = vmatmul.msk.f32.vlgmr.msra.gmra.mxu1 %vm204_vm0, %v170_v3  ;;  %v189_v8 = vld [vmem:[%s960_s30 + $0x98] sm:$0xff]  ;;  %v190_v10 = vld [vmem:[%s960_s30 + $0xa0] sm:$0xff]  ;;  %v191_v12 = vld [vmem:[%s960_s30 + $0xa8] sm:$0xff] }
  0x1a   : > { %v173_v9 = vld [vmem:[%s960_s30 + $0x18] sm:$0xff]  ;;  %v174_v11 = vld [vmem:[%s960_s30 + $0x20] sm:$0xff]  ;;  %v175_v13 = vld [vmem:[%s960_s30 + $0x28] sm:$0xff] }
  0x1b   : > { %v192_v14 = vld [vmem:[%s960_s30 + $0xb0] sm:$0xff]  ;;  %v193_v16 = vld [vmem:[%s960_s30 + $0xb8] sm:$0xff]  ;;  %v194_v18 = vld [vmem:[%s960_s30 + $0xc0] sm:$0xff] }
  0x1c   : > { %v176_v15 = vld [vmem:[%s960_s30 + $0x30] sm:$0xff]  ;;  %v177_v17 = vld [vmem:[%s960_s30 + $0x38] sm:$0xff]  ;;  %v178_v19 = vld [vmem:[%s960_s30 + $0x40] sm:$0xff] }
  0x1d   : > { %v195_v20 = vld [vmem:[%s960_s30 + $0xc8] sm:$0xff]  ;;  %v196_v22 = vld [vmem:[%s960_s30 + $0xd0] sm:$0xff]  ;;  %v197_v24 = vld [vmem:[%s960_s30 + $0xd8] sm:$0xff] }
  0x1e   : > { %v179_v21 = vld [vmem:[%s960_s30 + $0x48] sm:$0xff]  ;;  %v180_v23 = vld [vmem:[%s960_s30 + $0x50] sm:$0xff]  ;;  %v181_v25 = vld [vmem:[%s960_s30 + $0x58] sm:$0xff] }
  0x1f   : > { %v198_v26 = vld [vmem:[%s960_s30 + $0xe0] sm:$0xff]  ;;  %v199_v28 = vld [vmem:[%s960_s30 + $0xe8] sm:$0xff]  ;;  %v200_v30 = vld [vmem:[%s960_s30 + $0xf0] sm:$0xff] }
  0x20   : > { %702 = vmatmul.msk.f32.gmra.mxu2 %vm204_vm0, %v187_v4  ;;  %734 = vmatmul.msk.f32.gmra.mxu3 %vm204_vm0, %v187_v4  ;;  %v182_v27 = vld [vmem:[%s960_s30 + $0x60] sm:$0xff]  ;;  %v183_v29 = vld [vmem:[%s960_s30 + $0x68] sm:$0xff]  ;;  %v184_v31 = vld [vmem:[%s960_s30 + $0x70] sm:$0xff] }
  0x21   : > { %686 = vmatmul.msk.f32.gmra.mxu0 %vm204_vm0, %v171_v5  ;;  %718 = vmatmul.msk.f32.gmra.mxu1 %vm204_vm0, %v171_v5  ;;  %v201_v32 = vld [vmem:[%s960_s30 + $0xf8] sm:$0xff] }
  0x22   : > { %v185_v33 = vld [vmem:[%s960_s30 + $0x78] sm:$0xff] }
  0x28   : > { %703 = vmatmul.msk.f32.gmra.mxu2 %vm204_vm0, %v188_v6  ;;  %735 = vmatmul.msk.f32.gmra.mxu3 %vm204_vm0, %v188_v6 }
  0x29   : > { %687 = vmatmul.msk.f32.gmra.mxu0 %vm204_vm0, %v172_v7  ;;  %719 = vmatmul.msk.f32.gmra.mxu1 %vm204_vm0, %v172_v7 }
  0x30   : > { %704 = vmatmul.msk.f32.gmra.mxu2 %vm204_vm0, %v189_v8  ;;  %736 = vmatmul.msk.f32.gmra.mxu3 %vm204_vm0, %v189_v8 }
  0x31   : > { %688 = vmatmul.msk.f32.gmra.mxu0 %vm204_vm0, %v173_v9  ;;  %720 = vmatmul.msk.f32.gmra.mxu1 %vm204_vm0, %v173_v9 }
  0x38   : > { %705 = vmatmul.msk.f32.gmra.mxu2 %vm204_vm0, %v190_v10  ;;  %737 = vmatmul.msk.f32.gmra.mxu3 %vm204_vm0, %v190_v10 }
  0x39   : > { %689 = vmatmul.msk.f32.gmra.mxu0 %vm204_vm0, %v174_v11  ;;  %721 = vmatmul.msk.f32.gmra.mxu1 %vm204_vm0, %v174_v11 }
  0x40   : > { %706 = vmatmul.msk.f32.gmra.mxu2 %vm204_vm0, %v191_v12  ;;  %738 = vmatmul.msk.f32.gmra.mxu3 %vm204_vm0, %v191_v12 }
  0x41   : > { %690 = vmatmul.msk.f32.gmra.mxu0 %vm204_vm0, %v175_v13  ;;  %722 = vmatmul.msk.f32.gmra.mxu1 %vm204_vm0, %v175_v13 }
  0x48   : > { %707 = vmatmul.msk.f32.gmra.mxu2 %vm204_vm0, %v192_v14  ;;  %739 = vmatmul.msk.f32.gmra.mxu3 %vm204_vm0, %v192_v14 }
  0x49   : > { %691 = vmatmul.msk.f32.gmra.mxu0 %vm204_vm0, %v176_v15  ;;  %723 = vmatmul.msk.f32.gmra.mxu1 %vm204_vm0, %v176_v15 }
  0x50   : > { %708 = vmatmul.msk.f32.gmra.mxu2 %vm204_vm0, %v193_v16  ;;  %740 = vmatmul.msk.f32.gmra.mxu3 %vm204_vm0, %v193_v16 }
  0x51   : > { %692 = vmatmul.msk.f32.gmra.mxu0 %vm204_vm0, %v177_v17  ;;  %724 = vmatmul.msk.f32.gmra.mxu1 %vm204_vm0, %v177_v17 }
  0x58   : > { %709 = vmatmul.msk.f32.gmra.mxu2 %vm204_vm0, %v194_v18  ;;  %741 = vmatmul.msk.f32.gmra.mxu3 %vm204_vm0, %v194_v18 }
  0x59   : > { %693 = vmatmul.msk.f32.gmra.mxu0 %vm204_vm0, %v178_v19  ;;  %725 = vmatmul.msk.f32.gmra.mxu1 %vm204_vm0, %v178_v19 }
  0x60   : > { %710 = vmatmul.msk.f32.gmra.mxu2 %vm204_vm0, %v195_v20  ;;  %742 = vmatmul.msk.f32.gmra.mxu3 %vm204_vm0, %v195_v20 }
  0x61   : > { %694 = vmatmul.msk.f32.gmra.mxu0 %vm204_vm0, %v179_v21  ;;  %726 = vmatmul.msk.f32.gmra.mxu1 %vm204_vm0, %v179_v21 }
  0x68   : > { %711 = vmatmul.msk.f32.gmra.mxu2 %vm204_vm0, %v196_v22  ;;  %743 = vmatmul.msk.f32.gmra.mxu3 %vm204_vm0, %v196_v22 }
  0x69   : > { %695 = vmatmul.msk.f32.gmra.mxu0 %vm204_vm0, %v180_v23  ;;  %727 = vmatmul.msk.f32.gmra.mxu1 %vm204_vm0, %v180_v23 }
  0x70   : > { %712 = vmatmul.msk.f32.gmra.mxu2 %vm204_vm0, %v197_v24  ;;  %744 = vmatmul.msk.f32.gmra.mxu3 %vm204_vm0, %v197_v24 }
  0x71   : > { %696 = vmatmul.msk.f32.gmra.mxu0 %vm204_vm0, %v181_v25  ;;  %728 = vmatmul.msk.f32.gmra.mxu1 %vm204_vm0, %v181_v25 }
  0x78   : > { %713 = vmatmul.msk.f32.gmra.mxu2 %vm204_vm0, %v198_v26  ;;  %745 = vmatmul.msk.f32.gmra.mxu3 %vm204_vm0, %v198_v26 }
  0x79   : > { %697 = vmatmul.msk.f32.gmra.mxu0 %vm204_vm0, %v182_v27  ;;  %729 = vmatmul.msk.f32.gmra.mxu1 %vm204_vm0, %v182_v27 }
  0x80   : > { %714 = vmatmul.msk.f32.gmra.mxu2 %vm204_vm0, %v199_v28  ;;  %746 = vmatmul.msk.f32.gmra.mxu3 %vm204_vm0, %v199_v28 }
  0x81   : > { %698 = vmatmul.msk.f32.gmra.mxu0 %vm204_vm0, %v183_v29  ;;  %730 = vmatmul.msk.f32.gmra.mxu1 %vm204_vm0, %v183_v29 }
  0x88   : > { %715 = vmatmul.msk.f32.gmra.mxu2 %vm204_vm0, %v200_v30  ;;  %747 = vmatmul.msk.f32.gmra.mxu3 %vm204_vm0, %v200_v30 }
  0x89   : > { %699 = vmatmul.msk.f32.gmra.mxu0 %vm204_vm0, %v184_v31  ;;  %731 = vmatmul.msk.f32.gmra.mxu1 %vm204_vm0, %v184_v31 }
  0x90   : > { %716 = vmatmul.msk.f32.gmra.mxu2 %vm204_vm0, %v201_v32  ;;  %748 = vmatmul.msk.f32.gmra.mxu3 %vm204_vm0, %v201_v32 }
  0x91   : > { %700 = vmatmul.msk.f32.gmra.mxu0 %vm204_vm0, %v185_v33  ;;  %732 = vmatmul.msk.f32.gmra.mxu1 %vm204_vm0, %v185_v33 }
  0x96   : > { %v318_v34 = vpop.f32.mrf.mxu0  ;;  %v431_v35 = vpop.f32.mrf.mxu1 }
  0x97   : > { %527 = vst [vmem:[%s1061_s5] sm:$0xff] %v318_v34 }
  0x98   : > { %528 = vst [vmem:[%s1061_s5 + $0x8] sm:$0xff] %v431_v35 }
  0x9b   : > { %v366_v36 = vpop.f32.mrf.mxu2  ;;  %v479_v37 = vpop.f32.mrf.mxu3 }
  0x9c   : > { %559 = vst [vmem:[%s1061_s5 + $0x100] sm:$0xff] %v366_v36 }
  0x9d   : > { %560 = vst [vmem:[%s1061_s5 + $0x108] sm:$0xff] %v479_v37 }
  0x9e   : > { %v321_v38 = vpop.f32.mrf.mxu0  ;;  %v434_v39 = vpop.f32.mrf.mxu1 }
  0x9f   : > { %529 = vst [vmem:[%s1061_s5 + $0x10] sm:$0xff] %v321_v38 }
  0xa0   : > { %530 = vst [vmem:[%s1061_s5 + $0x18] sm:$0xff] %v434_v39 }
  0xa3   : > { %v369_v40 = vpop.f32.mrf.mxu2  ;;  %v482_v41 = vpop.f32.mrf.mxu3 }
  0xa4   : > { %561 = vst [vmem:[%s1061_s5 + $0x110] sm:$0xff] %v369_v40 }
  0xa5   : > { %562 = vst [vmem:[%s1061_s5 + $0x118] sm:$0xff] %v482_v41 }
  0xa6   : > { %v324_v42 = vpop.f32.mrf.mxu0  ;;  %v437_v43 = vpop.f32.mrf.mxu1 }
  0xa7   : > { %531 = vst [vmem:[%s1061_s5 + $0x20] sm:$0xff] %v324_v42 }
  0xa8   : > { %532 = vst [vmem:[%s1061_s5 + $0x28] sm:$0xff] %v437_v43 }
  0xab   : > { %v372_v44 = vpop.f32.mrf.mxu2  ;;  %v485_v45 = vpop.f32.mrf.mxu3 }
  0xac   : > { %563 = vst [vmem:[%s1061_s5 + $0x120] sm:$0xff] %v372_v44 }
  0xad   : > { %564 = vst [vmem:[%s1061_s5 + $0x128] sm:$0xff] %v485_v45 }
  0xae   : > { %v327_v46 = vpop.f32.mrf.mxu0  ;;  %v440_v47 = vpop.f32.mrf.mxu1 }
  0xaf   : > { %533 = vst [vmem:[%s1061_s5 + $0x30] sm:$0xff] %v327_v46 }
  0xb0   : > { %534 = vst [vmem:[%s1061_s5 + $0x38] sm:$0xff] %v440_v47 }
  0xb3   : > { %v375_v48 = vpop.f32.mrf.mxu2  ;;  %v488_v49 = vpop.f32.mrf.mxu3 }
  0xb4   : > { %565 = vst [vmem:[%s1061_s5 + $0x130] sm:$0xff] %v375_v48 }
  0xb5   : > { %566 = vst [vmem:[%s1061_s5 + $0x138] sm:$0xff] %v488_v49 }
  0xb6   : > { %v330_v50 = vpop.f32.mrf.mxu0  ;;  %v443_v51 = vpop.f32.mrf.mxu1 }
  0xb7   : > { %535 = vst [vmem:[%s1061_s5 + $0x40] sm:$0xff] %v330_v50 }
  0xb8   : > { %536 = vst [vmem:[%s1061_s5 + $0x48] sm:$0xff] %v443_v51 }
  0xbb   : > { %v378_v52 = vpop.f32.mrf.mxu2  ;;  %v491_v53 = vpop.f32.mrf.mxu3 }
  0xbc   : > { %567 = vst [vmem:[%s1061_s5 + $0x140] sm:$0xff] %v378_v52 }
  0xbd   : > { %568 = vst [vmem:[%s1061_s5 + $0x148] sm:$0xff] %v491_v53 }
  0xbe   : > { %v333_v54 = vpop.f32.mrf.mxu0  ;;  %v446_v55 = vpop.f32.mrf.mxu1 }
  0xbf   : > { %537 = vst [vmem:[%s1061_s5 + $0x50] sm:$0xff] %v333_v54 }
  0xc0   : > { %538 = vst [vmem:[%s1061_s5 + $0x58] sm:$0xff] %v446_v55 }
  0xc3   : > { %v381_v56 = vpop.f32.mrf.mxu2  ;;  %v494_v57 = vpop.f32.mrf.mxu3 }
  0xc4   : > { %569 = vst [vmem:[%s1061_s5 + $0x150] sm:$0xff] %v381_v56 }
  0xc5   : > { %570 = vst [vmem:[%s1061_s5 + $0x158] sm:$0xff] %v494_v57 }
  0xc6   : > { %v336_v58 = vpop.f32.mrf.mxu0  ;;  %v449_v59 = vpop.f32.mrf.mxu1 }
  0xc7   : > { %539 = vst [vmem:[%s1061_s5 + $0x60] sm:$0xff] %v336_v58 }
  0xc8   : > { %540 = vst [vmem:[%s1061_s5 + $0x68] sm:$0xff] %v449_v59 }
  0xcb   : > { %v384_v60 = vpop.f32.mrf.mxu2  ;;  %v497_v61 = vpop.f32.mrf.mxu3 }
  0xcc   : > { %571 = vst [vmem:[%s1061_s5 + $0x160] sm:$0xff] %v384_v60 }
  0xcd   : > { %572 = vst [vmem:[%s1061_s5 + $0x168] sm:$0xff] %v497_v61 }
  0xce   : > { %v339_v62 = vpop.f32.mrf.mxu0  ;;  %v452_v63 = vpop.f32.mrf.mxu1 }
  0xcf   : > { %541 = vst [vmem:[%s1061_s5 + $0x70] sm:$0xff] %v339_v62 }
  0xd0   : > { %542 = vst [vmem:[%s1061_s5 + $0x78] sm:$0xff] %v452_v63 }
  0xd3   : > { %v387_v0 = vpop.f32.mrf.mxu2  ;;  %v500_v1 = vpop.f32.mrf.mxu3 }
  0xd4   : > { %573 = vst [vmem:[%s1061_s5 + $0x170] sm:$0xff] %v387_v0 }
  0xd5   : > { %574 = vst [vmem:[%s1061_s5 + $0x178] sm:$0xff] %v500_v1 }
  0xd6   : > { %v342_v2 = vpop.f32.mrf.mxu0  ;;  %v455_v3 = vpop.f32.mrf.mxu1 }
  0xd7   : > { %543 = vst [vmem:[%s1061_s5 + $0x80] sm:$0xff] %v342_v2 }
  0xd8   : > { %544 = vst [vmem:[%s1061_s5 + $0x88] sm:$0xff] %v455_v3 }
  0xdb   : > { %v390_v4 = vpop.f32.mrf.mxu2  ;;  %v503_v5 = vpop.f32.mrf.mxu3 }
  0xdc   : > { %575 = vst [vmem:[%s1061_s5 + $0x180] sm:$0xff] %v390_v4 }
  0xdd   : > { %576 = vst [vmem:[%s1061_s5 + $0x188] sm:$0xff] %v503_v5 }
  0xde   : > { %v345_v6 = vpop.f32.mrf.mxu0  ;;  %v458_v7 = vpop.f32.mrf.mxu1 }
  0xdf   : > { %545 = vst [vmem:[%s1061_s5 + $0x90] sm:$0xff] %v345_v6 }
  0xe0   : > { %546 = vst [vmem:[%s1061_s5 + $0x98] sm:$0xff] %v458_v7 }
  0xe3   : > { %v393_v8 = vpop.f32.mrf.mxu2  ;;  %v506_v9 = vpop.f32.mrf.mxu3 }
  0xe4   : > { %577 = vst [vmem:[%s1061_s5 + $0x190] sm:$0xff] %v393_v8 }
  0xe5   : > { %578 = vst [vmem:[%s1061_s5 + $0x198] sm:$0xff] %v506_v9 }
  0xe6   : > { %v348_v10 = vpop.f32.mrf.mxu0  ;;  %v461_v11 = vpop.f32.mrf.mxu1 }
  0xe7   : > { %547 = vst [vmem:[%s1061_s5 + $0xa0] sm:$0xff] %v348_v10 }
  0xe8   : > { %548 = vst [vmem:[%s1061_s5 + $0xa8] sm:$0xff] %v461_v11 }
  0xeb   : > { %v396_v12 = vpop.f32.mrf.mxu2  ;;  %v509_v13 = vpop.f32.mrf.mxu3 }
  0xec   : > { %579 = vst [vmem:[%s1061_s5 + $0x1a0] sm:$0xff] %v396_v12 }
  0xed   : > { %580 = vst [vmem:[%s1061_s5 + $0x1a8] sm:$0xff] %v509_v13 }
  0xee   : > { %v351_v14 = vpop.f32.mrf.mxu0  ;;  %v464_v15 = vpop.f32.mrf.mxu1 }
  0xef   : > { %549 = vst [vmem:[%s1061_s5 + $0xb0] sm:$0xff] %v351_v14 }
  0xf0   : > { %550 = vst [vmem:[%s1061_s5 + $0xb8] sm:$0xff] %v464_v15 }
  0xf3   : > { %v399_v16 = vpop.f32.mrf.mxu2  ;;  %v512_v17 = vpop.f32.mrf.mxu3 }
  0xf4   : > { %581 = vst [vmem:[%s1061_s5 + $0x1b0] sm:$0xff] %v399_v16 }
  0xf5   : > { %582 = vst [vmem:[%s1061_s5 + $0x1b8] sm:$0xff] %v512_v17 }
  0xf6   : > { %v354_v18 = vpop.f32.mrf.mxu0  ;;  %v467_v19 = vpop.f32.mrf.mxu1 }
  0xf7   : > { %551 = vst [vmem:[%s1061_s5 + $0xc0] sm:$0xff] %v354_v18 }
  0xf8   : > { %552 = vst [vmem:[%s1061_s5 + $0xc8] sm:$0xff] %v467_v19 }
  0xfb   : > { %v402_v20 = vpop.f32.mrf.mxu2  ;;  %v515_v21 = vpop.f32.mrf.mxu3 }
  0xfc   : > { %583 = vst [vmem:[%s1061_s5 + $0x1c0] sm:$0xff] %v402_v20 }
  0xfd   : > { %584 = vst [vmem:[%s1061_s5 + $0x1c8] sm:$0xff] %v515_v21 }
  0xfe   : > { %v357_v22 = vpop.f32.mrf.mxu0  ;;  %v470_v23 = vpop.f32.mrf.mxu1 }
  0xff   : > { %553 = vst [vmem:[%s1061_s5 + $0xd0] sm:$0xff] %v357_v22 }
 0x100   : > { %554 = vst [vmem:[%s1061_s5 + $0xd8] sm:$0xff] %v470_v23 }
 0x103   : > { %v405_v24 = vpop.f32.mrf.mxu2  ;;  %v518_v25 = vpop.f32.mrf.mxu3 }
 0x104   : > { %585 = vst [vmem:[%s1061_s5 + $0x1d0] sm:$0xff] %v405_v24 }
 0x105   : > { %586 = vst [vmem:[%s1061_s5 + $0x1d8] sm:$0xff] %v518_v25 }
 0x106   : > { %v360_v26 = vpop.f32.mrf.mxu0  ;;  %v473_v27 = vpop.f32.mrf.mxu1 }
 0x107   : > { %555 = vst [vmem:[%s1061_s5 + $0xe0] sm:$0xff] %v360_v26 }
 0x108   : > { %556 = vst [vmem:[%s1061_s5 + $0xe8] sm:$0xff] %v473_v27 }
 0x10b   : > { %v408_v28 = vpop.f32.mrf.mxu2  ;;  %v521_v29 = vpop.f32.mrf.mxu3 }
 0x10c   : > { %587 = vst [vmem:[%s1061_s5 + $0x1e0] sm:$0xff] %v408_v28 }
 0x10d   : > { %588 = vst [vmem:[%s1061_s5 + $0x1e8] sm:$0xff] %v521_v29 }
 0x10e   : > { %v363_v30 = vpop.f32.mrf.mxu0  ;;  %v476_v31 = vpop.f32.mrf.mxu1 }
 0x10f   : > { %557 = vst [vmem:[%s1061_s5 + $0xf0] sm:$0xff] %v363_v30 }
 0x110   : > { %558 = vst [vmem:[%s1061_s5 + $0xf8] sm:$0xff] %v476_v31 }
 0x111   : > { %598 = sbr.rel (!%p936_p5) target bundleno = 309 (0x135), region = 32 }
 0x113   : > { %v411_v32 = vpop.f32.mrf.mxu2  ;;  %v524_v33 = vpop.f32.mrf.mxu3 }
 0x114   : > { %589 = vst [vmem:[%s1061_s5 + $0x1f0] sm:$0xff] %v411_v32 }
 0x115   : > { %590 = vst [vmem:[%s1061_s5 + $0x1f8] sm:$0xff] %v524_v33 }
 0x116   : > { %s1201_s7 = smov (!%p601_p11, %s600_s7), 32 }
 0x117   : > { %s760_s8 = sshll.u32 %s1201_s7, 4 }
 0x118   : > { %s605_s14 = ssub.s32 512, %s760_s8 }
 0x119   : > { %s606_s16 = sshll.u32 %s605_s14, 4 }
 0x11a   : > { %607 = vsyncadd %s1129_s6, %s606_s16  ;;  %p1138_p12 = scmp.ne.s32.totalorder %s760_s8, 0  ;;  %s762_s19 = sshll.u32 %s919_s13, 9 }
 0x11b   : > { %s611_s23 = scalar_lea.hbm %s1192_s2, %s762_s19  ;;  %s613_s24 = sshll.u32 %s1061_s5, 4  ;;  %s1147_s24 = int_to_ptr.vmem [resolvable:$true] %s613_s24 }
 0x11c   : > { %s615_s25 = sshll.u32 %s611_s23, 4  ;;  %s757_s26 = sshll.u32 %s1201_s7, 8  ;;  %s1149_s25 = int_to_ptr.hbm [resolvable:$true] %s615_s25 }
 0x11d   : > { %s805_s27 = sshra.s32 %s1147_s24, 4  ;;  %s807_s28 = sshrl.u32 %s757_s26, 4  ;;  %s806_s27 = int_to_ptr.vmem [resolvable:$true] %s805_s27 }
 0x11e   : > { %s812_s29 = scalar_lea.vmem %s806_s27, %s807_s28  ;;  %s880_s13 = smov [#allocation2]  }
 0x11f   : > { %p813_p13 = scmp.ne.s32.totalorder %s806_s27, %s812_s29  ;;  %s816_s30 = scalar_lea.vmem %s880_s13, 1024 }
 0x120   : > { %p818_p2 = scmp.lt.s32.totalorder %s816_s30, %s812_s29 }
 0x121   : > { %p814_p0 = pnand %p813_p13, %p1138_p12 }
 0x123   : > { %p815_p1 = pneg %p814_p0 }
 0x125   : > { %p820_p3 = pnand %p818_p2, %p815_p1 }
 0x127   : > { %823 = shalt.err (!%p820_p3)
}
 0x128   : > { %s824_s3 = sshra.s32 %s1149_s25, 4  ;;  %s835_s14 = scalar_lea.hbm %s1192_s2, 1200  ;;  %s825_s3 = int_to_ptr.hbm [resolvable:$true] %s824_s3 }
 0x129   : > { %s831_s4 = scalar_lea.hbm %s825_s3, %s807_s28  ;;  %p836_p8 = scmp.lt.s32.totalorder %s825_s3, %s1192_s2 }
 0x12a   : > { %p832_p4 = scmp.ne.s32.totalorder %s825_s3, %s831_s4  ;;  %p837_p9 = scmp.lt.s32.totalorder %s835_s14, %s831_s4 }
 0x12c   : > { %p833_p5 = pnand %p832_p4, %p1138_p12  ;;  %p838_p10 = por %p837_p9, %p836_p8 }
 0x12e   : > { %p834_p7 = pneg %p833_p5 }
 0x130   : > { %p839_p11 = pnand %p838_p10, %p834_p7 }
 0x132   : > { %842 = shalt.err (!%p839_p11)
}
 0x133   : > { %s881_s21 = smov 256   ;;  %s882_s22 = smov 16  }
 0x134   : > { %621 = dma.vmem_to_hbm [thread:$0]  (%p1138_p12), %s1147_s24, %s757_s26, %s1149_s25, %s1129_s6, %s881_s21, %s881_s21, %s882_s22  }
 0x135 PF: > { %p770_p13 = scmp.ge.s32.totalorder %s878_s12, 2  ;;  %s630_s23 = sand.u32 1, %s866_s9  }
 0x136   : > { %s631_s27 = scalar_lea.sflag [#allocation3], %s630_s23 }
 0x137   : > { %p767_p0 = pnand %p770_p13, %p940_p6 }
 0x139   : > { %p768_p1 = pneg %p767_p0 }
 0x13b   : > { %861 = dma.done.wait (%p768_p1), %s631_s27, 8192  }
 0x13c   : > { %863 = vsyncadd (%p768_p1), %s631_s27, 4294959104  ;;  %p12_p2 = scmp.ge.s32.totalorder %s923_s15, 5   ;;  %s1196_s9 = smov %s870_s10 }
 0x13d   : > { %s1197_s10 = smov %s874_s11  ;;  %s1198_s11 = smov %s934_s18 }
 0x13e   : > { %s1199_s12 = smov %s923_s15  ;;  %14 = sbr.rel (!%p12_p2) target bundleno = 3 (0x3), region = 63 }
 0x143   :  { %637 = vsyncpa [#allocation3], 1 }
 0x144   :  { %639 = vsyncpa [#allocation3 + $0x1], 1 }

// kernel: diffpool_forward.2
= control target key start
LH: loop header
LB: loop body
LE: loop exit
PB: predicated region body
PF: predicated region fallthrough
CT: control target
= control target key end

     0   :  { %11 = vsyncpa [#allocation3], 0  ;;  %s4617_s0 = inlined_call_operand.hbm [shape: f32[600,256], index: 0, kind: input, shape index: {}]   ;;  %s4618_s1 = inlined_call_operand.vmem [shape: f32[256,8], index: 1, kind: input, shape index: {}]   ;;  %s4619_s2 = inlined_call_operand.vmem [shape: f32[1,8], index: 2, kind: input, shape index: {}]   ;;  %s4620_s3 = inlined_call_operand.vmem [shape: f32[600,8], index: 3, kind: output, shape index: {0}]   ;;  %s4621_s4 = inlined_call_operand.vmem [shape: f32[2,8,256], index: 4, kind: output, shape index: {1}]   ;;  %s4622_s5 = inlined_call_operand.vmem [shape: f32[2,1,8], index: 5, kind: output, shape index: {2}]  }
   0x1   :  { %13 = vsyncpa [#allocation3 + $0x1], 0  ;;  %s2715_s18 = smov 0   ;;  %s2717_s19 = smov 0  }
   0x2   :  { %s2719_s20 = smov 0   ;;  %s2721_s21 = smov 0  }
   0x3   :  { %s2723_s22 = smov 0   ;;  %s2725_s23 = smov 0  }
   0x4   :  { %s2727_s24 = smov 0   ;;  %s2729_s25 = smov 0  }
   0x5 LB: > { %s28_s26 = sadd.s32 1, %s2637_s23  ;;  %s31_s27 = sadd.s32 1, %s2641_s24  ;;  %s2645_s25 = sphi %s2729_s25, %s19_s25   ;;  %s2641_s24 = sphi %s2727_s24, %s5054_s24   ;;  %s2637_s23 = sphi %s2725_s23, %s5053_s23   ;;  %s2633_s22 = sphi %s2723_s22, %s5052_s22   ;;  %s2629_s21 = sphi %s2721_s21, %s5051_s21   ;;  %s2625_s20 = sphi %s2719_s20, %s5050_s20   ;;  %s2621_s19 = sphi %s2717_s19, %s5049_s19   ;;  %s2617_s18 = sphi %s2715_s18, %s5048_s18  }
   0x6   : > { %p29_p0 = scmp.ge.s32.totalorder %s28_s26, 2  ;;  %s1953_s28 = sadd.s32 4294967295, %s2645_s25  }
   0x7   : > { %s1955_s29 = sshll.u32 %s2641_s24, 1  ;;  %p53_p1 = scmp.ne.s32.totalorder %s2625_s20, %s2621_s19 }
   0x8   : > { %s5056_s26 = smov (%p29_p0, %s28_s26), 0  ;;  %s5058_s27 = smov (!%p29_p0, %s31_s27), %s2641_s24 }
   0x9   : > { %4756 = sst [smem:[#allocation6_spill]] %s5056_s26  ;;  %s36_s30 = sadd.s32 %s2637_s23, %s1955_s29 }
   0xa   : > { %p33_p2 = scmp.ge.s32.totalorder %s5058_s27, 2  ;;  %p37_p3 = scmp.lt.s32.totalorder %s36_s30, 2 }
   0xb   : > { %p54_p4 = scmp.eq.s32.totalorder %s2645_s25, 0  ;;  %p59_p5 = scmp.ne.s32.totalorder %s2621_s19, %s2617_s18 }
   0xc   : > { %s5060_s27 = smov (%p33_p2, %s5058_s27), 0  ;;  %s5062_s30 = smov (!%p37_p3, %s36_s30), 2 }
   0xd   : > { %4757 = sst [smem:[#allocation7_spill]] %s5060_s27  ;;  %s1956_s6 = sshll.u32 %s5060_s27, 1 }
   0xe   : > { %p2773_p6 = por %p54_p4, %p53_p1  ;;  %s40_s8 = sadd.s32 %s1956_s6, %s5056_s26 }
   0xf   : > { %p60_p7 = scmp.eq.s32.totalorder %s1953_s28, 0  ;;  %p41_p8 = scmp.lt.s32.totalorder %s40_s8, 2 }
  0x10   : > { %p133_p9 = scmp.eq.s32.totalorder %s1953_s28, 3  ;;  %s46_s12 = sadd.s32 1, %s2625_s20 }
  0x11   : > { %p2778_p10 = por %p60_p7, %p59_p5  ;;  %s5064_s8 = smov (!%p41_p8, %s40_s8), 2 }
  0x12   : > { %p2785_p11 = por %p133_p9, %p53_p1  ;;  %s43_s11 = ssub.s32 %s5062_s30, %s5064_s8 }
  0x13   : > { %p44_p12 = scmp.eq.s32.totalorder %s43_s11, 0  ;;  %p1960_p13 = scmp.ge.s32.totalorder %s2645_s25, 4 }
  0x15   : > { %s2792_s13 = scalar_select %p44_p12, %s2625_s20, %s46_s12  }
  0x16   : > { %213 = sbr.rel (%p1960_p13) target bundleno = 63 (0x3f), region = 24 }
  0x1b   : > { %216 = sbr.rel (!%p2773_p6) target bundleno = 63 (0x3f), region = 28  ;;  %s217_s14 = sand.u32 (%p2773_p6), 1, %s2625_s20  }
  0x1c   : > { %s1963_s15 = sshll.u32 (%p2773_p6), %s5062_s30, 5  ;;  %s1961_s16 = sshll.u32 (%p2773_p6), %s217_s14, 9 }
  0x1d   : > { %s227_s17 = ssub.s32 (%p2773_p6), 75, %s1963_s15  ;;  %s2802_s6 = scalar_lea.sflag (%p2773_p6), [#allocation3], %s217_s14 }
  0x1e   : > { %p228_p0 = scmp.lt.s32.totalorder (%p2773_p6), %s227_s17, 32  ;;  %s221_s8 = scalar_lea.vmem (%p2773_p6), [#allocation2], %s1961_s16 }
  0x20   : > { %s5066_s17 = smov (!%p228_p0, %s227_s17), 32 }
  0x21   : > { %s2126_s18 = sshll.u32 %s5066_s17, 4 }
  0x22   : > { %s232_s28 = ssub.s32 512, %s2126_s18 }
  0x23   : > { %s233_s29 = sshll.u32 %s232_s28, 4 }
  0x24   : > { %234 = vsyncadd %s2802_s6, %s233_s29  ;;  %p2805_p1 = scmp.ne.s32.totalorder %s2126_s18, 0  ;;  %s2128_s11 = sshll.u32 %s5062_s30, 9 }
  0x25   : > { %s238_s27 = scalar_lea.hbm %s4617_s0, %s2128_s11  ;;  %s2813_s26 = sshll.u32 %s221_s8, 4  ;;  %s243_s26 = int_to_ptr.vmem [resolvable:$true] %s2813_s26 }
  0x26   : > { %s240_s14 = sshll.u32 %s238_s27, 4  ;;  %s1970_s16 = sshll.u32 %s5066_s17, 8  ;;  %s2816_s14 = int_to_ptr.hbm [resolvable:$true] %s240_s14 }
  0x27   : > { %s2508_s28 = sshra.s32 %s2816_s14, 4  ;;  %s2510_s18 = sshrl.u32 %s1970_s16, 4  ;;  %s2509_s28 = int_to_ptr.hbm [resolvable:$true] %s2508_s28 }
  0x28   : > { %s2515_s29 = scalar_lea.hbm %s2509_s28, %s2510_s18  ;;  %s2519_s8 = scalar_lea.hbm %s4617_s0, 1200 }
  0x29   : > { %p2516_p2 = scmp.ne.s32.totalorder %s2509_s28, %s2515_s29  ;;  %p2521_p5 = scmp.lt.s32.totalorder %s2519_s8, %s2515_s29 }
  0x2b   : > { %p2517_p3 = pnand %p2516_p2, %p2805_p1 }
  0x2d   : > { %p2518_p4 = pneg %p2517_p3 }
  0x2f   : > { %p2523_p6 = pnand %p2521_p5, %p2518_p4 }
  0x31   : > { %2526 = shalt.err (!%p2523_p6)
}
  0x32   : > { %s2527_s27 = sshra.s32 %s243_s26, 4  ;;  %s2679_s15 = smov [#allocation2]   ;;  %s2528_s27 = int_to_ptr.vmem [resolvable:$true] %s2527_s27 }
  0x33   : > { %s2534_s12 = scalar_lea.vmem %s2528_s27, %s2510_s18  ;;  %s2538_s28 = scalar_lea.vmem %s2679_s15, 1024 }
  0x34   : > { %p2535_p7 = scmp.ne.s32.totalorder %s2528_s27, %s2534_s12  ;;  %p2540_p12 = scmp.lt.s32.totalorder %s2538_s28, %s2534_s12 }
  0x36   : > { %p2536_p8 = pnand %p2535_p7, %p2805_p1 }
  0x38   : > { %p2537_p9 = pneg %p2536_p8 }
  0x3a   : > { %p2542_p13 = pnand %p2540_p12, %p2537_p9 }
  0x3c   : > { %2545 = shalt.err (!%p2542_p13)
}
  0x3d   : > { %s2680_s30 = smov 256   ;;  %s2681_s29 = smov 16  }
  0x3e   : > { %248 = dma.hbm_to_vmem [thread:$0]  (%p2805_p1), %s2816_s14, %s1970_s16, %s243_s26, %s2802_s6, %s2680_s30, %s2680_s30, %s2681_s29  }
  0x3f PF: > { %p1971_p0 = scmp.ge.s32.totalorder %s2645_s25, 1  ;;  %p250_p2 = scmp.lt.s32.totalorder %s2645_s25, 5 }
  0x41   : > { %p251_p3 = pnand %p1971_p0, %p250_p2 }
  0x43   : > { %254 = sbr.rel (%p251_p3) target bundleno = 1028 (0x404), region = 32 }
  0x48   : > { %s256_s18 = sand.u32 1, %s2621_s19  }
  0x49   : > { %s1972_s11 = sshll.u32 %s256_s18, 9  ;;  %s257_s8 = scalar_lea.sflag [#allocation3], %s256_s18 }
  0x4a   : > { %s2842_s27 = scalar_lea.vmem [#allocation2], %s1972_s11 }
  0x4b   : > { %2612 = dma.done.wait (%p2778_p10), %s257_s8, 8192  }
  0x4c   : > { %2614 = vsyncadd (%p2778_p10), %s257_s8, 4294959104  ;;  %s1973_s26 = sshll.u32 %s256_s18, 8  ;;  %p314_p1 = scmp.lt.s32.totalorder %s2633_s22, 1 }
  0x4d   : > { %s2860_s30 = scalar_lea.vmem [#allocation4], %s1973_s26   ;;  %p1976_p10 = scmp.ne.s32.totalorder %s2629_s21, 0 }
  0x4e   : > { %s315_s17 = scalar_select %p314_p1, %s2633_s22, 1 }
  0x4f   : > { %325 = sbr.rel (%p1976_p10) target bundleno = 88 (0x58), region = 40 }
  0x50   : > { %s2129_s6 = sshll.u32 %s315_s17, 4  ;;  %s2853_s16 = scalar_lea.vmem %s4622_s5, %s315_s17 }
  0x51   : > { %s2858_s28 = scalar_lea.vmem %s4621_s4, %s2129_s6 }
  0x54   : > { %vm328_vm0 = vcmask 57344   ;;  %v2682_v0 = vmov 0.0  }
  0x55   : > { %326 = vst [vmem:[%s2858_s28] sm:$0xff] %v2682_v0 }
  0x56   : > { %327 = vst [vmem:[%s2858_s28 + $0x8] sm:$0xff] %v2682_v0 }
  0x57   : > { %329 = vst.msk [vmem:[%s2853_s16] sm:$0x1] %vm328_vm0, %v2682_v0 }
  0x58 PF: > { %v638_v1 = vld [vmem:[%s4618_s1 + $0x78] sm:$0xff]  ;;  %v637_v2 = vld [vmem:[%s4618_s1 + $0x70] sm:$0xff]  ;;  %v636_v5 = vld [vmem:[%s4618_s1 + $0x68] sm:$0xff]  ;;  %s1977_s7 = sshll.u32 %s2633_s22, 1  ;;  %v333_v17 = vlaneseq }
  0x59   : > { %v654_v3 = vld [vmem:[%s4618_s1 + $0xf8] sm:$0xff]  ;;  %659 = vmatpush.msra.mxu0 %v638_v1  ;;  %2133 = vmatpush.msra.mxu2 %v638_v1  ;;  %v653_v4 = vld [vmem:[%s4618_s1 + $0xf0] sm:$0xff]  ;;  %v652_v6 = vld [vmem:[%s4618_s1 + $0xe8] sm:$0xff]  ;;  %s2925_s22 = sadd.s32 %s2629_s21, %s1977_s7 }
  0x5a   : > { %772 = vmatpush.msra.mxu1 %v654_v3  ;;  %2149 = vmatpush.msra.mxu3 %v654_v3  ;;  %v635_v7 = vld [vmem:[%s4618_s1 + $0x60] sm:$0xff]  ;;  %v634_v9 = vld [vmem:[%s4618_s1 + $0x58] sm:$0xff]  ;;  %v633_v11 = vld [vmem:[%s4618_s1 + $0x50] sm:$0xff]  ;;  %v2930_v22 = vshrl.u32 %v333_v17, 7  ;;  %s1978_s7 = sshll.u32 %s2925_s22, 8  ;;  %p2043_p4 = scmp.ge.s32.totalorder %s2925_s22, 3 }
  0x5b   : > { %660 = vmatpush.msra.mxu0 %v637_v2  ;;  %2134 = vmatpush.msra.mxu2 %v637_v2  ;;  %v651_v8 = vld [vmem:[%s4618_s1 + $0xe0] sm:$0xff]  ;;  %v650_v10 = vld [vmem:[%s4618_s1 + $0xd8] sm:$0xff]  ;;  %v649_v12 = vld [vmem:[%s4618_s1 + $0xd0] sm:$0xff]  ;;  %v2949_v29 = vstv %s1978_s7 }
  0x5c   : > { %773 = vmatpush.msra.mxu1 %v653_v4  ;;  %2150 = vmatpush.msra.mxu3 %v653_v4  ;;  %v632_v13 = vld [vmem:[%s4618_s1 + $0x48] sm:$0xff]  ;;  %v631_v15 = vld [vmem:[%s4618_s1 + $0x40] sm:$0xff]  ;;  %v630_v18 = vld [vmem:[%s4618_s1 + $0x38] sm:$0xff]  ;;  %v353_v27 = vadd.s32 152, %v2930_v22  ;;  %v2962_v33 = vadd.s32 %v2949_v29, %v2930_v22  ;;  %v335_v40 = vadd.s32 8, %v2930_v22  ;;  %v354_v41 = vadd.s32 160, %v2930_v22 }
  0x5d   : > { %661 = vmatpush.msra.mxu0 %v636_v5  ;;  %2135 = vmatpush.msra.mxu2 %v636_v5  ;;  %v648_v14 = vld [vmem:[%s4618_s1 + $0xc8] sm:$0xff]  ;;  %v647_v16 = vld [vmem:[%s4618_s1 + $0xc0] sm:$0xff]  ;;  %v646_v19 = vld [vmem:[%s4618_s1 + $0xb8] sm:$0xff]  ;;  %v336_v49 = vadd.s32 16, %v2930_v22  ;;  %v355_v50 = vadd.s32 168, %v2930_v22  ;;  %v337_v57 = vadd.s32 24, %v2930_v22 }
  0x5e   : > { %774 = vmatpush.msra.mxu1 %v652_v6  ;;  %2151 = vmatpush.msra.mxu3 %v652_v6  ;;  %v629_v20 = vld [vmem:[%s4618_s1 + $0x30] sm:$0xff]  ;;  %v628_v23 = vld [vmem:[%s4618_s1 + $0x28] sm:$0xff]  ;;  %v627_v25 = vld [vmem:[%s4618_s1 + $0x20] sm:$0xff]  ;;  %4762 = vst [vmem:[#allocation8_spill] sm:$0xff] %v2962_v33  ;;  %v2965_v34 = vadd.s32 %v2949_v29, %v353_v27  ;;  %vm4625_vm1 = vcmp.lt.s32.totalorder %v2962_v33, 600  ;;  %v3002_v45 = vadd.s32 %v2949_v29, %v335_v40  ;;  %v356_v58 = vadd.s32 176, %v2930_v22 }
  0x5f   : > { %662 = vmatpush.msra.mxu0 %v635_v7  ;;  %2136 = vmatpush.msra.mxu2 %v635_v7  ;;  %v645_v21 = vld [vmem:[%s4618_s1 + $0xb0] sm:$0xff]  ;;  %v644_v24 = vld [vmem:[%s4618_s1 + $0xa8] sm:$0xff]  ;;  %v643_v26 = vld [vmem:[%s4618_s1 + $0xa0] sm:$0xff]  ;;  %v3005_v46 = vadd.s32 %v2949_v29, %v354_v41  ;;  %v3036_v53 = vadd.s32 %v2949_v29, %v336_v49  ;;  %v3039_v54 = vadd.s32 %v2949_v29, %v355_v50  ;;  %v338_v1 = vadd.s32 32, %v2930_v22 }
  0x60   : > { %775 = vmatpush.msra.mxu1 %v651_v8  ;;  %2152 = vmatpush.msra.mxu3 %v651_v8  ;;  %v626_v28 = vld [vmem:[%s4618_s1 + $0x18] sm:$0xff]  ;;  %v625_v31 = vld [vmem:[%s4618_s1 + $0x10] sm:$0xff]  ;;  %4763 = vst [vmem:[#allocation9_spill] sm:$0xff] %v2965_v34  ;;  %v624_v35 = vld [vmem:[%s4618_s1 + $0x8] sm:$0xff]  ;;  %vm4628_vm2 = vcmp.lt.s32.totalorder %v2965_v34, 600  ;;  %vm4626_vm3 = vcmp.lt.s32.totalorder %v3002_v45, 600  ;;  %v3070_v61 = vadd.s32 %v2949_v29, %v337_v57  ;;  %v3073_v62 = vadd.s32 %v2949_v29, %v356_v58 }
  0x61   : > { %663 = vmatpush.msra.mxu0 %v634_v9  ;;  %2137 = vmatpush.msra.mxu2 %v634_v9  ;;  %v642_v30 = vld [vmem:[%s4618_s1 + $0x98] sm:$0xff]  ;;  %v641_v32 = vld [vmem:[%s4618_s1 + $0x90] sm:$0xff]  ;;  %v640_v36 = vld [vmem:[%s4618_s1 + $0x88] sm:$0xff]  ;;  %4768 = vst [vmem:[#allocation14_spill] sm:$0xff] %v3002_v45  ;;  %vm4633_vm4 = vcmp.lt.s32.totalorder %v3005_v46, 600  ;;  %vm4627_vm5 = vcmp.lt.s32.totalorder %v3036_v53, 600  ;;  %v3104_v5 = vadd.s32 %v2949_v29, %v338_v1 }
  0x62   : > { %776 = vmatpush.msra.mxu1 %v650_v10  ;;  %2153 = vmatpush.msra.mxu3 %v650_v10  ;;  %v623_v37 = vld [vmem:[%s4618_s1] sm:$0xff]  ;;  %v2982_v39 = vld [vmem:[%s2842_s27 + $0x130] sm:$0xff]  ;;  %v2990_v43 = vld [vmem:[%s2842_s27 + $0x8] sm:$0xff]  ;;  %4769 = vst [vmem:[#allocation15_spill] sm:$0xff] %v3005_v46  ;;  %vm4641_vm6 = vcmp.lt.s32.totalorder %v3039_v54, 600  ;;  %vm4631_vm7 = vcmp.lt.s32.totalorder %v3070_v61, 600 }
  0x63   : > { %664 = vmatpush.msra.mxu0 %v633_v11  ;;  %2138 = vmatpush.msra.mxu2 %v633_v11  ;;  %v2978_v38 = vld [vmem:[%s2842_s27] sm:$0xff]  ;;  %4765 = vst [vmem:[#allocation11_spill] sm:$0xff] %v2982_v39  ;;  %v2993_v44 = vld [vmem:[%s2842_s27 + $0x138] sm:$0xff]  ;;  %v3015_v47 = vld [vmem:[%s2842_s27 + $0x10] sm:$0xff]  ;;  %vm4649_vm8 = vcmp.lt.s32.totalorder %v3073_v62, 600  ;;  %v357_v2 = vadd.s32 184, %v2930_v22 }
  0x64   : > { %777 = vmatpush.msra.mxu1 %v649_v12  ;;  %2154 = vmatpush.msra.mxu3 %v649_v12  ;;  %4764 = vst [vmem:[#allocation10_spill] sm:$0xff] %v2978_v38  ;;  %v639_v42 = vld [vmem:[%s4618_s1 + $0x80] sm:$0xff]  ;;  %v3024_v51 = vld [vmem:[%s2842_s27 + $0x18] sm:$0xff]  ;;  %v3027_v52 = vld [vmem:[%s2842_s27 + $0x148] sm:$0xff]  ;;  %vm4639_vm9 = vcmp.lt.s32.totalorder %v3104_v5, 600  ;;  %v339_v9 = vadd.s32 40, %v2930_v22 }
  0x65   : > { %665 = vmatpush.msra.mxu0 %v632_v13  ;;  %2139 = vmatpush.msra.mxu2 %v632_v13  ;;  %4766 = vst [vmem:[#allocation12_spill] sm:$0xff] %v2990_v43  ;;  %v3019_v48 = vld [vmem:[%s2842_s27 + $0x140] sm:$0xff]  ;;  %v3053_v56 = vld [vmem:[%s2842_s27 + $0x150] sm:$0xff]  ;;  %v3058_v59 = vld [vmem:[%s2842_s27 + $0x28] sm:$0xff]  ;;  %v3107_v6 = vadd.s32 %v2949_v29, %v357_v2  ;;  %v358_v10 = vadd.s32 192, %v2930_v22  ;;  %v340_v17 = vadd.s32 48, %v2930_v22 }
  0x66   : > { %778 = vmatpush.msra.mxu1 %v648_v14  ;;  %2155 = vmatpush.msra.mxu3 %v648_v14  ;;  %4767 = vst [vmem:[#allocation13_spill] sm:$0xff] %v2993_v44  ;;  %v3049_v55 = vld [vmem:[%s2842_s27 + $0x20] sm:$0xff]  ;;  %v3061_v60 = vld [vmem:[%s2842_s27 + $0x158] sm:$0xff]  ;;  %v3083_v63 = vld [vmem:[%s2842_s27 + $0x30] sm:$0xff]  ;;  %v3138_v13 = vadd.s32 %v2949_v29, %v339_v9  ;;  %v360_v27 = vadd.s32 208, %v2930_v22  ;;  %v361_v40 = vadd.s32 216, %v2930_v22 }
  0x67   : > { %666 = vmatpush.msra.mxu0 %v631_v15  ;;  %2140 = vmatpush.msra.mxu2 %v631_v15  ;;  %4770 = vst [vmem:[#allocation16_spill] sm:$0xff] %v3015_v47  ;;  %v3087_v0 = vld [vmem:[%s2842_s27 + $0x160] sm:$0xff]  ;;  %v3092_v3 = vld [vmem:[%s2842_s27 + $0x38] sm:$0xff]  ;;  %v3095_v4 = vld [vmem:[%s2842_s27 + $0x168] sm:$0xff]  ;;  %vm4657_vm10 = vcmp.lt.s32.totalorder %v3107_v6, 600  ;;  %v3141_v14 = vadd.s32 %v2949_v29, %v358_v10  ;;  %v343_v1 = vadd.s32 72, %v2930_v22 }
  0x68   : > { %779 = vmatpush.msra.mxu1 %v647_v16  ;;  %2156 = vmatpush.msra.mxu3 %v647_v16  ;;  %4771 = vst [vmem:[#allocation17_spill] sm:$0xff] %v3019_v48  ;;  %v3117_v7 = vld [vmem:[%s2842_s27 + $0x40] sm:$0xff]  ;;  %v3121_v8 = vld [vmem:[%s2842_s27 + $0x170] sm:$0xff]  ;;  %v3126_v11 = vld [vmem:[%s2842_s27 + $0x48] sm:$0xff]  ;;  %vm4647_vm11 = vcmp.lt.s32.totalorder %v3138_v13, 600  ;;  %v3243_v50 = vadd.s32 %v2949_v29, %v361_v40  ;;  %v362_v2 = vadd.s32 224, %v2930_v22 }
  0x69   : > { %667 = vmatpush.msra.mxu0 %v630_v18  ;;  %2141 = vmatpush.msra.mxu2 %v630_v18  ;;  %4772 = vst [vmem:[#allocation18_spill] sm:$0xff] %v3024_v51  ;;  %v3129_v12 = vld [vmem:[%s2842_s27 + $0x178] sm:$0xff]  ;;  %v3151_v15 = vld [vmem:[%s2842_s27 + $0x50] sm:$0xff]  ;;  %vm4667_vm12 = vcmp.lt.s32.totalorder %v3141_v14, 600  ;;  %v3155_v16 = vld [vmem:[%s2842_s27 + $0x180] sm:$0xff]  ;;  %v359_v18 = vadd.s32 200, %v2930_v22 }
  0x6a   : > { %780 = vmatpush.msra.mxu1 %v646_v19  ;;  %2157 = vmatpush.msra.mxu3 %v646_v19  ;;  %4773 = vst [vmem:[#allocation19_spill] sm:$0xff] %v3027_v52  ;;  %v3160_v19 = vld [vmem:[%s2842_s27 + $0x58] sm:$0xff]  ;;  %v3253_v57 = vld [vmem:[%s2842_s27 + $0x80] sm:$0xff]  ;;  %v3257_v58 = vld [vmem:[%s2842_s27 + $0x1b0] sm:$0xff]  ;;  %v363_v40 = vadd.s32 232, %v2930_v22 }
  0x6b   : > { %668 = vmatpush.msra.mxu0 %v629_v20  ;;  %2142 = vmatpush.msra.mxu2 %v629_v20  ;;  %4774 = vst [vmem:[#allocation20_spill] sm:$0xff] %v3036_v53  ;;  %v3163_v20 = vld [vmem:[%s2842_s27 + $0x188] sm:$0xff]  ;;  %v3228_v41 = vld [vmem:[%s2842_s27 + $0x78] sm:$0xff]  ;;  %v3475_v33 = vld [vmem:[%s2842_s27 + $0x100] sm:$0xff] }
  0x6c   : > { %781 = vmatpush.msra.mxu1 %v645_v21  ;;  %2158 = vmatpush.msra.mxu3 %v645_v21  ;;  %4775 = vst [vmem:[#allocation21_spill] sm:$0xff] %v3039_v54  ;;  %v3172_v21 = vadd.s32 %v2949_v29, %v340_v17  ;;  %v3262_v9 = vld [vmem:[%s2842_s27 + $0x88] sm:$0xff]  ;;  %v3265_v10 = vld [vmem:[%s2842_s27 + $0x1b8] sm:$0xff]  ;;  %v3274_v17 = vadd.s32 %v2949_v29, %v343_v1  ;;  %v3498_v34 = vld [vmem:[%s2842_s27 + $0x110] sm:$0xff] }
  0x6d   : > { %669 = vmatpush.msra.mxu0 %v628_v23  ;;  %2143 = vmatpush.msra.mxu2 %v628_v23  ;;  %4776 = vst [vmem:[#allocation22_spill] sm:$0xff] %v3049_v55  ;;  %v3175_v23 = vadd.s32 %v2949_v29, %v359_v18  ;;  %v3277_v18 = vadd.s32 %v2949_v29, %v362_v2  ;;  %v3296_v1 = vld [vmem:[%s2842_s27 + $0x98] sm:$0xff]  ;;  %v3299_v2 = vld [vmem:[%s2842_s27 + $0x1c8] sm:$0xff] }
  0x6e   : > { %782 = vmatpush.msra.mxu1 %v644_v24  ;;  %2159 = vmatpush.msra.mxu3 %v644_v24  ;;  %4777 = vst [vmem:[#allocation23_spill] sm:$0xff] %v3053_v56  ;;  %vm4653_vm13 = vcmp.lt.s32.totalorder %v3172_v21, 600  ;;  %v3185_v24 = vld [vmem:[%s2842_s27 + $0x60] sm:$0xff] }
  0x6f   : > { %670 = vmatpush.msra.mxu0 %v627_v25  ;;  %2144 = vmatpush.msra.mxu2 %v627_v25  ;;  %4778 = vst [vmem:[#allocation24_spill] sm:$0xff] %v3058_v59  ;;  %vm4680_vm14 = vcmp.lt.s32.totalorder %v3175_v23, 600  ;;  %v3189_v25 = vld [vmem:[%s2842_s27 + $0x190] sm:$0xff] }
  0x70   : > { %783 = vmatpush.msra.mxu1 %v643_v26  ;;  %2160 = vmatpush.msra.mxu3 %v643_v26  ;;  %4779 = vst [vmem:[#allocation25_spill] sm:$0xff] %v3061_v60  ;;  %v341_v26 = vadd.s32 56, %v2930_v22 }
  0x71   : > { %671 = vmatpush.msra.mxu0 %v626_v28  ;;  %2145 = vmatpush.msra.mxu2 %v626_v28  ;;  %4780 = vst [vmem:[#allocation26_spill] sm:$0xff] %v3070_v61  ;;  %v3194_v28 = vld [vmem:[%s2842_s27 + $0x68] sm:$0xff] }
  0x72   : > { %784 = vmatpush.msra.mxu1 %v642_v30  ;;  %2161 = vmatpush.msra.mxu3 %v642_v30  ;;  %4781 = vst [vmem:[#allocation27_spill] sm:$0xff] %v3073_v62  ;;  %v3197_v30 = vld [vmem:[%s2842_s27 + $0x198] sm:$0xff] }
  0x73   : > { %672 = vmatpush.msra.mxu0 %v625_v31  ;;  %2146 = vmatpush.msra.mxu2 %v625_v31  ;;  %4782 = vst [vmem:[#allocation28_spill] sm:$0xff] %v3083_v63  ;;  %v3206_v31 = vadd.s32 %v2949_v29, %v341_v26  ;;  %v3287_v26 = vld [vmem:[%s2842_s27 + $0x90] sm:$0xff] }
  0x74   : > { %785 = vmatpush.msra.mxu1 %v641_v32  ;;  %2162 = vmatpush.msra.mxu3 %v641_v32  ;;  %4783 = vst [vmem:[#allocation29_spill] sm:$0xff] %v3087_v0  ;;  %v3209_v32 = vadd.s32 %v2949_v29, %v360_v27  ;;  %v3291_v27 = vld [vmem:[%s2842_s27 + $0x1c0] sm:$0xff] }
  0x75   : > { %673 = vmatpush.msra.mxu0 %v624_v35  ;;  %2147 = vmatpush.msra.mxu2 %v624_v35  ;;  %4784 = vst [vmem:[#allocation30_spill] sm:$0xff] %v3092_v3  ;;  %vm4661_vm15 = vcmp.lt.s32.totalorder %v3206_v31, 600  ;;  %v3219_v35 = vld [vmem:[%s2842_s27 + $0x70] sm:$0xff] }
  0x76   : > { %786 = vmatpush.msra.mxu1 %v640_v36  ;;  %2163 = vmatpush.msra.mxu3 %v640_v36  ;;  %4785 = vst [vmem:[#allocation31_spill] sm:$0xff] %v3095_v4  ;;  %vm4745_vm0 = vcmp.lt.s32.totalorder %v3209_v32, 600  ;;  %v3223_v36 = vld [vmem:[%s2842_s27 + $0x1a0] sm:$0xff] }
  0x77   : > { %674 = vmatpush.msra.mxu0 %v623_v37  ;;  %2148 = vmatpush.msra.mxu2 %v623_v37  ;;  %4786 = vst [vmem:[#allocation32_spill] sm:$0xff] %v3104_v5  ;;  %v342_v37 = vadd.s32 64, %v2930_v22 }
  0x78   : > { %1979 = vmatmul.msk.f32.vlgmr.msra.gmra.mxu0 %vm4625_vm1, %v2978_v38  ;;  %1998 = vmatmul.msk.f32.vlgmr.msra.gmra.mxu2 %vm4628_vm2, %v2982_v39  ;;  %4787 = vst [vmem:[#allocation33_spill] sm:$0xff] %v3107_v6 }
  0x79   : > { %787 = vmatpush.msra.mxu1 %v639_v42  ;;  %2164 = vmatpush.msra.mxu3 %v639_v42  ;;  %4788 = vst [vmem:[#allocation34_spill] sm:$0xff] %v3117_v7  ;;  %v3231_v42 = vld [vmem:[%s2842_s27 + $0x1a8] sm:$0xff]  ;;  %v3240_v49 = vadd.s32 %v2949_v29, %v342_v37  ;;  %v344_v37 = vadd.s32 80, %v2930_v22 }
  0x7a   : > { %2011 = vmatmul.msk.f32.vlgmr.msra.gmra.mxu1 %vm4625_vm1, %v2990_v43  ;;  %2030 = vmatmul.msk.f32.vlgmr.msra.gmra.mxu3 %vm4628_vm2, %v2993_v44  ;;  %4789 = vst [vmem:[#allocation35_spill] sm:$0xff] %v3121_v8  ;;  %vm427_vm2 = vcmp.lt.s32.totalorder %v3277_v18, 600  ;;  %v364_v44 = vadd.s32 240, %v2930_v22 }
  0x7b   : > { %4790 = vst [vmem:[#allocation36_spill] sm:$0xff] %v3126_v11  ;;  %vm4674_vm1 = vcmp.lt.s32.totalorder %v3240_v49, 600  ;;  %v3308_v43 = vadd.s32 %v2949_v29, %v344_v37  ;;  %v3325_v37 = vld [vmem:[%s2842_s27 + $0x1d0] sm:$0xff] }
  0x7c   : > { %4791 = vst [vmem:[#allocation37_spill] sm:$0xff] %v3129_v12 }
  0x7d   : > { %4792 = vst [vmem:[#allocation38_spill] sm:$0xff] %v3138_v13 }
  0x7e   : > { %4793 = vst [vmem:[#allocation39_spill] sm:$0xff] %v3141_v14 }
  0x7f   : > { %4794 = vst [vmem:[#allocation40_spill] sm:$0xff] %v3151_v15 }
  0x80   : > { %1980 = vmatmul.msk.f32.gmra.mxu0 %vm4626_vm3, %v3015_v47  ;;  %1999 = vmatmul.msk.f32.gmra.mxu2 %vm4633_vm4, %v3019_v48  ;;  %4795 = vst [vmem:[#allocation41_spill] sm:$0xff] %v3155_v16  ;;  %v351_v47 = vadd.s32 136, %v2930_v22 }
  0x81   : > { %4796 = vst [vmem:[#allocation42_spill] sm:$0xff] %v3160_v19 }
  0x82   : > { %2012 = vmatmul.msk.f32.gmra.mxu1 %vm4626_vm3, %v3024_v51  ;;  %2031 = vmatmul.msk.f32.gmra.mxu3 %vm4633_vm4, %v3027_v52  ;;  %4797 = vst [vmem:[#allocation43_spill] sm:$0xff] %v3163_v20  ;;  %vm4743_vm3 = vcmp.lt.s32.totalorder %v3243_v50, 600  ;;  %v3311_v51 = vadd.s32 %v2949_v29, %v363_v40  ;;  %v345_v40 = vadd.s32 88, %v2930_v22  ;;  %v3333_v52 = vld [vmem:[%s2842_s27 + $0x1d8] sm:$0xff]  ;;  %v3488_v53 = vadd.s32 %v2949_v29, %v351_v47 }
  0x83   : > { %4798 = vst [vmem:[#allocation44_spill] sm:$0xff] %v3172_v21  ;;  %v352_v47 = vadd.s32 144, %v2930_v22 }
  0x84   : > { %4799 = vst [vmem:[#allocation45_spill] sm:$0xff] %v3175_v23  ;;  %vm428_vm4 = vcmp.lt.s32.totalorder %v3311_v51, 600 }
  0x85   : > { %4800 = vst [vmem:[#allocation46_spill] sm:$0xff] %v3185_v24 }
  0x86   : > { %4801 = vst [vmem:[#allocation47_spill] sm:$0xff] %v3189_v25 }
  0x87   : > { %4802 = vst [vmem:[#allocation48_spill] sm:$0xff] %v3194_v28 }
  0x88   : > { %1981 = vmatmul.msk.f32.gmra.mxu0 %vm4627_vm5, %v3049_v55  ;;  %2000 = vmatmul.msk.f32.gmra.mxu2 %vm4641_vm6, %v3053_v56  ;;  %4803 = vst [vmem:[#allocation49_spill] sm:$0xff] %v3197_v30  ;;  %v3480_v55 = vld [vmem:[%s2842_s27 + $0x108] sm:$0xff] }
  0x89   : > { %4804 = vst [vmem:[#allocation50_spill] sm:$0xff] %v3206_v31 }
  0x8a   : > { %2013 = vmatmul.msk.f32.gmra.mxu1 %vm4627_vm5, %v3058_v59  ;;  %2032 = vmatmul.msk.f32.gmra.mxu3 %vm4641_vm6, %v3061_v60  ;;  %4805 = vst [vmem:[#allocation51_spill] sm:$0xff] %v3209_v32  ;;  %vm4747_vm5 = vcmp.lt.s32.totalorder %v3274_v17, 600  ;;  %v3321_v59 = vld [vmem:[%s2842_s27 + $0xa0] sm:$0xff]  ;;  %v3345_v60 = vadd.s32 %v2949_v29, %v364_v44  ;;  %v346_v44 = vadd.s32 96, %v2930_v22 }
  0x8b   : > { %4806 = vst [vmem:[#allocation52_spill] sm:$0xff] %v3219_v35 }
  0x8c   : > { %4807 = vst [vmem:[#allocation53_spill] sm:$0xff] %v3223_v36  ;;  %vm429_vm6 = vcmp.lt.s32.totalorder %v3345_v60, 600 }
  0x8d   : > { %4808 = vst [vmem:[#allocation54_spill] sm:$0xff] %v3228_v41 }
  0x8e   : > { %4809 = vst [vmem:[#allocation55_spill] sm:$0xff] %v3231_v42 }
  0x8f   : > { %4810 = vst [vmem:[#allocation56_spill] sm:$0xff] %v3240_v49 }
  0x90   : > { %1982 = vmatmul.msk.f32.gmra.mxu0 %vm4631_vm7, %v3083_v63  ;;  %2001 = vmatmul.msk.f32.gmra.mxu2 %vm4649_vm8, %v3087_v0  ;;  %4811 = vst [vmem:[#allocation57_spill] sm:$0xff] %v3253_v57 }
  0x91   : > { %4812 = vst [vmem:[#allocation58_spill] sm:$0xff] %v3257_v58 }
  0x92   : > { %2014 = vmatmul.msk.f32.gmra.mxu1 %vm4631_vm7, %v3092_v3  ;;  %2033 = vmatmul.msk.f32.gmra.mxu3 %vm4649_vm8, %v3095_v4  ;;  %4813 = vst [vmem:[#allocation59_spill] sm:$0xff] %v3262_v9  ;;  %vm4744_vm7 = vcmp.lt.s32.totalorder %v3308_v43, 600  ;;  %v3330_v3 = vld [vmem:[%s2842_s27 + $0xa8] sm:$0xff]  ;;  %v365_v4 = vadd.s32 248, %v2930_v22 }
  0x93   : > { %4814 = vst [vmem:[#allocation60_spill] sm:$0xff] %v3265_v10 }
  0x94   : > { %4815 = vst [vmem:[#allocation61_spill] sm:$0xff] %v3274_v17 }
  0x95   : > { %4816 = vst [vmem:[#allocation62_spill] sm:$0xff] %v3287_v26 }
  0x96   : > { %4817 = vst [vmem:[#allocation63_spill] sm:$0xff] %v3296_v1 }
  0x97   : > { %4818 = vst [vmem:[#allocation64_spill] sm:$0xff] %v3299_v2 }
  0x98   : > { %1983 = vmatmul.msk.f32.gmra.mxu0 %vm4639_vm9, %v3117_v7  ;;  %2002 = vmatmul.msk.f32.gmra.mxu2 %vm4657_vm10, %v3121_v8  ;;  %4819 = vst [vmem:[#allocation65_spill] sm:$0xff] %v3308_v43 }
  0x99   : > { %4820 = vst [vmem:[#allocation66_spill] sm:$0xff] %v3321_v59 }
  0x9a   : > { %2015 = vmatmul.msk.f32.gmra.mxu1 %vm4639_vm9, %v3126_v11  ;;  %2034 = vmatmul.msk.f32.gmra.mxu3 %vm4657_vm10, %v3129_v12  ;;  %4821 = vst [vmem:[#allocation67_spill] sm:$0xff] %v3330_v3  ;;  %v3342_v11 = vadd.s32 %v2949_v29, %v345_v40  ;;  %v3359_v40 = vld [vmem:[%s2842_s27 + $0x1e0] sm:$0xff]  ;;  %v3367_v12 = vld [vmem:[%s2842_s27 + $0x1e8] sm:$0xff] }
  0x9b   : > { %4822 = vst [vmem:[#allocation68_spill] sm:$0xff] %v3333_v52 }
  0x9c   : > { %vm4746_vm9 = vcmp.lt.s32.totalorder %v3342_v11, 600  ;;  %4825 = vst [vmem:[#allocation71_spill] sm:$0xff] %v3367_v12 }
  0x9d   : > { %4833 = vst [vmem:[#allocation79_spill] sm:$0xff] %v3475_v33 }
  0x9e   : > { %4834 = vst [vmem:[#allocation80_spill] sm:$0xff] %v3480_v55 }
  0x9f   : > { %4835 = vst [vmem:[#allocation81_spill] sm:$0xff] %v3488_v53 }
  0xa0   : > { %1984 = vmatmul.msk.f32.gmra.mxu0 %vm4647_vm11, %v3151_v15  ;;  %2003 = vmatmul.msk.f32.gmra.mxu2 %vm4667_vm12, %v3155_v16  ;;  %4836 = vst [vmem:[#allocation82_spill] sm:$0xff] %v3498_v34 }
  0xa2   : > { %2016 = vmatmul.msk.f32.gmra.mxu1 %vm4647_vm11, %v3160_v19  ;;  %2035 = vmatmul.msk.f32.gmra.mxu3 %vm4667_vm12, %v3163_v20  ;;  %v3355_v19 = vld [vmem:[%s2842_s27 + $0xb0] sm:$0xff]  ;;  %v3379_v20 = vadd.s32 %v2949_v29, %v365_v4  ;;  %v347_v4 = vadd.s32 104, %v2930_v22 }
  0xa3   : > { %4823 = vst [vmem:[#allocation69_spill] sm:$0xff] %v3355_v19 }
  0xa4   : > { %4826 = vst [vmem:[#allocation72_spill] sm:$0xff] %v3379_v20  ;;  %vm4755_vm8 = vcmp.lt.s32.totalorder %v3379_v20, 600 }
  0xa8   : > { %1985 = vmatmul.msk.f32.gmra.mxu0 %vm4653_vm13, %v3185_v24  ;;  %2004 = vmatmul.msk.f32.gmra.mxu2 %vm4680_vm14, %v3189_v25 }
  0xaa   : > { %2017 = vmatmul.msk.f32.gmra.mxu1 %vm4653_vm13, %v3194_v28  ;;  %2036 = vmatmul.msk.f32.gmra.mxu3 %vm4680_vm14, %v3197_v30  ;;  %v3364_v28 = vld [vmem:[%s2842_s27 + $0xb8] sm:$0xff]  ;;  %v3397_v30 = vld [vmem:[%s2842_s27 + $0xc8] sm:$0xff]  ;;  %vm416_vm14 = vcmp.lt.s32.totalorder %v3488_v53, 600 }
  0xab   : > { %4824 = vst [vmem:[#allocation70_spill] sm:$0xff] %v3364_v28 }
  0xac   : > { %4827 = vst [vmem:[#allocation73_spill] sm:$0xff] %v3397_v30 }
  0xb0   : > { %1986 = vmatmul.msk.f32.gmra.mxu0 %vm4661_vm15, %v3219_v35  ;;  %2005 = vmatmul.msk.f32.gmra.mxu2 %vm4745_vm0, %v3223_v36 }
  0xb2   : > { %2018 = vmatmul.msk.f32.gmra.mxu1 %vm4661_vm15, %v3228_v41  ;;  %2037 = vmatmul.msk.f32.gmra.mxu3 %vm4745_vm0, %v3231_v42  ;;  %v3376_v41 = vadd.s32 %v2949_v29, %v346_v44  ;;  %v3393_v44 = vld [vmem:[%s2842_s27 + $0x1f0] sm:$0xff]  ;;  %v3409_v42 = vadd.s32 %v2949_v29, %v347_v4 }
  0xb4   : > { %vm411_vm11 = vcmp.lt.s32.totalorder %v3376_v41, 600  ;;  %vm412_vm13 = vcmp.lt.s32.totalorder %v3409_v42, 600 }
  0xb8   : > { %1987 = vmatmul.msk.f32.gmra.mxu0 %vm4674_vm1, %v3253_v57  ;;  %2006 = vmatmul.msk.f32.gmra.mxu2 %vm4743_vm3, %v3257_v58 }
  0xba   : > { %2019 = vmatmul.msk.f32.gmra.mxu1 %vm4674_vm1, %v3262_v9  ;;  %2038 = vmatmul.msk.f32.gmra.mxu3 %vm4743_vm3, %v3265_v10  ;;  %v3389_v9 = vld [vmem:[%s2842_s27 + $0xc0] sm:$0xff]  ;;  %v348_v10 = vadd.s32 112, %v2930_v22  ;;  %vm4742_vm1 = vcmask 64512  }
  0xbc   : > { %v3429_v4 = vadd.s32 %v2949_v29, %v348_v10 }
  0xbe   : > { %vm413_vm10 = vcmp.lt.s32.totalorder %v3429_v4, 600 }
  0xc0   : > { %1988 = vmatmul.msk.f32.gmra.mxu0 %vm4747_vm5, %v3287_v26  ;;  %2007 = vmatmul.msk.f32.gmra.mxu2 %vm427_vm2, %v3291_v27 }
  0xc2   : > { %2020 = vmatmul.msk.f32.gmra.mxu1 %vm4747_vm5, %v3296_v1  ;;  %2039 = vmatmul.msk.f32.gmra.mxu3 %vm427_vm2, %v3299_v2  ;;  %v3400_v1 = vld [vmem:[%s2842_s27 + $0x1f8] sm:$0xff]  ;;  %v3436_v2 = vld [vmem:[%s2842_s27 + $0xe0] sm:$0xff] }
  0xc3   : > { %4828 = vst [vmem:[#allocation74_spill] sm:$0xff] %v3400_v1 }
  0xc8   : > { %1989 = vmatmul.msk.f32.gmra.mxu0 %vm4744_vm7, %v3321_v59  ;;  %2008 = vmatmul.msk.f32.gmra.mxu2 %vm428_vm4, %v3325_v37 }
  0xca   : > { %2021 = vmatmul.msk.f32.gmra.mxu1 %vm4744_vm7, %v3330_v3  ;;  %2040 = vmatmul.msk.f32.gmra.mxu3 %vm428_vm4, %v3333_v52  ;;  %v3419_v3 = vld [vmem:[%s2842_s27 + $0xd0] sm:$0xff]  ;;  %v3440_v52 = vld [vmem:[%s2842_s27 + $0xe8] sm:$0xff] }
  0xcb   : > { %4830 = vst [vmem:[#allocation76_spill] sm:$0xff] %v3440_v52 }
  0xd0   : > { %1990 = vmatmul.msk.f32.gmra.mxu0 %vm4746_vm9, %v3355_v19  ;;  %2009 = vmatmul.msk.f32.gmra.mxu2 %vm429_vm6, %v3359_v40 }
  0xd2   : > { %2022 = vmatmul.msk.f32.gmra.mxu1 %vm4746_vm9, %v3364_v28  ;;  %2041 = vmatmul.msk.f32.gmra.mxu3 %vm429_vm6, %v3367_v12  ;;  %v3423_v28 = vld [vmem:[%s2842_s27 + $0xd8] sm:$0xff]  ;;  %v350_v12 = vadd.s32 128, %v2930_v22 }
  0xd3   : > { %4829 = vst [vmem:[#allocation75_spill] sm:$0xff] %v3423_v28 }
  0xd8   : > { %1991 = vmatmul.msk.f32.gmra.mxu0 %vm411_vm11, %v3389_v9  ;;  %2010 = vmatmul.msk.f32.gmra.mxu2 %vm4755_vm8, %v3393_v44 }
  0xda   : > { %2023 = vmatmul.msk.f32.gmra.mxu1 %vm411_vm11, %v3397_v30  ;;  %2042 = vmatmul.msk.f32.gmra.mxu3 %vm4755_vm8, %v3400_v1  ;;  %v349_v30 = vadd.s32 120, %v2930_v22  ;;  %v3457_v1 = vld [vmem:[%s2842_s27 + $0xf8] sm:$0xff]  ;;  %v3515_v22 = vadd.s32 %v2949_v29, %v352_v47 }
  0xdb   : > { %4831 = vst [vmem:[#allocation77_spill] sm:$0xff] %v3457_v1 }
  0xdc   : > { %v3446_v10 = vadd.s32 %v2949_v29, %v349_v30  ;;  %v3463_v30 = vadd.s32 %v2949_v29, %v350_v12  ;;  %4838 = vst [vmem:[#allocation84_spill] sm:$0xff] %v3515_v22 }
  0xde   : > { %vm414_vm15 = vcmp.lt.s32.totalorder %v3446_v10, 600  ;;  %4832 = vst [vmem:[#allocation78_spill] sm:$0xff] %v3463_v30  ;;  %vm4690_vm12 = vcmp.lt.s32.totalorder %v3463_v30, 600  ;;  %v3505_v30 = vld [vmem:[%s2842_s27 + $0x118] sm:$0xff] }
  0xdf   : > { %4837 = vst [vmem:[#allocation83_spill] sm:$0xff] %v3505_v30 }
  0xe0   : > { %1992 = vmatmul.msk.f32.gmra.mxu0 %vm412_vm13, %v3419_v3 }
  0xe2   : > { %2024 = vmatmul.msk.f32.gmra.mxu1 %vm412_vm13, %v3423_v28  ;;  %v3453_v28 = vld [vmem:[%s2842_s27 + $0xf0] sm:$0xff] }
  0xe8   : > { %1993 = vmatmul.msk.f32.gmra.mxu0 %vm413_vm10, %v3436_v2 }
  0xea   : > { %2025 = vmatmul.msk.f32.gmra.mxu1 %vm413_vm10, %v3440_v52  ;;  %v3471_v52 = vld [vmem:[%s4619_s2] ss:$0 sm:$0xff] }
  0xf0   : > { %1994 = vmatmul.msk.f32.gmra.mxu0 %vm414_vm15, %v3453_v28 }
  0xf2   : > { %2026 = vmatmul.msk.f32.gmra.mxu1 %vm414_vm15, %v3457_v1 }
  0xf5   : > { %v676_v38 = vpop.f32.mrf.mxu0 }
  0xf6   : > { %v677_v12 = vadd.f32 %v3471_v52, %v676_v38 }
  0xf7   : > { %v789_v45 = vpop.f32.mrf.mxu1 }
  0xf8   : > { %v3482_v1 = vadd.f32 %v789_v45, %v677_v12  ;;  %1995 = vmatmul.msk.f32.gmra.mxu0 %vm4690_vm12, %v3475_v33 }
  0xfa   : > { %2027 = vmatmul.msk.f32.gmra.mxu1 %vm4690_vm12, %v3480_v55  ;;  %v886_v38 = vsel %vm4742_vm1, %v3482_v1, -inf  ;;  %vm417_vm12 = vcmp.lt.s32.totalorder %v3515_v22, 600 }
  0xfb   : > { %v733_v39 = vpop.f32.mrf.mxu2  ;;  %887 = vmax.xlane.f32.xlu0 %v886_v38 }
  0xfc   : > { %v734_v45 = vadd.f32 %v3471_v52, %v733_v39 }
  0xfd   : > { %v679_v12 = vpop.f32.mrf.mxu0  ;;  %v846_v63 = vpop.f32.mrf.mxu3 }
  0xfe   : > { %v680_v33 = vadd.f32 %v3471_v52, %v679_v12  ;;  %v3502_v61 = vadd.f32 %v846_v63, %v734_v45  ;;  %v3525_v12 = vld [vmem:[%s2842_s27 + $0x120] sm:$0xff] }
  0xff   : > { %v792_v55 = vpop.f32.mrf.mxu1  ;;  %4839 = vst [vmem:[#allocation85_spill] sm:$0xff] %v3525_v12 }
 0x100   : > { %v3507_v48 = vadd.f32 %v792_v55, %v680_v33  ;;  %1996 = vmatmul.msk.f32.gmra.mxu0 %vm416_vm14, %v3498_v34  ;;  %v943_v39 = vsel %vm4742_vm1, %v3502_v61, -inf  ;;  %v3531_v34 = vld [vmem:[%s2842_s27 + $0x128] sm:$0xff] }
 0x101   : > { %944 = vmax.xlane.f32.xlu1 %v943_v39  ;;  %4840 = vst [vmem:[#allocation86_spill] sm:$0xff] %v3531_v34 }
 0x102   : > { %2028 = vmatmul.msk.f32.gmra.mxu1 %vm416_vm14, %v3505_v30  ;;  %v889_v33 = vsel %vm4742_vm1, %v3507_v48, -inf }
 0x103   : > { %v736_v55 = vpop.f32.mrf.mxu2  ;;  %890 = vmax.xlane.f32.xlu0 %v889_v33 }
 0x104   : > { %v737_v63 = vadd.f32 %v3471_v52, %v736_v55 }
 0x105   : > { %v682_v38 = vpop.f32.mrf.mxu0  ;;  %v849_v45 = vpop.f32.mrf.mxu3 }
 0x106   : > { %v683_v29 = vadd.f32 %v3471_v52, %v682_v38  ;;  %v3528_v47 = vadd.f32 %v849_v45, %v737_v63 }
 0x107   : > { %v795_v39 = vpop.f32.mrf.mxu1 }
 0x108   : > { %v3533_v30 = vadd.f32 %v795_v39, %v683_v29  ;;  %v946_v33 = vsel %vm4742_vm1, %v3528_v47, -inf  ;;  %1997 = vmatmul.msk.f32.gmra.mxu0 %vm417_vm12, %v3525_v12 }
 0x109   : > { %947 = vmax.xlane.f32.xlu2 %v946_v33 }
 0x10a   : > { %v892_v55 = vsel %vm4742_vm1, %v3533_v30, -inf  ;;  %2029 = vmatmul.msk.f32.gmra.mxu1 %vm417_vm12, %v3531_v34 }
 0x10b   : > { %v739_v63 = vpop.f32.mrf.mxu2  ;;  %893 = vmax.xlane.f32.xlu1 %v892_v55 }
 0x10c   : > { %v740_v38 = vadd.f32 %v3471_v52, %v739_v63 }
 0x10d   : > { %v685_v45 = vpop.f32.mrf.mxu0  ;;  %v852_v29 = vpop.f32.mrf.mxu3 }
 0x10e   : > { %v686_v39 = vadd.f32 %v3471_v52, %v685_v45  ;;  %v3547_v53 = vadd.f32 %v852_v29, %v740_v38 }
 0x10f   : > { %v798_v7 = vpop.f32.mrf.mxu1 }
 0x110   : > { %v3549_v12 = vadd.f32 %v798_v7, %v686_v39  ;;  %v949_v33 = vsel %vm4742_vm1, %v3547_v53, -inf }
 0x111   : > { %950 = vmax.xlane.f32.xlu0 %v949_v33 }
 0x112   : > { %v895_v34 = vsel %vm4742_vm1, %v3549_v12, -inf }
 0x113   : > { %v742_v22 = vpop.f32.mrf.mxu2  ;;  %896 = vmax.xlane.f32.xlu1 %v895_v34 }
 0x114   : > { %v743_v55 = vadd.f32 %v3471_v52, %v742_v22 }
 0x115   : > { %v688_v63 = vpop.f32.mrf.mxu0  ;;  %v855_v46 = vpop.f32.mrf.mxu3 }
 0x116   : > { %v689_v45 = vadd.f32 %v3471_v52, %v688_v63  ;;  %v3557_v38 = vadd.f32 %v855_v46, %v743_v55 }
 0x117   : > { %v801_v29 = vpop.f32.mrf.mxu1 }
 0x118   : > { %v3559_v7 = vadd.f32 %v801_v29, %v689_v45  ;;  %v952_v39 = vsel %vm4742_vm1, %v3557_v38, -inf }
 0x11a   : > { %v898_v33 = vsel %vm4742_vm1, %v3559_v7, -inf }
 0x11b   : > { %v745_v5 = vpop.f32.mrf.mxu2  ;;  %899 = vmax.xlane.f32.xlu2 %v898_v33  ;;  %953 = vmax.xlane.f32.xlu1 %v952_v39 }
 0x11c   : > { %v746_v34 = vadd.f32 %v3471_v52, %v745_v5 }
 0x11d   : > { %v691_v22 = vpop.f32.mrf.mxu0  ;;  %v858_v56 = vpop.f32.mrf.mxu3 }
 0x11e   : > { %v3566_v15 = vadd.f32 %v858_v56, %v746_v34  ;;  %v692_v63 = vadd.f32 %v3471_v52, %v691_v22 }
 0x11f   : > { %v804_v46 = vpop.f32.mrf.mxu1 }
 0x120   : > { %v955_v55 = vsel %vm4742_vm1, %v3566_v15, -inf  ;;  %v3572_v33 = vadd.f32 %v804_v46, %v692_v63 }
 0x122   : > { %v901_v22 = vsel %vm4742_vm1, %v3572_v33, -inf }
 0x123   : > { %v748_v45 = vpop.f32.mrf.mxu2  ;;  %956 = vmax.xlane.f32.xlu2 %v955_v55 }
 0x124   : > { %v749_v29 = vadd.f32 %v3471_v52, %v748_v45 }
 0x125   : > { %v694_v54 = vpop.f32.mrf.mxu0  ;;  %v861_v13 = vpop.f32.mrf.mxu3 }
 0x126   : > { %v695_v5 = vadd.f32 %v3471_v52, %v694_v54  ;;  %v3575_v39 = vadd.f32 %v861_v13, %v749_v29 }
 0x127   : > { %v807_v56 = vpop.f32.mrf.mxu1 }
 0x128   : > { %v958_v34 = vsel %vm4742_vm1, %v3575_v39, -inf  ;;  %v3579_v0 = vadd.f32 %v807_v56, %v695_v5 }
 0x129   : > { %959 = vmax.xlane.f32.xlu0 %v958_v34 }
 0x12a   : > { %v904_v29 = vsel %vm4742_vm1, %v3579_v0, -inf }
 0x12b   : > { %v751_v55 = vpop.f32.mrf.mxu2  ;;  %902 = vmax.xlane.f32.xlu2 %v901_v22 }
 0x12c   : > { %v752_v45 = vadd.f32 %v3471_v52, %v751_v55 }
 0x12d   : > { %v697_v46 = vpop.f32.mrf.mxu0  ;;  %v864_v63 = vpop.f32.mrf.mxu3 }
 0x12e   : > { %v698_v54 = vadd.f32 %v3471_v52, %v697_v46  ;;  %v3585_v13 = vadd.f32 %v864_v63, %v752_v45 }
 0x12f   : > { %v810_v24 = vpop.f32.mrf.mxu1 }
 0x130   : > { %v961_v5 = vsel %vm4742_vm1, %v3585_v13, -inf  ;;  %v3591_v56 = vadd.f32 %v810_v24, %v698_v54 }
 0x131   : > { %962 = vmax.xlane.f32.xlu1 %v961_v5  ;;  %905 = vmax.xlane.f32.xlu0 %v904_v29 }
 0x132   : > { %v907_v63 = vsel %vm4742_vm1, %v3591_v56, -inf }
 0x133   : > { %v754_v34 = vpop.f32.mrf.mxu2 }
 0x134   : > { %v755_v22 = vadd.f32 %v3471_v52, %v754_v34 }
 0x135   : > { %v700_v55 = vpop.f32.mrf.mxu0  ;;  %v867_v62 = vpop.f32.mrf.mxu3 }
 0x136   : > { %v701_v46 = vadd.f32 %v3471_v52, %v700_v55  ;;  %v3595_v45 = vadd.f32 %v867_v62, %v755_v22 }
 0x137   : > { %v813_v21 = vpop.f32.mrf.mxu1 }
 0x138   : > { %v964_v8 = vsel %vm4742_vm1, %v3595_v45, -inf  ;;  %v3601_v24 = vadd.f32 %v813_v21, %v701_v46 }
 0x139   : > { %965 = vmax.xlane.f32.xlu2 %v964_v8  ;;  %908 = vmax.xlane.f32.xlu1 %v907_v63 }
 0x13a   : > { %v910_v22 = vsel %vm4742_vm1, %v3601_v24, -inf }
 0x13b   : > { %v757_v54 = vpop.f32.mrf.mxu2 }
 0x13c   : > { %v758_v29 = vadd.f32 %v3471_v52, %v757_v54 }
 0x13d   : > { %v703_v5 = vpop.f32.mrf.mxu0  ;;  %v870_v34 = vpop.f32.mrf.mxu3 }
 0x13e   : > { %v704_v55 = vadd.f32 %v3471_v52, %v703_v5  ;;  %v3605_v62 = vadd.f32 %v870_v34, %v758_v29 }
 0x13f   : > { %v816_v35 = vpop.f32.mrf.mxu1 }
 0x140   : > { %v967_v6 = vsel %vm4742_vm1, %v3605_v62, -inf  ;;  %v3611_v8 = vadd.f32 %v816_v35, %v704_v55 }
 0x141   : > { %911 = vmax.xlane.f32.xlu2 %v910_v22  ;;  %968 = vmax.xlane.f32.xlu0 %v967_v6 }
 0x142   : > { %v913_v34 = vsel %vm4742_vm1, %v3611_v8, -inf }
 0x143   : > { %v760_v21 = vpop.f32.mrf.mxu2 }
 0x144   : > { %v761_v46 = vadd.f32 %v3471_v52, %v760_v21 }
 0x145   : > { %v706_v63 = vpop.f32.mrf.mxu0  ;;  %v873_v54 = vpop.f32.mrf.mxu3 }
 0x146   : > { %v707_v5 = vadd.f32 %v3471_v52, %v706_v63  ;;  %v3615_v29 = vadd.f32 %v873_v54, %v761_v46 }
 0x147   : > { %v819_v31 = vpop.f32.mrf.mxu1 }
 0x148   : > { %v970_v16 = vsel %vm4742_vm1, %v3615_v29, -inf  ;;  %v3621_v6 = vadd.f32 %v819_v31, %v707_v5 }
 0x149   : > { %971 = vmax.xlane.f32.xlu1 %v970_v16  ;;  %914 = vmax.xlane.f32.xlu0 %v913_v34 }
 0x14a   : > { %v916_v54 = vsel %vm4742_vm1, %v3621_v6, -inf }
 0x14b   : > { %v763_v35 = vpop.f32.mrf.mxu2 }
 0x14c   : > { %v764_v55 = vadd.f32 %v3471_v52, %v763_v35 }
 0x14d   : > { %v709_v22 = vpop.f32.mrf.mxu0  ;;  %v876_v21 = vpop.f32.mrf.mxu3 }
 0x14e   : > { %v710_v63 = vadd.f32 %v3471_v52, %v709_v22  ;;  %v3625_v46 = vadd.f32 %v876_v21, %v764_v55 }
 0x14f   : > { %v822_v57 = vpop.f32.mrf.mxu1 }
 0x150   : > { %v973_v14 = vsel %vm4742_vm1, %v3625_v46, -inf  ;;  %v3631_v16 = vadd.f32 %v822_v57, %v710_v63 }
 0x151   : > { %974 = vmax.xlane.f32.xlu2 %v973_v14  ;;  %917 = vmax.xlane.f32.xlu1 %v916_v54 }
 0x152   : > { %v919_v21 = vsel %vm4742_vm1, %v3631_v16, -inf }
 0x153   : > { %v766_v31 = vpop.f32.mrf.mxu2 }
 0x154   : > { %v767_v5 = vadd.f32 %v3471_v52, %v766_v31 }
 0x155   : > { %v712_v34 = vpop.f32.mrf.mxu0  ;;  %v879_v35 = vpop.f32.mrf.mxu3 }
 0x156   : > { %v713_v22 = vadd.f32 %v3471_v52, %v712_v34  ;;  %v3635_v55 = vadd.f32 %v879_v35, %v767_v5 }
 0x157   : > { %v825_v49 = vpop.f32.mrf.mxu1 }
 0x158   : > { %v976_v25 = vsel %vm4742_vm1, %v3635_v55, -inf  ;;  %v3641_v14 = vadd.f32 %v825_v49, %v713_v22 }
 0x159   : > { %920 = vmax.xlane.f32.xlu2 %v919_v21  ;;  %977 = vmax.xlane.f32.xlu0 %v976_v25 }
 0x15a   : > { %v922_v35 = vsel %vm4742_vm1, %v3641_v14, -inf }
 0x15b   : > { %v769_v57 = vpop.f32.mrf.mxu2 }
 0x15c   : > { %v770_v63 = vadd.f32 %v3471_v52, %v769_v57 }
 0x15d   : > { %v715_v54 = vpop.f32.mrf.mxu0  ;;  %v882_v31 = vpop.f32.mrf.mxu3 }
 0x15e   : > { %v716_v34 = vadd.f32 %v3471_v52, %v715_v54  ;;  %v3645_v5 = vadd.f32 %v882_v31, %v770_v63 }
 0x15f   : > { %v828_v26 = vpop.f32.mrf.mxu1 }
 0x160   : > { %v979_v23 = vsel %vm4742_vm1, %v3645_v5, -inf  ;;  %v3651_v25 = vadd.f32 %v828_v26, %v716_v34 }
 0x161   : > { %980 = vmax.xlane.f32.xlu1 %v979_v23  ;;  %923 = vmax.xlane.f32.xlu0 %v922_v35 }
 0x162   : > { %v925_v21 = vsel %vm4742_vm1, %v3651_v25, -inf }
 0x165   : > { %v718_v49 = vpop.f32.mrf.mxu0 }
 0x166   : > { %v719_v22 = vadd.f32 %v3471_v52, %v718_v49 }
 0x167   : > { %v831_v57 = vpop.f32.mrf.mxu1 }
 0x168   : > { %v3656_v63 = vadd.f32 %v831_v57, %v719_v22 }
 0x169   : > { %926 = vmax.xlane.f32.xlu1 %v925_v21 }
 0x16a   : > { %v928_v54 = vsel %vm4742_vm1, %v3656_v63, -inf }
 0x16b   : > { %929 = vmax.xlane.f32.xlu2 %v928_v54 }
 0x16d   : > { %v721_v31 = vpop.f32.mrf.mxu0 }
 0x16e   : > { %v722_v23 = vadd.f32 %v3471_v52, %v721_v31  ;;  %v888_v35 = vpop.xlane.xlu0 %887 }
 0x16f   : > { %v982_v26 = vsub.f32 %v3482_v1, %v888_v35  ;;  %v834_v34 = vpop.f32.mrf.mxu1 }
 0x170   : > { %v3662_v17 = vadd.f32 %v834_v34, %v722_v23 }
 0x171   : > { %v1014_v49 = vmul.f32 1.442695, %v982_v26 }
 0x172   : > { %v931_v36 = vsel %vm4742_vm1, %v3662_v17, -inf }
 0x173   : > { %2380 = vpow2.f32 %v1014_v49  ;;  %932 = vmax.xlane.f32.xlu0 %v931_v36 }
 0x174   : > { %v945_v22 = vpop.xlane.xlu1 %944 }
 0x175   : > { %v1001_v21 = vsub.f32 %v3502_v61, %v945_v22  ;;  %v724_v57 = vpop.f32.mrf.mxu0 }
 0x176   : > { %v725_v54 = vadd.f32 %v3471_v52, %v724_v57  ;;  %v891_v59 = vpop.xlane.xlu0 %890 }
 0x177   : > { %v1052_v31 = vmul.f32 1.442695, %v1001_v21  ;;  %v983_v32 = vsub.f32 %v3507_v48, %v891_v59  ;;  %v837_v1 = vpop.f32.mrf.mxu1 }
 0x178   : > { %v3669_v35 = vadd.f32 %v837_v1, %v725_v54 }
 0x179   : > { %v3671_v23 = vpop.eup %2380  ;;  %2382 = vpow2.f32 %v1052_v31  ;;  %v1016_v61 = vmul.f32 1.442695, %v983_v32 }
 0x17a   : > { %v934_v26 = vsel %vm4742_vm1, %v3669_v35, -inf  ;;  %v1078_v36 = vsel %vm4742_vm1, %v3671_v23, 0.0 }
 0x17b   : > { %935 = vmax.xlane.f32.xlu1 %v934_v26  ;;  %1079 = vadd.xlane.f32.xlu2 %v1078_v36  ;;  %2384 = vpow2.f32 %v1016_v61 }
 0x17c   : > { %v948_v34 = vpop.xlane.xlu2 %947 }
 0x17d   : > { %v1002_v49 = vsub.f32 %v3528_v47, %v948_v34  ;;  %v727_v22 = vpop.f32.mrf.mxu0 }
 0x17e   : > { %v728_v48 = vadd.f32 %v3471_v52, %v727_v22  ;;  %v894_v59 = vpop.xlane.xlu1 %893 }
 0x17f   : > { %v3679_v21 = vpop.eup %2382  ;;  %v1054_v57 = vmul.f32 1.442695, %v1002_v49  ;;  %v984_v54 = vsub.f32 %v3533_v30, %v894_v59  ;;  %v840_v31 = vpop.f32.mrf.mxu1 }
 0x180   : > { %v3682_v1 = vadd.f32 %v840_v31, %v728_v48  ;;  %v1135_v32 = vsel %vm4742_vm1, %v3679_v21, 0.0 }
 0x181   : > { %2386 = vpow2.f32 %v1054_v57  ;;  %1136 = vadd.xlane.f32.xlu0 %v1135_v32  ;;  %v1018_v26 = vmul.f32 1.442695, %v984_v54  ;;  %v3688_v34 = vpop.eup %2384 }
 0x182   : > { %v937_v47 = vsel %vm4742_vm1, %v3682_v1, -inf  ;;  %v1081_v32 = vsel %vm4742_vm1, %v3688_v34, 0.0 }
 0x183   : > { %938 = vmax.xlane.f32.xlu2 %v937_v47  ;;  %2388 = vpow2.f32 %v1018_v26 }
 0x184   : > { %v951_v36 = vpop.xlane.xlu0 %950 }
 0x185   : > { %v1003_v61 = vsub.f32 %v3547_v53, %v951_v36  ;;  %v730_v49 = vpop.f32.mrf.mxu0 }
 0x186   : > { %v897_v30 = vpop.xlane.xlu1 %896  ;;  %v731_v22 = vadd.f32 %v3471_v52, %v730_v49 }
 0x187   : > { %v3692_v48 = vpop.eup %2386  ;;  %v1056_v59 = vmul.f32 1.442695, %v1003_v61  ;;  %v843_v57 = vpop.f32.mrf.mxu1  ;;  %v985_v31 = vsub.f32 %v3549_v12, %v897_v30 }
 0x188   : > { %v1138_v54 = vsel %vm4742_vm1, %v3692_v48, 0.0  ;;  %v3699_v53 = vadd.f32 %v843_v57, %v731_v22 }
 0x189   : > { %2390 = vpow2.f32 %v1056_v59  ;;  %1139 = vadd.xlane.f32.xlu1 %v1138_v54  ;;  %1082 = vadd.xlane.f32.xlu0 %v1081_v32  ;;  %v1020_v47 = vmul.f32 1.442695, %v985_v31  ;;  %v3701_v52 = vpop.eup %2388 }
 0x18a   : > { %v940_v61 = vsel %vm4742_vm1, %v3699_v53, -inf  ;;  %v1084_v30 = vsel %vm4742_vm1, %v3701_v52, 0.0 }
 0x18b   : > { %2392 = vpow2.f32 %v1020_v47 }
 0x18e   : > { %v900_v36 = vpop.xlane.xlu2 %899  ;;  %v954_v26 = vpop.xlane.xlu1 %953 }
 0x18f   : > { %v3705_v12 = vpop.eup %2390  ;;  %v1004_v49 = vsub.f32 %v3557_v38, %v954_v26  ;;  %v986_v57 = vsub.f32 %v3559_v7, %v900_v36 }
 0x190   : > { %v1141_v22 = vsel %vm4742_vm1, %v3705_v12, 0.0 }
 0x191   : > { %v1058_v59 = vmul.f32 1.442695, %v1004_v49  ;;  %1085 = vadd.xlane.f32.xlu1 %v1084_v30  ;;  %941 = vmax.xlane.f32.xlu0 %v940_v61  ;;  %v3713_v31 = vpop.eup %2392  ;;  %v1022_v54 = vmul.f32 1.442695, %v986_v57 }
 0x192   : > { %1142 = vadd.xlane.f32.xlu2 %v1141_v22  ;;  %v1087_v26 = vsel %vm4742_vm1, %v3713_v31, 0.0 }
 0x193   : > { %2394 = vpow2.f32 %v1058_v59 }
 0x194   : > { %2396 = vpow2.f32 %v1022_v54 }
 0x196   : > { %v957_v32 = vpop.xlane.xlu2 %956 }
 0x197   : > { %v1005_v38 = vsub.f32 %v3566_v15, %v957_v32 }
 0x199   : > { %v1060_v47 = vmul.f32 1.442695, %v1005_v38  ;;  %v3718_v43 = vpop.eup %2394 }
 0x19a   : > { %1088 = vadd.xlane.f32.xlu2 %v1087_v26  ;;  %v1144_v7 = vsel %vm4742_vm1, %v3718_v43, 0.0  ;;  %v3724_v22 = vpop.eup %2396 }
 0x19b   : > { %2398 = vpow2.f32 %v1060_v47  ;;  %1145 = vadd.xlane.f32.xlu0 %v1144_v7  ;;  %v1090_v32 = vsel %vm4742_vm1, %v3724_v22, 0.0 }
 0x19c   : > { %v960_v36 = vpop.xlane.xlu0 %959 }
 0x19d   : > { %v1006_v61 = vsub.f32 %v3575_v39, %v960_v36 }
 0x19e   : > { %v903_v49 = vpop.xlane.xlu2 %902 }
 0x19f   : > { %v1062_v30 = vmul.f32 1.442695, %v1006_v61  ;;  %v987_v15 = vsub.f32 %v3572_v33, %v903_v49 }
 0x1a1   : > { %v3726_v59 = vpop.eup %2398  ;;  %2400 = vpow2.f32 %v1062_v30  ;;  %v1024_v57 = vmul.f32 1.442695, %v987_v15 }
 0x1a2   : > { %v1147_v54 = vsel %vm4742_vm1, %v3726_v59, 0.0 }
 0x1a3   : > { %2402 = vpow2.f32 %v1024_v57  ;;  %1148 = vadd.xlane.f32.xlu1 %v1147_v54  ;;  %1091 = vadd.xlane.f32.xlu0 %v1090_v32 }
 0x1a4   : > { %v963_v39 = vpop.xlane.xlu1 %962  ;;  %v906_v38 = vpop.xlane.xlu0 %905 }
 0x1a5   : > { %v1007_v47 = vsub.f32 %v3585_v13, %v963_v39  ;;  %v988_v33 = vsub.f32 %v3579_v0, %v906_v38 }
 0x1a7   : > { %v3734_v26 = vpop.eup %2400  ;;  %v1064_v7 = vmul.f32 1.442695, %v1007_v47  ;;  %v1026_v36 = vmul.f32 1.442695, %v988_v33 }
 0x1a8   : > { %v1150_v61 = vsel %vm4742_vm1, %v3734_v26, 0.0 }
 0x1a9   : > { %v3738_v49 = vpop.eup %2402  ;;  %2404 = vpow2.f32 %v1064_v7  ;;  %1151 = vadd.xlane.f32.xlu2 %v1150_v61 }
 0x1aa   : > { %2406 = vpow2.f32 %v1026_v36  ;;  %v1093_v30 = vsel %vm4742_vm1, %v3738_v49, 0.0 }
 0x1ab   : > { %1094 = vadd.xlane.f32.xlu1 %v1093_v30 }
 0x1ac   : > { %v966_v15 = vpop.xlane.xlu2 %965  ;;  %v909_v13 = vpop.xlane.xlu1 %908 }
 0x1ad   : > { %v1008_v0 = vsub.f32 %v3595_v45, %v966_v15  ;;  %v989_v57 = vsub.f32 %v3591_v56, %v909_v13 }
 0x1af   : > { %v3744_v54 = vpop.eup %2404  ;;  %v1066_v32 = vmul.f32 1.442695, %v1008_v0  ;;  %v1028_v39 = vmul.f32 1.442695, %v989_v57 }
 0x1b0   : > { %v3746_v38 = vpop.eup %2406  ;;  %v1153_v47 = vsel %vm4742_vm1, %v3744_v54, 0.0 }
 0x1b1   : > { %2408 = vpow2.f32 %v1066_v32  ;;  %1154 = vadd.xlane.f32.xlu0 %v1153_v47  ;;  %v1096_v33 = vsel %vm4742_vm1, %v3746_v38, 0.0 }
 0x1b2   : > { %2410 = vpow2.f32 %v1028_v39  ;;  %1097 = vadd.xlane.f32.xlu2 %v1096_v33 }
 0x1b4   : > { %v912_v7 = vpop.xlane.xlu2 %911  ;;  %v969_v45 = vpop.xlane.xlu0 %968 }
 0x1b5   : > { %v990_v56 = vsub.f32 %v3601_v24, %v912_v7  ;;  %v1009_v36 = vsub.f32 %v3605_v62, %v969_v45 }
 0x1b7   : > { %v3754_v61 = vpop.eup %2408  ;;  %v1030_v30 = vmul.f32 1.442695, %v990_v56  ;;  %v1068_v15 = vmul.f32 1.442695, %v1009_v36 }
 0x1b8   : > { %v3756_v13 = vpop.eup %2410  ;;  %v1156_v0 = vsel %vm4742_vm1, %v3754_v61, 0.0 }
 0x1b9   : > { %2412 = vpow2.f32 %v1030_v30  ;;  %1157 = vadd.xlane.f32.xlu1 %v1156_v0  ;;  %v1099_v57 = vsel %vm4742_vm1, %v3756_v13, 0.0 }
 0x1ba   : > { %2414 = vpow2.f32 %v1068_v15  ;;  %1100 = vadd.xlane.f32.xlu0 %v1099_v57 }
 0x1bc   : > { %v972_v32 = vpop.xlane.xlu1 %971  ;;  %v915_v24 = vpop.xlane.xlu0 %914 }
 0x1bd   : > { %v1010_v62 = vsub.f32 %v3615_v29, %v972_v32  ;;  %v991_v39 = vsub.f32 %v3611_v8, %v915_v24 }
 0x1bf   : > { %v3764_v47 = vpop.eup %2412  ;;  %v1070_v33 = vmul.f32 1.442695, %v1010_v62  ;;  %v1032_v7 = vmul.f32 1.442695, %v991_v39 }
 0x1c0   : > { %v3766_v45 = vpop.eup %2414  ;;  %v1102_v56 = vsel %vm4742_vm1, %v3764_v47, 0.0 }
 0x1c1   : > { %2416 = vpow2.f32 %v1070_v33  ;;  %1103 = vadd.xlane.f32.xlu1 %v1102_v56  ;;  %v1159_v36 = vsel %vm4742_vm1, %v3766_v45, 0.0 }
 0x1c2   : > { %2418 = vpow2.f32 %v1032_v7  ;;  %1160 = vadd.xlane.f32.xlu2 %v1159_v36 }
 0x1c4   : > { %v3772_v30 = vpop.xlane.xlu2 %974  ;;  %v918_v29 = vpop.xlane.xlu1 %917 }
 0x1c5   : > { %v992_v8 = vsub.f32 %v3621_v6, %v918_v29 }
 0x1c7   : > { %v3775_v15 = vpop.eup %2416  ;;  %v1034_v0 = vmul.f32 1.442695, %v992_v8 }
 0x1c8   : > { %v3777_v57 = vpop.eup %2418  ;;  %v1162_v32 = vsel %vm4742_vm1, %v3775_v15, 0.0 }
 0x1c9   : > { %1163 = vadd.xlane.f32.xlu0 %v1162_v32  ;;  %v1105_v24 = vsel %vm4742_vm1, %v3777_v57, 0.0  ;;  %2420 = vpow2.f32 %v1034_v0 }
 0x1ca   : > { %1106 = vadd.xlane.f32.xlu2 %v1105_v24 }
 0x1cc   : > { %v921_v62 = vpop.xlane.xlu2 %920  ;;  %v3783_v39 = vpop.xlane.xlu0 %977 }
 0x1cd   : > { %v993_v33 = vsub.f32 %v3631_v16, %v921_v62 }
 0x1cf   : > { %v1036_v6 = vmul.f32 1.442695, %v993_v33  ;;  %v3786_v7 = vpop.eup %2420 }
 0x1d0   : > { %v1108_v56 = vsel %vm4742_vm1, %v3786_v7, 0.0 }
 0x1d1   : > { %2422 = vpow2.f32 %v1036_v6  ;;  %1109 = vadd.xlane.f32.xlu0 %v1108_v56 }
 0x1d4   : > { %v981_v36 = vpop.xlane.xlu1 %980  ;;  %v924_v29 = vpop.xlane.xlu0 %923 }
 0x1d5   : > { %v994_v8 = vsub.f32 %v3641_v14, %v924_v29 }
 0x1d7   : > { %v3791_v32 = vpop.eup %2422  ;;  %v1038_v0 = vmul.f32 1.442695, %v994_v8 }
 0x1d8   : > { %v1111_v24 = vsel %vm4742_vm1, %v3791_v32, 0.0 }
 0x1d9   : > { %1112 = vadd.xlane.f32.xlu1 %v1111_v24  ;;  %2424 = vpow2.f32 %v1038_v0 }
 0x1dc   : > { %v927_v16 = vpop.xlane.xlu1 %926 }
 0x1dd   : > { %v995_v62 = vsub.f32 %v3651_v25, %v927_v16 }
 0x1de   : > { %v930_v33 = vpop.xlane.xlu2 %929 }
 0x1df   : > { %v1040_v6 = vmul.f32 1.442695, %v995_v62  ;;  %v996_v58 = vsub.f32 %v3656_v63, %v930_v33  ;;  %v3797_v56 = vpop.eup %2424 }
 0x1e0   : > { %v1114_v14 = vsel %vm4742_vm1, %v3797_v56, 0.0 }
 0x1e1   : > { %2426 = vpow2.f32 %v1040_v6  ;;  %v1042_v19 = vmul.f32 1.442695, %v996_v58  ;;  %1115 = vadd.xlane.f32.xlu2 %v1114_v14 }
 0x1e3   : > { %2428 = vpow2.f32 %v1042_v19 }
 0x1e6   : > { %v933_v29 = vpop.xlane.xlu0 %932 }
 0x1e7   : > { %v3801_v8 = vpop.eup %2426  ;;  %v997_v0 = vsub.f32 %v3662_v17, %v933_v29  ;;  %v1013_v17 = vsub.f32 %v3645_v5, %v981_v36  ;;  %v1011_v5 = vsub.f32 %v3625_v46, %v3772_v30 }
 0x1e8   : > { %v1117_v25 = vsel %vm4742_vm1, %v3801_v8, 0.0 }
 0x1e9   : > { %v3806_v24 = vpop.eup %2428  ;;  %v1044_v63 = vmul.f32 1.442695, %v997_v0  ;;  %1118 = vadd.xlane.f32.xlu0 %v1117_v25  ;;  %v1076_v25 = vmul.f32 1.442695, %v1013_v17 }
 0x1ea   : > { %v1120_v58 = vsel %vm4742_vm1, %v3806_v24, 0.0 }
 0x1eb   : > { %2430 = vpow2.f32 %v1044_v63  ;;  %1121 = vadd.xlane.f32.xlu1 %v1120_v58 }
 0x1ee   : > { %v936_v16 = vpop.xlane.xlu1 %935  ;;  %v1080_v62 = vpop.xlane.xlu2 %1079 }
 0x1ef   : > { %v998_v19 = vsub.f32 %v3669_v35, %v936_v16  ;;  %2432 = vrcp.f32 %v1080_v62 }
 0x1f1   : > { %v3811_v33 = vpop.eup %2430  ;;  %v1046_v6 = vmul.f32 1.442695, %v998_v19 }
 0x1f2   : > { %v1123_v14 = vsel %vm4742_vm1, %v3811_v33, 0.0 }
 0x1f3   : > { %2434 = vpow2.f32 %v1046_v6  ;;  %1124 = vadd.xlane.f32.xlu2 %v1123_v14  ;;  %v1072_v14 = vmul.f32 1.442695, %v1011_v5 }
 0x1f4   : > { %v1137_v29 = vpop.xlane.xlu0 %1136 }
 0x1f5   : > { %v2433_v0 = vpop.eup %2432  ;;  %2436 = vrcp.f32 %v1137_v29 }
 0x1f6   : > { %v3817_v63 = vmul.f32 %v2433_v0, %v3671_v23  ;;  %v939_v58 = vpop.xlane.xlu2 %938  ;;  %2438 = vpow2.f32 %v1076_v25 }
 0x1f7   : > { %v999_v35 = vsub.f32 %v3682_v1, %v939_v58 }
 0x1f9   : > { %v3820_v16 = vpop.eup %2434  ;;  %v1048_v36 = vmul.f32 1.442695, %v999_v35 }
 0x1fa   : > { %v1126_v62 = vsel %vm4742_vm1, %v3820_v16, 0.0 }
 0x1fb   : > { %v2437_v19 = vpop.eup %2436  ;;  %2440 = vpow2.f32 %v1048_v36  ;;  %1127 = vadd.xlane.f32.xlu0 %v1126_v62 }
 0x1fc   : > { %v3827_v17 = vmul.f32 %v2437_v19, %v3679_v21  ;;  %v1140_v23 = vpop.xlane.xlu1 %1139  ;;  %v1083_v6 = vpop.xlane.xlu0 %1082 }
 0x1fd   : > { %2442 = vrcp.f32 %v1140_v23  ;;  %v3829_v1 = vpop.eup %2438  ;;  %v1012_v23 = vsub.f32 %v3635_v55, %v3783_v39 }
 0x1fe   : > { %2444 = vrcp.f32 %v1083_v6  ;;  %v1171_v30 = vsel %vm4742_vm1, %v3829_v1, 0.0 }
 0x1ff   : > { %2446 = vpow2.f32 %v1072_v14 }
 0x201   : > { %v3831_v29 = vpop.eup %2440 }
 0x202   : > { %v1129_v46 = vsel %vm4742_vm1, %v3831_v29, 0.0 }
 0x203   : > { %v2443_v0 = vpop.eup %2442  ;;  %1130 = vadd.xlane.f32.xlu1 %v1129_v46  ;;  %1172 = vadd.xlane.f32.xlu0 %v1171_v30  ;;  %v1074_v46 = vmul.f32 1.442695, %v1012_v23 }
 0x204   : > { %v2445_v21 = vpop.eup %2444  ;;  %v3838_v25 = vmul.f32 %v2443_v0, %v3692_v48  ;;  %v1086_v58 = vpop.xlane.xlu1 %1085 }
 0x205   : > { %v942_v35 = vpop.xlane.xlu0 %941  ;;  %v3841_v5 = vmul.f32 %v2445_v21, %v3688_v34  ;;  %2448 = vrcp.f32 %v1086_v58  ;;  %v1143_v36 = vpop.xlane.xlu2 %1142 }
 0x206   : > { %v1000_v62 = vsub.f32 %v3699_v53, %v942_v35  ;;  %2450 = vrcp.f32 %v1143_v36  ;;  %v3844_v19 = vpop.eup %2446 }
 0x207   : > { %v1165_v48 = vsel %vm4742_vm1, %v3844_v19, 0.0 }
 0x208   : > { %v1050_v6 = vmul.f32 1.442695, %v1000_v62 }
 0x20a   : > { %2452 = vpow2.f32 %v1050_v6 }
 0x20b   : > { %v2449_v14 = vpop.eup %2448  ;;  %1166 = vadd.xlane.f32.xlu1 %v1165_v48 }
 0x20c   : > { %v2451_v34 = vpop.eup %2450  ;;  %v3851_v30 = vmul.f32 %v2449_v14, %v3701_v52 }
 0x20d   : > { %v3854_v53 = vmul.f32 %v2451_v34, %v3705_v12  ;;  %v1089_v0 = vpop.xlane.xlu2 %1088 }
 0x20e   : > { %2454 = vrcp.f32 %v1089_v0  ;;  %v1146_v55 = vpop.xlane.xlu0 %1145 }
 0x20f   : > { %2456 = vpow2.f32 %v1074_v46 }
 0x210   : > { %v3856_v21 = vpop.eup %2452  ;;  %2458 = vrcp.f32 %v1146_v55 }
 0x211   : > { %v1132_v39 = vsel %vm4742_vm1, %v3856_v21, 0.0 }
 0x212   : > { %1133 = vadd.xlane.f32.xlu2 %v1132_v39 }
 0x214   : > { %v2455_v58 = vpop.eup %2454 }
 0x215   : > { %v3860_v35 = vpop.eup %2456  ;;  %v3863_v52 = vmul.f32 %v2455_v58, %v3713_v31 }
 0x216   : > { %v2459_v36 = vpop.eup %2458  ;;  %v1149_v12 = vpop.xlane.xlu1 %1148  ;;  %v1168_v6 = vsel %vm4742_vm1, %v3860_v35, 0.0 }
 0x217   : > { %v3866_v62 = vmul.f32 %v2459_v36, %v3718_v43  ;;  %2460 = vrcp.f32 %v1149_v12  ;;  %v1092_v23 = vpop.xlane.xlu0 %1091 }
 0x218   : > { %2462 = vrcp.f32 %v1092_v23 }
 0x21a   : > { %1169 = vadd.xlane.f32.xlu2 %v1168_v6 }
 0x21c   : > { %v1152_v48 = vpop.xlane.xlu2 %1151 }
 0x21d   : > { %v2461_v14 = vpop.eup %2460  ;;  %2464 = vrcp.f32 %v1152_v48 }
 0x21e   : > { %v2463_v46 = vpop.eup %2462  ;;  %v3871_v34 = vmul.f32 %v2461_v14, %v3726_v59  ;;  %v1095_v31 = vpop.xlane.xlu1 %1094 }
 0x21f   : > { %v3874_v0 = vmul.f32 %v2463_v46, %v3724_v22  ;;  %2466 = vrcp.f32 %v1095_v31 }
 0x223   : > { %v2465_v43 = vpop.eup %2464 }
 0x224   : > { %v3877_v55 = vmul.f32 %v2465_v43, %v3734_v26  ;;  %v1155_v39 = vpop.xlane.xlu0 %1154 }
 0x225   : > { %v2467_v58 = vpop.eup %2466  ;;  %v1098_v36 = vpop.xlane.xlu2 %1097  ;;  %2468 = vrcp.f32 %v1155_v39 }
 0x226   : > { %v3880_v12 = vmul.f32 %v2467_v58, %v3738_v49  ;;  %2470 = vrcp.f32 %v1098_v36 }
 0x22b   : > { %v2469_v23 = vpop.eup %2468 }
 0x22c   : > { %v2471_v59 = vpop.eup %2470  ;;  %v3883_v6 = vmul.f32 %v2469_v23, %v3744_v54  ;;  %v1158_v22 = vpop.xlane.xlu1 %1157 }
 0x22d   : > { %v3886_v48 = vmul.f32 %v2471_v59, %v3746_v38  ;;  %2472 = vrcp.f32 %v1158_v22  ;;  %v1101_v26 = vpop.xlane.xlu0 %1100 }
 0x22e   : > { %2474 = vrcp.f32 %v1101_v26 }
 0x233   : > { %v2473_v14 = vpop.eup %2472 }
 0x234   : > { %v2475_v46 = vpop.eup %2474  ;;  %v3889_v31 = vmul.f32 %v2473_v14, %v3754_v61  ;;  %v1104_v49 = vpop.xlane.xlu1 %1103 }
 0x235   : > { %v3892_v43 = vmul.f32 %v2475_v46, %v3756_v13  ;;  %2476 = vrcp.f32 %v1104_v49  ;;  %v1161_v39 = vpop.xlane.xlu2 %1160 }
 0x236   : > { %4841 = vst [vmem:[#allocation87_spill] sm:$0xff] %v3889_v31  ;;  %2478 = vrcp.f32 %v1161_v39 }
 0x23b   : > { %v2477_v54 = vpop.eup %2476 }
 0x23c   : > { %v2479_v58 = vpop.eup %2478  ;;  %v3895_v38 = vmul.f32 %v2477_v54, %v3764_v47  ;;  %v1164_v36 = vpop.xlane.xlu0 %1163 }
 0x23d   : > { %v3898_v23 = vmul.f32 %v2479_v58, %v3766_v45  ;;  %v1107_v59 = vpop.xlane.xlu2 %1106  ;;  %2480 = vrcp.f32 %v1164_v36 }
 0x23e   : > { %2482 = vrcp.f32 %v1107_v59 }
 0x23f   : > { %4842 = vst [vmem:[#allocation88_spill] sm:$0xff] %v3898_v23 }
 0x243   : > { %v2481_v61 = vpop.eup %2480 }
 0x244   : > { %v2483_v22 = vpop.eup %2482  ;;  %v3901_v13 = vmul.f32 %v2481_v61, %v3775_v15  ;;  %v1110_v14 = vpop.xlane.xlu0 %1109 }
 0x245   : > { %v3904_v26 = vmul.f32 %v2483_v22, %v3777_v57  ;;  %2484 = vrcp.f32 %v1110_v14 }
 0x246   : > { %4843 = vst [vmem:[#allocation89_spill] sm:$0xff] %v3901_v13 }
 0x24b   : > { %v2485_v46 = vpop.eup %2484 }
 0x24c   : > { %v1113_v47 = vpop.xlane.xlu1 %1112  ;;  %v3907_v49 = vmul.f32 %v2485_v46, %v3786_v7 }
 0x24d   : > { %2486 = vrcp.f32 %v1113_v47 }
 0x253   : > { %v2487_v45 = vpop.eup %2486 }
 0x254   : > { %v3910_v39 = vmul.f32 %v2487_v45, %v3791_v32  ;;  %v1116_v54 = vpop.xlane.xlu2 %1115 }
 0x255   : > { %2488 = vrcp.f32 %v1116_v54 }
 0x25b   : > { %v2489_v58 = vpop.eup %2488 }
 0x25c   : > { %v1119_v15 = vpop.xlane.xlu0 %1118  ;;  %v3913_v36 = vmul.f32 %v2489_v58, %v3797_v56 }
 0x25d   : > { %2490 = vrcp.f32 %v1119_v15 }
 0x25e   : > { %v1122_v57 = vpop.xlane.xlu1 %1121 }
 0x25f   : > { %2492 = vrcp.f32 %v1122_v57 }
 0x263   : > { %v2491_v59 = vpop.eup %2490 }
 0x264   : > { %v3916_v61 = vmul.f32 %v2491_v59, %v3801_v8 }
 0x265   : > { %v2493_v7 = vpop.eup %2492 }
 0x266   : > { %v3919_v22 = vmul.f32 %v2493_v7, %v3806_v24  ;;  %v1125_v32 = vpop.xlane.xlu2 %1124 }
 0x267   : > { %2494 = vrcp.f32 %v1125_v32 }
 0x26d   : > { %v2495_v14 = vpop.eup %2494 }
 0x26e   : > { %v3922_v46 = vmul.f32 %v2495_v14, %v3811_v33  ;;  %v1128_v47 = vpop.xlane.xlu0 %1127 }
 0x26f   : > { %2496 = vrcp.f32 %v1128_v47 }
 0x275   : > { %v2497_v56 = vpop.eup %2496 }
 0x276   : > { %v3925_v45 = vmul.f32 %v2497_v56, %v3820_v16  ;;  %v1131_v54 = vpop.xlane.xlu1 %1130  ;;  %v1173_v58 = vpop.xlane.xlu0 %1172 }
 0x277   : > { %2498 = vrcp.f32 %v1131_v54 }
 0x278   : > { %2500 = vrcp.f32 %v1173_v58 }
 0x27d   : > { %v2499_v8 = vpop.eup %2498 }
 0x27e   : > { %v2501_v15 = vpop.eup %2500  ;;  %v3928_v24 = vmul.f32 %v2499_v8, %v3831_v29  ;;  %v1167_v57 = vpop.xlane.xlu1 %1166 }
 0x27f   : > { %v3931_v59 = vmul.f32 %v2501_v15, %v3829_v1  ;;  %2502 = vrcp.f32 %v1167_v57 }
 0x281   : > { %4844 = vst [vmem:[#allocation90_spill] sm:$0xff] %v3931_v59 }
 0x285   : > { %v1134_v33 = vpop.xlane.xlu2 %1133  ;;  %v2503_v7 = vpop.eup %2502 }
 0x286   : > { %2504 = vrcp.f32 %v1134_v33  ;;  %v3934_v16 = vmul.f32 %v2503_v7, %v3844_v19 }
 0x288   : > { %4845 = vst [vmem:[#allocation91_spill] sm:$0xff] %v3934_v16 }
 0x28c   : > { %v2505_v32 = vpop.eup %2504 }
 0x28d   : > { %v3937_v14 = vmul.f32 %v2505_v32, %v3856_v21  ;;  %v1170_v47 = vpop.xlane.xlu2 %1169 }
 0x28e   : > { %2506 = vrcp.f32 %v1170_v47 }
 0x293   : > { %1241 = sbr.rel (%p2043_p4) target bundleno = 696 (0x2b8), region = 44 }
 0x294   : > { %v2507_v56 = vpop.eup %2506 }
 0x295   : > { %v3940_v29 = vmul.f32 %v2507_v56, %v3860_v35 }
 0x297   : > { %4846 = vst [vmem:[#allocation92_spill] sm:$0xff] %v3940_v29 }
 0x298   : > { %1242 = vst.msk [vmem:[%s2860_s30] sm:$0xff] %vm4742_vm1, %v3817_v63 }
 0x299   : > { %1243 = vst.msk [vmem:[%s2860_s30 + $0x8] sm:$0xff] %vm4742_vm1, %v3841_v5 }
 0x29a   : > { %1244 = vst.msk [vmem:[%s2860_s30 + $0x10] sm:$0xff] %vm4742_vm1, %v3851_v30 }
 0x29b   : > { %1245 = vst.msk [vmem:[%s2860_s30 + $0x18] sm:$0xff] %vm4742_vm1, %v3863_v52 }
 0x29c   : > { %1246 = vst.msk [vmem:[%s2860_s30 + $0x20] sm:$0xff] %vm4742_vm1, %v3874_v0 }
 0x29d   : > { %1247 = vst.msk [vmem:[%s2860_s30 + $0x28] sm:$0xff] %vm4742_vm1, %v3880_v12 }
 0x29e   : > { %1248 = vst.msk [vmem:[%s2860_s30 + $0x30] sm:$0xff] %vm4742_vm1, %v3886_v48 }
 0x29f   : > { %1249 = vst.msk [vmem:[%s2860_s30 + $0x38] sm:$0xff] %vm4742_vm1, %v3892_v43 }
 0x2a0   : > { %1250 = vst.msk [vmem:[%s2860_s30 + $0x40] sm:$0xff] %vm4742_vm1, %v3895_v38 }
 0x2a1   : > { %1251 = vst.msk [vmem:[%s2860_s30 + $0x48] sm:$0xff] %vm4742_vm1, %v3904_v26 }
 0x2a2   : > { %1252 = vst.msk [vmem:[%s2860_s30 + $0x50] sm:$0xff] %vm4742_vm1, %v3907_v49 }
 0x2a3   : > { %1253 = vst.msk [vmem:[%s2860_s30 + $0x58] sm:$0xff] %vm4742_vm1, %v3910_v39 }
 0x2a4   : > { %1254 = vst.msk [vmem:[%s2860_s30 + $0x60] sm:$0xff] %vm4742_vm1, %v3913_v36 }
 0x2a5   : > { %1255 = vst.msk [vmem:[%s2860_s30 + $0x68] sm:$0xff] %vm4742_vm1, %v3916_v61 }
 0x2a6   : > { %1256 = vst.msk [vmem:[%s2860_s30 + $0x70] sm:$0xff] %vm4742_vm1, %v3919_v22 }
 0x2a7   : > { %1257 = vst.msk [vmem:[%s2860_s30 + $0x78] sm:$0xff] %vm4742_vm1, %v3922_v46 }
 0x2a8   : > { %1258 = vst.msk [vmem:[%s2860_s30 + $0x80] sm:$0xff] %vm4742_vm1, %v3925_v45 }
 0x2a9   : > { %1259 = vst.msk [vmem:[%s2860_s30 + $0x88] sm:$0xff] %vm4742_vm1, %v3928_v24 }
 0x2aa   : > { %1260 = vst.msk [vmem:[%s2860_s30 + $0x90] sm:$0xff] %vm4742_vm1, %v3937_v14 }
 0x2ab   : > { %1261 = vst.msk [vmem:[%s2860_s30 + $0x98] sm:$0xff] %vm4742_vm1, %v3827_v17 }
 0x2ac   : > { %1262 = vst.msk [vmem:[%s2860_s30 + $0xa0] sm:$0xff] %vm4742_vm1, %v3838_v25 }
 0x2ad   : > { %1263 = vst.msk [vmem:[%s2860_s30 + $0xa8] sm:$0xff] %vm4742_vm1, %v3854_v53 }
 0x2ae   : > { %1264 = vst.msk [vmem:[%s2860_s30 + $0xb0] sm:$0xff] %vm4742_vm1, %v3866_v62 }
 0x2af   : > { %1265 = vst.msk [vmem:[%s2860_s30 + $0xb8] sm:$0xff] %vm4742_vm1, %v3871_v34 }
 0x2b0   : > { %1266 = vst.msk [vmem:[%s2860_s30 + $0xc0] sm:$0xff] %vm4742_vm1, %v3877_v55 }
 0x2b1   : > { %1267 = vst.msk [vmem:[%s2860_s30 + $0xc8] sm:$0xff] %vm4742_vm1, %v3883_v6 }
 0x2b2   : > { %1268 = vst.msk [vmem:[%s2860_s30 + $0xd0] sm:$0xff] %vm4742_vm1, %v3889_v31 }
 0x2b3   : > { %1269 = vst.msk [vmem:[%s2860_s30 + $0xd8] sm:$0xff] %vm4742_vm1, %v3898_v23 }
 0x2b4   : > { %1270 = vst.msk [vmem:[%s2860_s30 + $0xe0] sm:$0xff] %vm4742_vm1, %v3901_v13 }
 0x2b5   : > { %1271 = vst.msk [vmem:[%s2860_s30 + $0xe8] sm:$0xff] %vm4742_vm1, %v3934_v16 }
 0x2b6   : > { %1272 = vst.msk [vmem:[%s2860_s30 + $0xf0] sm:$0xff] %vm4742_vm1, %v3940_v29 }
 0x2b7   : > { %1273 = vst.msk [vmem:[%s2860_s30 + $0xf8] sm:$0xff] %vm4742_vm1, %v3931_v59 }
 0x2b8 PF: > { %2215 = vmatpush.lsf.msk.msk.msrb.mxu2 %vm414_vm15, %v3922_v46  ;;  %2231 = vmatpush.lsf.msk.msk.msrb.mxu3 %vm4755_vm8, %v3931_v59  ;;  %v4856_v1 = vld [vmem:[#allocation62_spill] sm:$0xff]  ;;  %v4857_v19 = vld [vmem:[#allocation47_spill] sm:$0xff]  ;;  %v4859_v21 = vld [vmem:[#allocation56_spill] sm:$0xff]  ;;  %v1289_v41 = vsel %vm414_vm15, %v3922_v46, 0.0  ;;  %v1291_v4 = vsel %vm416_vm14, %v3928_v24, 0.0  ;;  %v1292_v10 = vsel %vm417_vm12, %v3937_v14, 0.0 }
 0x2b9   : > { %v4861_v35 = vld [vmem:[#allocation39_spill] sm:$0xff]  ;;  %v4863_v54 = vld [vmem:[#allocation57_spill] sm:$0xff]  ;;  %v4867_v8 = vld [vmem:[#allocation50_spill] sm:$0xff]  ;;  %p1546_p5 = scmp.lt.s32.totalorder (%p2785_p11), %s2925_s22, 2 }
 0x2ba   : > { %2044 = vmatpush.msk.msra.mxu2 %vm414_vm15, %v3453_v28  ;;  %2060 = vmatpush.msk.msra.mxu3 %vm4755_vm8, %v3393_v44  ;;  %v4848_v28 = vld [vmem:[#allocation58_spill] sm:$0xff]  ;;  %v4854_v44 = vld [vmem:[#allocation45_spill] sm:$0xff]  ;;  %v4871_v57 = vld [vmem:[#allocation52_spill] sm:$0xff] }
 0x2bb   : > { %vm4855_vm1 = vcmp.lt.s32.totalorder %v4854_v44, 600  ;;  %v4865_v58 = vld [vmem:[#allocation41_spill] sm:$0xff]  ;;  %v4873_v33 = vld [vmem:[#allocation35_spill] sm:$0xff]  ;;  %v4875_v7 = vld [vmem:[#allocation44_spill] sm:$0xff] }
 0x2bc   : > { %2216 = vmatpush.lsf.msk.msk.msrb.mxu2 %vm413_vm10, %v3919_v22  ;;  %2232 = vmatpush.lsf.msk.msk.msrb.mxu3 %vm429_vm6, %v3940_v29  ;;  %v4869_v15 = vld [vmem:[#allocation33_spill] sm:$0xff]  ;;  %v4877_v32 = vld [vmem:[#allocation27_spill] sm:$0xff]  ;;  %v4879_v47 = vld [vmem:[#allocation46_spill] sm:$0xff] }
 0x2bd   : > { %v4881_v56 = vld [vmem:[#allocation29_spill] sm:$0xff]  ;;  %v4916_v59 = vld [vmem:[#allocation16_spill] sm:$0xff]  ;;  %v4918_v29 = vld [vmem:[#allocation82_spill] sm:$0xff] }
 0x2be   : > { %2045 = vmatpush.msk.msra.mxu2 %vm413_vm10, %v3436_v2  ;;  %2061 = vmatpush.msk.msra.mxu3 %vm429_vm6, %v3359_v40  ;;  %v4851_v2 = vld [vmem:[#allocation66_spill] sm:$0xff]  ;;  %v4853_v40 = vld [vmem:[#allocation61_spill] sm:$0xff] }
 0x2bf   : > { %v5036_v18 = vld [vmem:[#allocation90_spill] sm:$0xff] }
 0x2c0   : > { %2217 = vmatpush.lsf.msk.msk.msrb.mxu2 %vm412_vm13, %v3916_v61  ;;  %2233 = vmatpush.lsf.msk.msk.msrb.mxu3 %vm428_vm4, %v3934_v16  ;;  %v4923_v16 = vld [vmem:[#allocation10_spill] sm:$0xff] }
 0x2c2   : > { %2046 = vmatpush.msk.msra.mxu2 %vm412_vm13, %v3419_v3  ;;  %2062 = vmatpush.msk.msra.mxu3 %vm428_vm4, %v3325_v37  ;;  %v4847_v3 = vld [vmem:[#allocation69_spill] sm:$0xff] }
 0x2c3   : > { %v4852_v37 = vld [vmem:[#allocation53_spill] sm:$0xff] }
 0x2c4   : > { %2218 = vmatpush.lsf.msk.msk.msrb.mxu2 %vm411_vm11, %v3913_v36  ;;  %2234 = vmatpush.lsf.msk.msk.msrb.mxu3 %vm427_vm2, %v3901_v13  ;;  %v4925_v13 = vld [vmem:[#allocation79_spill] sm:$0xff] }
 0x2c6   : > { %2047 = vmatpush.msk.msra.mxu2 %vm411_vm11, %v3389_v9  ;;  %2063 = vmatpush.msk.msra.mxu3 %vm427_vm2, %v3291_v27  ;;  %v4849_v9 = vld [vmem:[#allocation65_spill] sm:$0xff]  ;;  %v4850_v27 = vld [vmem:[#allocation51_spill] sm:$0xff] }
 0x2c8   : > { %2219 = vmatpush.lsf.msk.msk.msrb.mxu2 %vm4746_vm9, %v3910_v39  ;;  %2235 = vmatpush.lsf.msk.msk.msrb.mxu3 %vm4743_vm3, %v3898_v23  ;;  %v4929_v23 = vld [vmem:[#allocation76_spill] sm:$0xff] }
 0x2ca   : > { %2048 = vmatpush.msk.msra.mxu2 %vm4746_vm9, %v4847_v3  ;;  %2064 = vmatpush.msk.msra.mxu3 %vm4743_vm3, %v4848_v28  ;;  %vm4858_vm3 = vmmov %vm4855_vm1  ;;  %v4883_v3 = vld [vmem:[#allocation38_spill] sm:$0xff]  ;;  %v4885_v28 = vld [vmem:[#allocation21_spill] sm:$0xff] }
 0x2cc   : > { %2220 = vmatpush.lsf.msk.msk.msrb.mxu2 %vm4744_vm7, %v3907_v49  ;;  %2236 = vmatpush.lsf.msk.msk.msrb.mxu3 %vm4745_vm0, %v3889_v31  ;;  %v4930_v31 = vld [vmem:[#allocation71_spill] sm:$0xff] }
 0x2ce   : > { %2049 = vmatpush.msk.msra.mxu2 %vm4744_vm7, %v4851_v2  ;;  %2065 = vmatpush.msk.msra.mxu3 %vm4745_vm0, %v4852_v37  ;;  %vm4860_vm7 = vcmp.lt.s32.totalorder %v4859_v21, 600  ;;  %vm4862_vm0 = vcmp.lt.s32.totalorder %v4861_v35, 600  ;;  %v4887_v2 = vld [vmem:[#allocation40_spill] sm:$0xff]  ;;  %v4889_v37 = vld [vmem:[#allocation23_spill] sm:$0xff] }
 0x2cf   : > { %vm4864_vm9 = vmmov %vm4860_vm7 }
 0x2d0   : > { %2221 = vmatpush.lsf.msk.msk.msrb.mxu2 %vm4747_vm5, %v3904_v26  ;;  %2237 = vmatpush.lsf.msk.msk.msrb.mxu3 %vm4855_vm1, %v3883_v6  ;;  %vm4866_vm1 = vmmov %vm4862_vm0 }
 0x2d2   : > { %2050 = vmatpush.msk.msra.mxu2 %vm4747_vm5, %v4856_v1  ;;  %2066 = vmatpush.msk.msra.mxu3 %vm4858_vm3, %v4857_v19  ;;  %vm4868_vm5 = vcmp.lt.s32.totalorder %v4867_v8, 600  ;;  %vm4870_vm3 = vcmp.lt.s32.totalorder %v4869_v15, 600  ;;  %v4891_v1 = vld [vmem:[#allocation32_spill] sm:$0xff]  ;;  %v4893_v19 = vld [vmem:[#allocation15_spill] sm:$0xff] }
 0x2d4   : > { %2222 = vmatpush.lsf.msk.msk.msrb.mxu2 %vm4860_vm7, %v3895_v38  ;;  %2238 = vmatpush.lsf.msk.msk.msrb.mxu3 %vm4862_vm0, %v3877_v55  ;;  %vm4872_vm7 = vmmov %vm4868_vm5 }
 0x2d5   : > { %vm4874_vm0 = vmmov %vm4870_vm3 }
 0x2d6   : > { %2051 = vmatpush.msk.msra.mxu2 %vm4864_vm9, %v4863_v54  ;;  %2067 = vmatpush.msk.msra.mxu3 %vm4866_vm1, %v4865_v58  ;;  %vm4876_vm9 = vcmp.lt.s32.totalorder %v4875_v7, 600  ;;  %vm4878_vm1 = vcmp.lt.s32.totalorder %v4877_v32, 600  ;;  %v4895_v54 = vld [vmem:[#allocation34_spill] sm:$0xff]  ;;  %v4897_v58 = vld [vmem:[#allocation17_spill] sm:$0xff] }
 0x2d8   : > { %2223 = vmatpush.lsf.msk.msk.msrb.mxu2 %vm4868_vm5, %v3892_v43  ;;  %2239 = vmatpush.lsf.msk.msk.msrb.mxu3 %vm4870_vm3, %v3871_v34  ;;  %vm4880_vm5 = vmmov %vm4876_vm9 }
 0x2d9   : > { %vm4882_vm3 = vmmov %vm4878_vm1 }
 0x2da   : > { %2052 = vmatpush.msk.msra.mxu2 %vm4872_vm7, %v4871_v57  ;;  %2068 = vmatpush.msk.msra.mxu3 %vm4874_vm0, %v4873_v33  ;;  %vm4884_vm7 = vcmp.lt.s32.totalorder %v4883_v3, 600  ;;  %vm4886_vm0 = vcmp.lt.s32.totalorder %v4885_v28, 600  ;;  %v4899_v57 = vld [vmem:[#allocation26_spill] sm:$0xff]  ;;  %v4901_v33 = vld [vmem:[#allocation9_spill] sm:$0xff] }
 0x2dc   : > { %2224 = vmatpush.lsf.msk.msk.msrb.mxu2 %vm4876_vm9, %v3886_v48  ;;  %2240 = vmatpush.lsf.msk.msk.msrb.mxu3 %vm4878_vm1, %v3866_v62  ;;  %vm4888_vm9 = vmmov %vm4884_vm7 }
 0x2dd   : > { %vm4890_vm1 = vmmov %vm4886_vm0 }
 0x2de   : > { %2053 = vmatpush.msk.msra.mxu2 %vm4880_vm5, %v4879_v47  ;;  %2069 = vmatpush.msk.msra.mxu3 %vm4882_vm3, %v4881_v56  ;;  %vm4892_vm5 = vcmp.lt.s32.totalorder %v4891_v1, 600  ;;  %vm4894_vm3 = vcmp.lt.s32.totalorder %v4893_v19, 600  ;;  %v4903_v47 = vld [vmem:[#allocation28_spill] sm:$0xff]  ;;  %v4905_v56 = vld [vmem:[#allocation11_spill] sm:$0xff] }
 0x2e0   : > { %2225 = vmatpush.lsf.msk.msk.msrb.mxu2 %vm4884_vm7, %v3880_v12  ;;  %2241 = vmatpush.lsf.msk.msk.msrb.mxu3 %vm4886_vm0, %v3854_v53  ;;  %vm4896_vm7 = vmmov %vm4892_vm5 }
 0x2e1   : > { %vm4898_vm0 = vmmov %vm4894_vm3 }
 0x2e2   : > { %2054 = vmatpush.msk.msra.mxu2 %vm4888_vm9, %v4887_v2  ;;  %2070 = vmatpush.msk.msra.mxu3 %vm4890_vm1, %v4889_v37  ;;  %vm4900_vm9 = vcmp.lt.s32.totalorder %v4899_v57, 600  ;;  %vm4902_vm1 = vcmp.lt.s32.totalorder %v4901_v33, 600  ;;  %v4907_v2 = vld [vmem:[#allocation20_spill] sm:$0xff] }
 0x2e4   : > { %2226 = vmatpush.lsf.msk.msk.msrb.mxu2 %vm4892_vm5, %v3874_v0  ;;  %2242 = vmatpush.lsf.msk.msk.msrb.mxu3 %vm4894_vm3, %v3838_v25  ;;  %vm4904_vm5 = vmmov %vm4900_vm9 }
 0x2e5   : > { %vm4906_vm3 = vmmov %vm4902_vm1 }
 0x2e6   : > { %2055 = vmatpush.msk.msra.mxu2 %vm4896_vm7, %v4895_v54  ;;  %2071 = vmatpush.msk.msra.mxu3 %vm4898_vm0, %v4897_v58  ;;  %vm4908_vm7 = vcmp.lt.s32.totalorder %v4907_v2, 600  ;;  %v4910_v54 = vld [vmem:[#allocation22_spill] sm:$0xff]  ;;  %v4912_v58 = vld [vmem:[#allocation85_spill] sm:$0xff] }
 0x2e7   : > { %vm4911_vm0 = vmmov %vm4908_vm7 }
 0x2e8   : > { %2227 = vmatpush.lsf.msk.msk.msrb.mxu2 %vm4900_vm9, %v3863_v52  ;;  %2243 = vmatpush.lsf.msk.msk.msrb.mxu3 %vm4902_vm1, %v3827_v17 }
 0x2ea   : > { %2056 = vmatpush.msk.msra.mxu2 %vm4904_vm5, %v4903_v47  ;;  %2072 = vmatpush.msk.msra.mxu3 %vm4906_vm3, %v4905_v56  ;;  %v4913_v47 = vld [vmem:[#allocation14_spill] sm:$0xff] }
 0x2eb   : > { %vm4914_vm9 = vcmp.lt.s32.totalorder %v4913_v47, 600 }
 0x2ec   : > { %2228 = vmatpush.lsf.msk.msk.msrb.mxu2 %vm4908_vm7, %v3851_v30  ;;  %2244 = vmatpush.lsf.msk.msk.msrb.mxu3 %vm417_vm12, %v3937_v14  ;;  %vm4917_vm1 = vmmov %vm4914_vm9 }
 0x2ee   : > { %2057 = vmatpush.msk.msra.mxu2 %vm4911_vm0, %v4910_v54  ;;  %2073 = vmatpush.msk.msra.mxu3 %vm417_vm12, %v4912_v58  ;;  %v4919_v54 = vld [vmem:[#allocation8_spill] sm:$0xff]  ;;  %v4921_v58 = vld [vmem:[#allocation78_spill] sm:$0xff] }
 0x2ef   : > { %vm4920_vm5 = vcmp.lt.s32.totalorder %v4919_v54, 600  ;;  %vm4922_vm3 = vcmp.lt.s32.totalorder %v4921_v58, 600 }
 0x2f0   : > { %2229 = vmatpush.lsf.msk.msk.msrb.mxu2 %vm4914_vm9, %v3841_v5  ;;  %2245 = vmatpush.lsf.msk.msk.msrb.mxu3 %vm416_vm14, %v3928_v24  ;;  %vm4924_vm7 = vmmov %vm4920_vm5  ;;  %vm4936_vm9 = vcmp.lt.s32.totalorder %v3342_v11, 600 }
 0x2f1   : > { %vm4926_vm0 = vmmov %vm4922_vm3 }
 0x2f2   : > { %2058 = vmatpush.msk.msra.mxu2 %vm4917_vm1, %v4916_v59  ;;  %2074 = vmatpush.msk.msra.mxu3 %vm416_vm14, %v4918_v29  ;;  %v4927_v59 = vld [vmem:[#allocation77_spill] sm:$0xff]  ;;  %v4928_v29 = vld [vmem:[#allocation74_spill] sm:$0xff]  ;;  %vm4938_vm1 = vcmp.lt.s32.totalorder %v3243_v50, 600 }
 0x2f4   : > { %2230 = vmatpush.lsf.msk.msk.msrb.mxu2 %vm4920_vm5, %v3817_v63  ;;  %2246 = vmatpush.lsf.msk.msk.msrb.mxu3 %vm4922_vm3, %v3925_v45  ;;  %vm4940_vm5 = vcmp.lt.s32.totalorder %v4849_v9, 600  ;;  %vm4942_vm3 = vcmp.lt.s32.totalorder %v4850_v27, 600 }
 0x2f5   : > { %2187 = vllmr.1.mxu2  ;;  %2212 = vllmr.1.mxu3 }
 0x2f6   : > { %2059 = vmatpush.msk.msra.mxu2 %vm4924_vm7, %v4923_v16  ;;  %2075 = vmatpush.msk.msra.mxu3 %vm4926_vm0, %v4925_v13  ;;  %v4931_v16 = vld [vmem:[#allocation75_spill] sm:$0xff]  ;;  %v4932_v13 = vld [vmem:[#allocation68_spill] sm:$0xff]  ;;  %vm4944_vm7 = vcmp.lt.s32.totalorder %v4853_v40, 600  ;;  %vm4946_vm0 = vcmp.lt.s32.totalorder %v4854_v44, 600 }
 0x316   : > { %2188 = vmatmul.lmr.bf16.vlgmr.msra.gmra.1.mxu2  ;;  %2213 = vmatmul.lmr.bf16.vlgmr.msra.gmra.1.mxu3 }
 0x317   : > { %2076 = vmatpush.msk.msra.mxu2 %vm414_vm15, %v4927_v59  ;;  %2092 = vmatpush.msk.msra.mxu3 %vm4755_vm8, %v4928_v29  ;;  %v4933_v59 = vld [vmem:[#allocation73_spill] sm:$0xff]  ;;  %v4934_v29 = vld [vmem:[#allocation64_spill] sm:$0xff] }
 0x319   : > { %2077 = vmatpush.msk.msra.mxu2 %vm413_vm10, %v4929_v23  ;;  %2093 = vmatpush.msk.msra.mxu3 %vm429_vm6, %v4930_v31  ;;  %v4935_v23 = vld [vmem:[#allocation70_spill] sm:$0xff]  ;;  %v4937_v31 = vld [vmem:[#allocation60_spill] sm:$0xff] }
 0x31b   : > { %2078 = vmatpush.msk.msra.mxu2 %vm412_vm13, %v4931_v16  ;;  %2094 = vmatpush.msk.msra.mxu3 %vm428_vm4, %v4932_v13  ;;  %v4939_v16 = vld [vmem:[#allocation67_spill] sm:$0xff] }
 0x31c   : > { %v4941_v13 = vld [vmem:[#allocation55_spill] sm:$0xff] }
 0x31d   : > { %2079 = vmatpush.msk.msra.mxu2 %vm411_vm11, %v4933_v59  ;;  %2095 = vmatpush.msk.msra.mxu3 %vm427_vm2, %v4934_v29  ;;  %v4943_v59 = vld [vmem:[#allocation63_spill] sm:$0xff]  ;;  %v4945_v29 = vld [vmem:[#allocation49_spill] sm:$0xff] }
 0x31f   : > { %2080 = vmatpush.msk.msra.mxu2 %vm4936_vm9, %v4935_v23  ;;  %2096 = vmatpush.msk.msra.mxu3 %vm4938_vm1, %v4937_v31  ;;  %v4947_v23 = vld [vmem:[#allocation59_spill] sm:$0xff]  ;;  %vm4948_vm9 = vcmp.lt.s32.totalorder %v4859_v21, 600  ;;  %vm4950_vm1 = vcmp.lt.s32.totalorder %v4861_v35, 600 }
 0x320   : > { %v4949_v31 = vld [vmem:[#allocation43_spill] sm:$0xff] }
 0x321   : > { %2081 = vmatpush.msk.msra.mxu2 %vm4940_vm5, %v4939_v16  ;;  %2097 = vmatpush.msk.msra.mxu3 %vm4942_vm3, %v4941_v13  ;;  %v4951_v16 = vld [vmem:[#allocation54_spill] sm:$0xff]  ;;  %vm4952_vm5 = vcmp.lt.s32.totalorder %v4867_v8, 600  ;;  %v4953_v13 = vld [vmem:[#allocation37_spill] sm:$0xff]  ;;  %vm4954_vm3 = vcmp.lt.s32.totalorder %v4869_v15, 600 }
 0x323   : > { %2082 = vmatpush.msk.msra.mxu2 %vm4944_vm7, %v4943_v59  ;;  %2098 = vmatpush.msk.msra.mxu3 %vm4946_vm0, %v4945_v29  ;;  %v4955_v59 = vld [vmem:[#allocation48_spill] sm:$0xff]  ;;  %vm4956_vm7 = vcmp.lt.s32.totalorder %v4875_v7, 600  ;;  %v4957_v29 = vld [vmem:[#allocation31_spill] sm:$0xff]  ;;  %vm4958_vm0 = vcmp.lt.s32.totalorder %v4877_v32, 600 }
 0x325   : > { %2083 = vmatpush.msk.msra.mxu2 %vm4948_vm9, %v4947_v23  ;;  %2099 = vmatpush.msk.msra.mxu3 %vm4950_vm1, %v4949_v31  ;;  %v4959_v23 = vld [vmem:[#allocation42_spill] sm:$0xff]  ;;  %vm4960_vm9 = vcmp.lt.s32.totalorder %v4883_v3, 600  ;;  %v4961_v31 = vld [vmem:[#allocation25_spill] sm:$0xff]  ;;  %vm4962_vm1 = vcmp.lt.s32.totalorder %v4885_v28, 600 }
 0x327   : > { %2084 = vmatpush.msk.msra.mxu2 %vm4952_vm5, %v4951_v16  ;;  %2100 = vmatpush.msk.msra.mxu3 %vm4954_vm3, %v4953_v13  ;;  %v4963_v16 = vld [vmem:[#allocation36_spill] sm:$0xff]  ;;  %vm4964_vm5 = vcmp.lt.s32.totalorder %v4891_v1, 600  ;;  %v4965_v13 = vld [vmem:[#allocation19_spill] sm:$0xff]  ;;  %vm4966_vm3 = vcmp.lt.s32.totalorder %v4893_v19, 600 }
 0x329   : > { %2085 = vmatpush.msk.msra.mxu2 %vm4956_vm7, %v4955_v59  ;;  %2101 = vmatpush.msk.msra.mxu3 %vm4958_vm0, %v4957_v29  ;;  %v4967_v59 = vld [vmem:[#allocation30_spill] sm:$0xff]  ;;  %vm4968_vm7 = vcmp.lt.s32.totalorder %v4899_v57, 600  ;;  %v4969_v29 = vld [vmem:[#allocation13_spill] sm:$0xff]  ;;  %vm4970_vm0 = vcmp.lt.s32.totalorder %v4901_v33, 600 }
 0x32b   : > { %2086 = vmatpush.msk.msra.mxu2 %vm4960_vm9, %v4959_v23  ;;  %2102 = vmatpush.msk.msra.mxu3 %vm4962_vm1, %v4961_v31  ;;  %v4971_v23 = vld [vmem:[#allocation24_spill] sm:$0xff]  ;;  %vm4972_vm9 = vcmp.lt.s32.totalorder %v4907_v2, 600  ;;  %v4973_v31 = vld [vmem:[#allocation86_spill] sm:$0xff]  ;;  %vm4975_vm1 = vcmp.lt.s32.totalorder %v4913_v47, 600 }
 0x32d   : > { %2087 = vmatpush.msk.msra.mxu2 %vm4964_vm5, %v4963_v16  ;;  %2103 = vmatpush.msk.msra.mxu3 %vm4966_vm3, %v4965_v13  ;;  %v4974_v16 = vld [vmem:[#allocation18_spill] sm:$0xff]  ;;  %v4976_v13 = vld [vmem:[#allocation83_spill] sm:$0xff]  ;;  %vm4978_vm5 = vcmp.lt.s32.totalorder %v4919_v54, 600  ;;  %vm4980_vm3 = vcmp.lt.s32.totalorder %v4921_v58, 600 }
 0x32f   : > { %2088 = vmatpush.msk.msra.mxu2 %vm4968_vm7, %v4967_v59  ;;  %2104 = vmatpush.msk.msra.mxu3 %vm4970_vm0, %v4969_v29  ;;  %v4977_v59 = vld [vmem:[#allocation12_spill] sm:$0xff]  ;;  %vm4981_vm7 = vmmov %vm4978_vm5 }
 0x330   : > { %v4979_v29 = vld [vmem:[#allocation80_spill] sm:$0xff]  ;;  %vm4982_vm0 = vmmov %vm4975_vm1 }
 0x331   : > { %2089 = vmatpush.msk.msra.mxu2 %vm4972_vm9, %v4971_v23  ;;  %2105 = vmatpush.msk.msra.mxu3 %vm417_vm12, %v4973_v31  ;;  %v1274_v23 = vsel %vm4981_vm7, %v3817_v63, 0.0  ;;  %v1275_v31 = vsel %vm4982_vm0, %v3841_v5, 0.0  ;;  %vm4987_vm7 = vcmp.lt.s32.totalorder %v4891_v1, 600  ;;  %vm5014_vm12 = vcmp.lt.s32.totalorder %v4885_v28, 600 }
 0x332   : > { %v1278_v63 = vsel %vm4987_vm7, %v3874_v0, 0.0  ;;  %v1295_v14 = vsel %vm5014_vm12, %v3854_v53, 0.0 }
 0x333   : > { %2090 = vmatpush.msk.msra.mxu2 %vm4975_vm1, %v4974_v16  ;;  %2106 = vmatpush.msk.msra.mxu3 %vm416_vm14, %v4976_v13  ;;  %v1276_v16 = vsel %vm4972_vm9, %v3851_v30, 0.0  ;;  %vm4983_vm1 = vcmask 64512   ;;  %vm4989_vm9 = vcmp.lt.s32.totalorder %v4883_v3, 600  ;;  %vm5013_vm14 = vcmp.lt.s32.totalorder %v4893_v19, 600 }
 0x334   : > { %v1457_v13 = vsel %vm4983_vm1, %v1274_v23, 0.0  ;;  %vm4986_vm8 = vmmov %vm4983_vm1  ;;  %v1279_v30 = vsel %vm4989_vm9, %v3880_v12, 0.0  ;;  %v1294_v24 = vsel %vm5013_vm14, %v3838_v25, 0.0 }
 0x335   : > { %2091 = vmatpush.msk.msra.mxu2 %vm4978_vm5, %v4977_v59  ;;  %2107 = vmatpush.msk.msra.mxu3 %vm4980_vm3, %v4979_v29  ;;  %vm4984_vm5 = vmmov %vm4983_vm1  ;;  %vm4985_vm3 = vcmp.lt.s32.totalorder %v4899_v57, 600  ;;  %v1460_v54 = vsel %vm4986_vm8, %v1276_v16, 0.0 }
 0x336   : > { %2189 = vmatmul.lmr.bf16.vlgmr.msra.gmra.1.mxu2  ;;  %2214 = vmatmul.lmr.bf16.vlgmr.msra.gmra.1.mxu3  ;;  %v1458_v59 = vsel %vm4984_vm5, %v1275_v31, 0.0  ;;  %v1277_v29 = vsel %vm4985_vm3, %v3863_v52, 0.0  ;;  %vm4988_vm0 = vmmov %vm4983_vm1  ;;  %vm4991_vm5 = vcmp.lt.s32.totalorder %v4875_v7, 600  ;;  %vm4993_vm3 = vcmp.lt.s32.totalorder %v4867_v8, 600 }
 0x337   : > { %v1459_v20 = vadd.f32 %v1458_v59, %v1457_v13  ;;  %v1462_v47 = vsel %vm4988_vm0, %v1277_v29, 0.0  ;;  %vm4990_vm1 = vmmov %vm4988_vm0  ;;  %v1280_v52 = vsel %vm4991_vm5, %v3886_v48, 0.0 }
 0x338   : > { %v1464_v23 = vsel %vm4990_vm1, %v1278_v63, 0.0  ;;  %vm4992_vm8 = vmmov %vm4988_vm0 }
 0x339   : > { %v1461_v5 = vadd.f32 %v1460_v54, %v1459_v20  ;;  %v1466_v31 = vsel %vm4992_vm8, %v1279_v30, 0.0  ;;  %v1281_v20 = vsel %vm4993_vm3, %v3892_v43, 0.0  ;;  %vm4994_vm7 = vmmov %vm4988_vm0  ;;  %vm4995_vm0 = vcmp.lt.s32.totalorder %v4859_v21, 600 }
 0x33a   : > { %v1468_v1 = vsel %vm4994_vm7, %v1280_v52, 0.0  ;;  %v1282_v12 = vsel %vm4995_vm0, %v3895_v38, 0.0  ;;  %vm4996_vm9 = vmmov %vm4990_vm1  ;;  %vm4997_vm1 = vcmp.lt.s32.totalorder %v4853_v40, 600  ;;  %vm4999_vm8 = vcmp.lt.s32.totalorder %v4849_v9, 600 }
 0x33b   : > { %v1463_v2 = vadd.f32 %v1462_v47, %v1461_v5  ;;  %v1470_v16 = vsel %vm4996_vm9, %v1281_v20, 0.0  ;;  %v1283_v48 = vsel %vm4997_vm1, %v3904_v26, 0.0  ;;  %vm4998_vm5 = vmmov %vm4994_vm7  ;;  %v1284_v43 = vsel %vm4999_vm8, %v3907_v49, 0.0 }
 0x33c   : > { %v1472_v13 = vsel %vm4998_vm5, %v1282_v12, 0.0  ;;  %vm5000_vm3 = vmmov %vm4998_vm5  ;;  %vm5001_vm7 = vcmp.lt.s32.totalorder %v3342_v11, 600  ;;  %v1286_v26 = vsel %vm411_vm11, %v3913_v36, 0.0  ;;  %v1287_v49 = vsel %vm412_vm13, %v3916_v61, 0.0 }
 0x33d   : > { %v1465_v57 = vadd.f32 %v1464_v23, %v1463_v2  ;;  %v1474_v59 = vsel %vm5000_vm3, %v1283_v48, 0.0  ;;  %v1285_v38 = vsel %vm5001_vm7, %v3910_v39, 0.0  ;;  %vm5002_vm0 = vmmov %vm5000_vm3  ;;  %v1288_v11 = vsel %vm413_vm10, %v3919_v22, 0.0  ;;  %v5027_v48 = vld [vmem:[#allocation88_spill] sm:$0xff] }
 0x33e   : > { %v1476_v29 = vsel %vm5002_vm0, %v1284_v43, 0.0  ;;  %vm5003_vm9 = vmmov %vm5002_vm0  ;;  %vm5007_vm13 = vcmp.lt.s32.totalorder %v4921_v58, 600  ;;  %vm5011_vm3 = vcmp.lt.s32.totalorder %v4901_v33, 600 }
 0x33f   : > { %v1467_v0 = vadd.f32 %v1466_v31, %v1465_v57  ;;  %v1478_v54 = vsel %vm5003_vm9, %v1285_v38, 0.0  ;;  %vm5004_vm1 = vmmov %vm5002_vm0  ;;  %v1290_v42 = vsel %vm5007_vm13, %v3925_v45, 0.0  ;;  %v1293_v45 = vsel %vm5011_vm3, %v3827_v17, 0.0 }
 0x340   : > { %v1480_v63 = vsel %vm5004_vm1, %v1286_v26, 0.0  ;;  %vm5005_vm5 = vmmov %vm5002_vm0  ;;  %v1494_v57 = vsel %vm5002_vm0, %v1293_v45, 0.0  ;;  %vm5016_vm1 = vcmp.lt.s32.totalorder %v4877_v32, 600 }
 0x341   : > { %v1469_v3 = vadd.f32 %v1468_v1, %v1467_v0  ;;  %v1482_v5 = vsel %vm5005_vm5, %v1287_v49, 0.0  ;;  %vm5006_vm11 = vmmov %vm5002_vm0  ;;  %v1296_v17 = vsel %vm5016_vm1, %v3866_v62, 0.0 }
 0x342   : > { %v1484_v47 = vsel %vm5006_vm11, %v1288_v11, 0.0  ;;  %vm5008_vm8 = vmmov %vm5002_vm0  ;;  %vm5018_vm11 = vcmp.lt.s32.totalorder %v4869_v15, 600 }
 0x343   : > { %v1471_v7 = vadd.f32 %v1470_v16, %v1469_v3  ;;  %v1486_v30 = vsel %vm5008_vm8, %v1289_v41, 0.0  ;;  %vm5009_vm10 = vmmov %vm5002_vm0  ;;  %v1297_v25 = vsel %vm5018_vm11, %v3871_v34, 0.0  ;;  %vm5020_vm8 = vcmp.lt.s32.totalorder %v4861_v35, 600  ;;  %v5024_v3 = vld [vmem:[#allocation87_spill] sm:$0xff] }
 0x344   : > { %v1488_v2 = vsel %vm5009_vm10, %v1290_v42, 0.0  ;;  %vm5010_vm15 = vmmov %vm5002_vm0  ;;  %v1298_v53 = vsel %vm5020_vm8, %v3877_v55, 0.0  ;;  %v1306_v42 = vld [vmem:[%s2858_s28] sm:$0xff] }
 0x345   : > { %v1473_v8 = vadd.f32 %v1472_v13, %v1471_v7  ;;  %v1490_v23 = vsel %vm5010_vm15, %v1291_v4, 0.0  ;;  %vm5012_vm7 = vmmov %vm5002_vm0  ;;  %vm5022_vm15 = vcmp.lt.s32.totalorder %v4854_v44, 600  ;;  %v5030_v13 = vld [vmem:[#allocation89_spill] sm:$0xff] }
 0x346   : > { %v1492_v52 = vsel %vm5012_vm7, %v1292_v10, 0.0  ;;  %vm5015_vm9 = vmmov %vm5002_vm0  ;;  %v1299_v62 = vsel %vm5022_vm15, %v3883_v6, 0.0  ;;  %vm5025_vm7 = vcmp.lt.s32.totalorder %v4850_v27, 600  ;;  %v1302_v6 = vsel %vm427_vm2, %v5030_v13, 0.0 }
 0x347   : > { %v1475_v21 = vadd.f32 %v1474_v59, %v1473_v8  ;;  %v1496_v31 = vsel %vm5015_vm9, %v1294_v24, 0.0  ;;  %vm5017_vm5 = vmmov %vm5002_vm0  ;;  %v1300_v34 = vsel %vm5025_vm7, %v5024_v3, 0.0  ;;  %v5032_v8 = vld [vmem:[#allocation91_spill] sm:$0xff] }
 0x348   : > { %v1498_v20 = vsel %vm5017_vm5, %v1295_v14, 0.0  ;;  %vm5019_vm13 = vmmov %vm5002_vm0  ;;  %v1303_v27 = vsel %vm428_vm4, %v5032_v8, 0.0 }
 0x349   : > { %v1477_v40 = vadd.f32 %v1476_v29, %v1475_v21  ;;  %v1500_v0 = vsel %vm5019_vm13, %v1296_v17, 0.0  ;;  %vm5021_vm10 = vmmov %vm5002_vm0  ;;  %v5034_v21 = vld [vmem:[#allocation92_spill] sm:$0xff] }
 0x34a   : > { %v1502_v1 = vsel %vm5021_vm10, %v1297_v25, 0.0  ;;  %vm5023_vm3 = vmmov %vm5002_vm0 }
 0x34b   : > { %v1479_v9 = vadd.f32 %v1478_v54, %v1477_v40  ;;  %v1504_v12 = vsel %vm5023_vm3, %v1298_v53, 0.0  ;;  %vm5026_vm14 = vmmov %vm5002_vm0  ;;  %vm5028_vm0 = vcmp.lt.s32.totalorder %v3243_v50, 600  ;;  %v1304_v50 = vsel %vm429_vm6, %v5034_v21, 0.0  ;;  %v5037_v40 = vld [vmem:[#allocation72_spill] sm:$0xff] }
 0x34c   : > { %v1506_v16 = vsel %vm5026_vm14, %v1299_v62, 0.0  ;;  %v1301_v55 = vsel %vm5028_vm0, %v5027_v48, 0.0  ;;  %vm5029_vm12 = vmmov %vm5023_vm3  ;;  %vm5038_vm2 = vcmp.lt.s32.totalorder %v5037_v40, 600  ;;  %vm1527_vm6 = vcmask 57344  }
 0x34d   : > { %v1481_v39 = vadd.f32 %v1480_v63, %v1479_v9  ;;  %v1508_v7 = vsel %vm5029_vm12, %v1300_v34, 0.0  ;;  %vm5031_vm9 = vmmov %vm5023_vm3  ;;  %v1305_v54 = vsel %vm5038_vm2, %v5036_v18, 0.0 }
 0x34e   : > { %v1510_v43 = vsel %vm5031_vm9, %v1301_v55, 0.0  ;;  %vm5033_vm1 = vmmov %vm5023_vm3 }
 0x34f   : > { %v1483_v36 = vadd.f32 %v1482_v5, %v1481_v39  ;;  %v1512_v38 = vsel %vm5033_vm1, %v1302_v6, 0.0  ;;  %vm5035_vm5 = vmmov %vm5033_vm1 }
 0x350   : > { %v1514_v26 = vsel %vm5035_vm5, %v1303_v27, 0.0  ;;  %vm5039_vm11 = vmmov %vm5033_vm1 }
 0x351   : > { %v1485_v61 = vadd.f32 %v1484_v47, %v1483_v36  ;;  %v1516_v51 = vsel %vm5039_vm11, %v1304_v50, 0.0  ;;  %vm5040_vm4 = vmmov %vm5033_vm1 }
 0x352   : > { %v1518_v63 = vsel %vm5040_vm4, %v1305_v54, 0.0 }
 0x353   : > { %v1487_v22 = vadd.f32 %v1486_v30, %v1485_v61 }
 0x355   : > { %v1489_v46 = vadd.f32 %v1488_v2, %v1487_v22  ;;  %v1456_v22 = vld [vmem:[%s2853_s16] sm:$0x1] }
 0x357   : > { %v1491_v58 = vadd.f32 %v1490_v23, %v1489_v46  ;;  %v1307_v23 = vld [vmem:[%s2858_s28 + $0x8] sm:$0xff] }
 0x359   : > { %v1493_v56 = vadd.f32 %v1492_v52, %v1491_v58 }
 0x35b   : > { %v1495_v37 = vadd.f32 %v1494_v57, %v1493_v56 }
 0x35d   : > { %v1497_v33 = vadd.f32 %v1496_v31, %v1495_v37 }
 0x35f   : > { %v1499_v19 = vadd.f32 %v1498_v20, %v1497_v33 }
 0x361   : > { %v1501_v28 = vadd.f32 %v1500_v0, %v1499_v19 }
 0x363   : > { %v1503_v32 = vadd.f32 %v1502_v1, %v1501_v28 }
 0x365   : > { %v1505_v15 = vadd.f32 %v1504_v12, %v1503_v32 }
 0x367   : > { %v1507_v35 = vadd.f32 %v1506_v16, %v1505_v15 }
 0x369   : > { %v1509_v44 = vadd.f32 %v1508_v7, %v1507_v35 }
 0x36b   : > { %v1511_v59 = vadd.f32 %v1510_v43, %v1509_v44 }
 0x36d   : > { %v1513_v29 = vadd.f32 %v1512_v38, %v1511_v59 }
 0x36f   : > { %v1515_v49 = vadd.f32 %v1514_v26, %v1513_v29 }
 0x371   : > { %v1517_v9 = vadd.f32 %v1516_v51, %v1515_v49 }
 0x373   : > { %v1519_v11 = vadd.f32 %v1518_v63, %v1517_v9 }
 0x375   : > { %v1520_v60 = vrot.slane %v1519_v11, 4 }
 0x377   : > { %v1521_v39 = vadd.f32 %v1520_v60, %v1519_v11 }
 0x379   : > { %v1522_v5 = vrot.slane %v1521_v39, 2 }
 0x37b   : > { %v1523_v41 = vadd.f32 %v1522_v5, %v1521_v39 }
 0x37d   : > { %v1524_v36 = vrot.slane %v1523_v41, 1 }
 0x37f   : > { %v1525_v4 = vadd.f32 %v1524_v36, %v1523_v41 }
 0x381   : > { %v1526_v10 = vadd.f32 %v1525_v4, %v1456_v22 }
 0x383   : > { %1528 = vst.msk [vmem:[%s2853_s16] sm:$0x1] %vm1527_vm6, %v1526_v10 }
 0x399   : > { %v1389_v47 = vpop.f32.mrf.mxu2  ;;  %v1409_v61 = vpop.f32.mrf.mxu3 }
 0x39a   : > { %v1410_v30 = vadd.f32 %v1409_v61, %v1389_v47 }
 0x39c   : > { %v1452_v2 = vadd.f32 %v1410_v30, %v1306_v42 }
 0x39e   : > { %1454 = vst [vmem:[%s2858_s28] sm:$0xff] %v1452_v2 }
 0x3b9   : > { %v1429_v46 = vpop.f32.mrf.mxu2  ;;  %v1449_v45 = vpop.f32.mrf.mxu3 }
 0x3ba   : > { %v1450_v58 = vadd.f32 %v1449_v45, %v1429_v46  ;;  %1543 = sbr.rel (!%p2785_p11) target bundleno = 1028 (0x404), region = 48 }
 0x3bc   : > { %v1453_v52 = vadd.f32 %v1450_v58, %v1307_v23 }
 0x3be   : > { %1455 = vst [vmem:[%s2858_s28 + $0x8] sm:$0xff] %v1453_v52 }
 0x3bf   : > { %s5068_s22 = smov (!%p1546_p5, %s2925_s22), 2 }
 0x3c0   : > { %s2110_s27 = sshll.u32 %s5068_s22, 5  ;;  %s2130_s17 = sshll.u32 %s5068_s22, 8 }
 0x3c1   : > { %s1549_s6 = ssub.s32 75, %s2110_s27  ;;  %s4468_s16 = scalar_lea.vmem %s4620_s3, %s2130_s17  }
 0x3c2   : > { %p1550_p6 = scmp.lt.s32.totalorder %s1549_s6, 32 }
 0x3c4   : > { %s5070_s6 = smov (!%p1550_p6, %s1549_s6), 32 }
 0x3c5   : > { %s2111_s28 = sshll.u32 %s5070_s6, 3 }
 0x3c6   : > { %p2114_p7 = scmp.eq.s32.totalorder %s2111_s28, 0 }
 0x3c7   : > { %s4474_s10 = sshrl.u32 (!%p2114_p7), %s5070_s6, 5 }
 0x3c8   : > { %1558 = sbr.rel (%p2114_p7) target bundleno = 1028 (0x404), region = 52  ;;  %p2115_p11 = scmp.le.s32.totalorder (!%p2114_p7), %s4474_s10, 0 }
 0x3cd   : > { %1877 = sbr.rel (%p2115_p11) target bundleno = 1011 (0x3f3), region = 158  ;;  %s5041_s22 = smov (!%p2115_p11), %s4468_s16 }
 0x3ce   : > { %s5042_s14 = smov (!%p2115_p11), %s2860_s30  ;;  %s4483_s12 = smov (!%p2115_p11), 0  }
 0x3cf   : > { %s4485_s15 = smov (!%p2115_p11), 0  }
 0x3d2 LB: >> { %v1683_v24 = vld [vmem:[%s2653_s14] sm:$0xff]  ;;  %v1685_v56 = vld [vmem:[%s2653_s14 + $0x8] sm:$0xff]  ;;  %v1687_v57 = vld [vmem:[%s2653_s14 + $0x10] sm:$0xff]  ;;  %s1747_s9 = sadd.s32 1, %s2657_s12  ;;  %s1677_s15 = sadd.s32 1, %s2661_s15   ;;  %s2661_s15 = sphi %s4485_s15, %s1677_s15   ;;  %s2657_s12 = sphi %s4483_s12, %s5045_s12   ;;  %s2653_s14 = sphi %s5042_s14, %s5044_s14   ;;  %s2649_s22 = sphi %s5041_s22, %s5043_s22  }
 0x3d3   : >> { %1684 = vst [vmem:[%s2649_s22] sm:$0xff] %v1683_v24  ;;  %v1689_v14 = vld [vmem:[%s2653_s14 + $0x18] sm:$0xff]  ;;  %p1748_p8 = scmp.ge.s32.totalorder %s1747_s9, %s4474_s10  ;;  %v1691_v37 = vld [vmem:[%s2653_s14 + $0x20] sm:$0xff]  ;;  %v1693_v31 = vld [vmem:[%s2653_s14 + $0x28] sm:$0xff]  ;;  %p1676_p9 = scmp.ge.s32.totalorder %s1677_s15, %s4474_s10 }
 0x3d4   : >> { %1686 = vst [vmem:[%s2649_s22 + $0x8] sm:$0xff] %v1685_v56  ;;  %v1695_v17 = vld [vmem:[%s2653_s14 + $0x30] sm:$0xff]  ;;  %v1697_v33 = vld [vmem:[%s2653_s14 + $0x38] sm:$0xff]  ;;  %v1699_v20 = vld [vmem:[%s2653_s14 + $0x40] sm:$0xff] }
 0x3d5   : >> { %1688 = vst [vmem:[%s2649_s22 + $0x10] sm:$0xff] %v1687_v57  ;;  %s5072_s9 = smov (%p1748_p8, %s1747_s9), 0  ;;  %v1701_v25 = vld [vmem:[%s2653_s14 + $0x48] sm:$0xff]  ;;  %v1703_v19 = vld [vmem:[%s2653_s14 + $0x50] sm:$0xff]  ;;  %v1705_v0 = vld [vmem:[%s2653_s14 + $0x58] sm:$0xff] }
 0x3d6   : >> { %1690 = vst [vmem:[%s2649_s22 + $0x18] sm:$0xff] %v1689_v14  ;;  %s2116_s29 = sshll.u32 %s5072_s9, 8  ;;  %v1707_v53 = vld [vmem:[%s2653_s14 + $0x60] sm:$0xff]  ;;  %v1709_v28 = vld [vmem:[%s2653_s14 + $0x68] sm:$0xff]  ;;  %v1711_v1 = vld [vmem:[%s2653_s14 + $0x70] sm:$0xff]  ;;  %s5045_s12 = smov %s5072_s9 }
 0x3d7   : >> { %1692 = vst [vmem:[%s2649_s22 + $0x20] sm:$0xff] %v1691_v37  ;;  %s4517_s18 = scalar_lea.vmem %s2860_s30, %s2116_s29 [#allocation4]   ;;  %s4520_s11 = scalar_lea.vmem %s4468_s16, %s2116_s29   ;;  %v1713_v62 = vld [vmem:[%s2653_s14 + $0x78] sm:$0xff]  ;;  %v1715_v32 = vld [vmem:[%s2653_s14 + $0x80] sm:$0xff]  ;;  %v1717_v12 = vld [vmem:[%s2653_s14 + $0x88] sm:$0xff] }
 0x3d8   : >> { %1694 = vst [vmem:[%s2649_s22 + $0x28] sm:$0xff] %v1693_v31  ;;  %v1719_v3 = vld [vmem:[%s2653_s14 + $0x90] sm:$0xff]  ;;  %v1721_v34 = vld [vmem:[%s2653_s14 + $0x98] sm:$0xff]  ;;  %v1723_v15 = vld [vmem:[%s2653_s14 + $0xa0] sm:$0xff] }
 0x3d9   : >> { %1696 = vst [vmem:[%s2649_s22 + $0x30] sm:$0xff] %v1695_v17  ;;  %v1725_v16 = vld [vmem:[%s2653_s14 + $0xa8] sm:$0xff]  ;;  %v1727_v48 = vld [vmem:[%s2653_s14 + $0xb0] sm:$0xff]  ;;  %v1729_v55 = vld [vmem:[%s2653_s14 + $0xb8] sm:$0xff] }
 0x3da   : >> { %1698 = vst [vmem:[%s2649_s22 + $0x38] sm:$0xff] %v1697_v33  ;;  %v1731_v35 = vld [vmem:[%s2653_s14 + $0xc0] sm:$0xff]  ;;  %v1733_v7 = vld [vmem:[%s2653_s14 + $0xc8] sm:$0xff]  ;;  %v1735_v13 = vld [vmem:[%s2653_s14 + $0xd0] sm:$0xff] }
 0x3db   : >> { %1700 = vst [vmem:[%s2649_s22 + $0x40] sm:$0xff] %v1699_v20  ;;  %v1737_v6 = vld [vmem:[%s2653_s14 + $0xd8] sm:$0xff]  ;;  %v1739_v44 = vld [vmem:[%s2653_s14 + $0xe0] sm:$0xff]  ;;  %v1741_v43 = vld [vmem:[%s2653_s14 + $0xe8] sm:$0xff] }
 0x3dc   : >> { %1702 = vst [vmem:[%s2649_s22 + $0x48] sm:$0xff] %v1701_v25  ;;  %v1743_v8 = vld [vmem:[%s2653_s14 + $0xf0] sm:$0xff]  ;;  %v1745_v27 = vld [vmem:[%s2653_s14 + $0xf8] sm:$0xff]  ;;  %s5044_s14 = smov %s4517_s18 }
 0x3dd   : >> { %1704 = vst [vmem:[%s2649_s22 + $0x50] sm:$0xff] %v1703_v19 }
 0x3de   : >> { %1706 = vst [vmem:[%s2649_s22 + $0x58] sm:$0xff] %v1705_v0 }
 0x3df   : >> { %1708 = vst [vmem:[%s2649_s22 + $0x60] sm:$0xff] %v1707_v53 }
 0x3e0   : >> { %1710 = vst [vmem:[%s2649_s22 + $0x68] sm:$0xff] %v1709_v28 }
 0x3e1   : >> { %1712 = vst [vmem:[%s2649_s22 + $0x70] sm:$0xff] %v1711_v1 }
 0x3e2   : >> { %1714 = vst [vmem:[%s2649_s22 + $0x78] sm:$0xff] %v1713_v62 }
 0x3e3   : >> { %1716 = vst [vmem:[%s2649_s22 + $0x80] sm:$0xff] %v1715_v32 }
 0x3e4   : >> { %1718 = vst [vmem:[%s2649_s22 + $0x88] sm:$0xff] %v1717_v12 }
 0x3e5   : >> { %1720 = vst [vmem:[%s2649_s22 + $0x90] sm:$0xff] %v1719_v3 }
 0x3e6   : >> { %1722 = vst [vmem:[%s2649_s22 + $0x98] sm:$0xff] %v1721_v34 }
 0x3e7   : >> { %1724 = vst [vmem:[%s2649_s22 + $0xa0] sm:$0xff] %v1723_v15 }
 0x3e8   : >> { %1726 = vst [vmem:[%s2649_s22 + $0xa8] sm:$0xff] %v1725_v16 }
 0x3e9   : >> { %1728 = vst [vmem:[%s2649_s22 + $0xb0] sm:$0xff] %v1727_v48 }
 0x3ea   : >> { %1730 = vst [vmem:[%s2649_s22 + $0xb8] sm:$0xff] %v1729_v55 }
 0x3eb   : >> { %1732 = vst [vmem:[%s2649_s22 + $0xc0] sm:$0xff] %v1731_v35 }
 0x3ec   : >> { %1734 = vst [vmem:[%s2649_s22 + $0xc8] sm:$0xff] %v1733_v7 }
 0x3ed   : >> { %1736 = vst [vmem:[%s2649_s22 + $0xd0] sm:$0xff] %v1735_v13 }
 0x3ee   : >> { %1738 = vst [vmem:[%s2649_s22 + $0xd8] sm:$0xff] %v1737_v6  ;;  %1679 = sbr.rel (!%p1676_p9) target bundleno = 978 (0x3d2), region = 164 }
 0x3ef   : >> { %1740 = vst [vmem:[%s2649_s22 + $0xe0] sm:$0xff] %v1739_v44 }
 0x3f0   : >> { %1742 = vst [vmem:[%s2649_s22 + $0xe8] sm:$0xff] %v1741_v43 }
 0x3f1   : >> { %1744 = vst [vmem:[%s2649_s22 + $0xf0] sm:$0xff] %v1743_v8 }
 0x3f2   : >> { %1746 = vst [vmem:[%s2649_s22 + $0xf8] sm:$0xff] %v1745_v27  ;;  %s5043_s22 = smov %s4520_s11 }
 0x3f3 PF: > { %s4585_s8 = sand.u32 31, %s5070_s6   ;;  %s2131_s26 = sshll.u32 %s4474_s10, 8 }
 0x3f4   : > { %s1758_s27 = scalar_lea.vmem %s2860_s30, %s2131_s26 [#allocation4]   ;;  %s1760_s17 = scalar_lea.vmem %s4468_s16, %s2131_s26  }
 0x3f5   : > { %p2121_p12 = scmp.le.s32.totalorder %s4585_s8, 0 }
 0x3f6   : > { %s2663_s21 = smov (!%p2121_p12), %s1760_s17   ;;  %s2667_s7 = smov (!%p2121_p12), %s1758_s27  }
 0x3f7   : > { %1891 = sbr.rel (%p2121_p12) target bundleno = 1028 (0x404), region = 169  ;;  %s2671_s28 = smov (!%p2121_p12), 0  }
 0x3f8   : > { %s2675_s9 = smov (!%p2121_p12), 0  }
 0x3fc LB: >> { %v1770_v59 = vld [vmem:[%s2669_s7] sm:$0xff]  ;;  %s1772_s6 = sadd.s32 1, %s2673_s28  ;;  %s1764_s9 = sadd.s32 1, %s2677_s9   ;;  %s2677_s9 = sphi %s2675_s9, %s1764_s9   ;;  %s2673_s28 = sphi %s2671_s28, %s2672_s28   ;;  %s2669_s7 = sphi %s2667_s7, %s1777_s7   ;;  %s2665_s21 = sphi %s2663_s21, %s1778_s21  }
 0x3fd   : >> { %1771 = vst [vmem:[%s2665_s21] sm:$0xff] %v1770_v59  ;;  %p1773_p13 = scmp.ge.s32.totalorder %s1772_s6, %s4585_s8  ;;  %p1763_p0 = scmp.ge.s32.totalorder %s1764_s9, %s4585_s8 }
 0x3ff   : >> { %s5074_s6 = smov (%p1773_p13, %s1772_s6), 0  ;;  %1766 = sbr.rel (!%p1763_p0) target bundleno = 1020 (0x3fc), region = 175 }
 0x400   : >> { %s2122_s30 = sshll.u32 %s5074_s6, 3  ;;  %s2672_s28 = smov %s5074_s6  }
 0x401   : >> { %s1777_s7 = scalar_lea.vmem %s1758_s27, %s2122_s30 [#allocation4]   ;;  %s1778_s21 = scalar_lea.vmem %s1760_s17, %s2122_s30  }
 0x404 PF: > { %s19_s25 = sadd.s32 1, %s2645_s25   ;;  %s5046_s16 = sld [smem:[#allocation6_spill]] }
 0x405   : > { %p16_p2 = scmp.ge.s32.totalorder %s19_s25, 6   ;;  %s5047_s10 = sld [smem:[#allocation7_spill]] }
 0x406   : > { %s5048_s18 = smov %s2621_s19  ;;  %s5049_s19 = smov %s2625_s20 }
 0x407   : > { %s5050_s20 = smov %s2792_s13  ;;  %s5051_s21 = smov %s2637_s23 }
 0x408   : > { %s5052_s22 = smov %s2641_s24  ;;  %18 = sbr.rel (!%p16_p2) target bundleno = 5 (0x5), region = 186 }
 0x40a   : > { %s5053_s23 = smov %s5046_s16 }
 0x40b   : > { %s5054_s24 = smov %s5047_s10 }
 0x40d   :  { %1814 = vsyncpa [#allocation3], 1 }
 0x40e   :  { %1816 = vsyncpa [#allocation3 + $0x1], 1 }

</bundles_post_ra>
